<compile_context>
chip_gen: v7x
topology: tpu7x:2x2x1
jax: 0.10.0
libtpu: 0.0.40
codegen_flags: <defaults>
</compile_context>

<pallas_src>
import functools

import jax
import jax.numpy as jnp
from jax.experimental import pallas as pl
from jax.experimental.pallas import tpu as pltpu

# The kernel is exact fp32 (no MXU); run the pure-JAX reference matmuls at full
# f32 precision too so the comparison is tight.
jax.config.update("jax_default_matmul_precision", "highest")

# Config mirroring ResidualBottleneck(in_channels=4, exp_size=16, kernel_size=3,
#                                     nl_activation='HS', need_se=True, reduce=4)
IN_CH = 4
EXP = 16
KSIZE = 3
REDUCE = 4
SE_HID = EXP // REDUCE
EPS = 1e-5


# -----------------------------------------------------------------------------
# Parameter packing: one lane-padded (EXP, 128) f32 slab, static column offsets.
# -----------------------------------------------------------------------------
def _build_param_layout():
    layout = {}
    off = 0

    def add(name, rows, cols):
        nonlocal off
        layout[name] = (rows, off, cols)
        off += cols

    add("w_upT", EXP, IN_CH)           # (E, Cin)   conv1x1_up weight, transposed
    add("w_dwT", EXP, KSIZE * KSIZE)   # (E, k*k)   depthwise taps, transposed, /6
    add("w_pwT", EXP, EXP)             # (Eout,Ein) pointwise weight, transposed
    add("w_downT", IN_CH, EXP)         # (Cin, E)   conv1x1_down weight, transposed, /6
    add("w_se1", EXP, SE_HID)          # (E, hid)   SE FC1 weight (not transposed), /6
    add("w_se2T", EXP, SE_HID)         # (E, hid)   SE FC2 weight, transposed
    add("b_se1", 1, SE_HID)            # (1, hid)   SE FC1 bias as a lane row
    for name in ("b_up", "g1", "bt1", "b_dw", "b_pw", "g2", "bt2", "b_se2"):
        add(name, EXP, 1)
    for name in ("b_down", "g3", "bt3"):
        add(name, IN_CH, 1)
    return layout, off


PARAM_LAYOUT, _PARAM_COLS = _build_param_layout()
PSLAB_COLS = ((_PARAM_COLS + 127) // 128) * 128      # -> 128


def pack_params(params):
    """Pack all 18 parameter tensors into a single (EXP, PSLAB_COLS) f32 slab.

    Hardswish's /6 is folded here: w_dw absorbs hs1's /6; w_se1 and w_down
    absorb hs2's /6 (biases stay unscaled; the folds are exact re-associations).
    """
    sixth = jnp.float32(1.0 / 6.0)
    entries = {
        "w_upT": jnp.transpose(params["w_up"]),               # (Cin,E) -> (E,Cin)
        "w_dwT": jnp.transpose(params["w_dw"]) * sixth,       # (k*k,E) -> (E,k*k)
        "w_pwT": jnp.transpose(params["w_pw"]),               # (E,E)   -> transposed
        "w_downT": jnp.transpose(params["w_down"]) * sixth,   # (E,Cin) -> (Cin,E)
        "w_se1": params["w_se1"] * sixth,                     # (E,hid) as-is
        "w_se2T": jnp.transpose(params["w_se2"]),             # (hid,E) -> (E,hid)
        "b_se1": params["b_se1"],
        "b_up": params["b_up"], "g1": params["g1"], "bt1": params["bt1"],
        "b_dw": params["b_dw"], "b_pw": params["b_pw"],
        "g2": params["g2"], "bt2": params["bt2"], "b_se2": params["b_se2"],
        "b_down": params["b_down"], "g3": params["g3"], "bt3": params["bt3"],
    }
    slab = jnp.zeros((EXP, PSLAB_COLS), jnp.float32)
    for name, val in entries.items():
        rows, off, cols = PARAM_LAYOUT[name]
        val = jnp.asarray(val, jnp.float32).reshape(rows, cols)
        slab = slab.at[:rows, off:off + cols].set(val)
    return slab


# -----------------------------------------------------------------------------
# Kernel helpers
# -----------------------------------------------------------------------------
def _hardswish6(v):
    """6 * Hardswish(v); the 1/6 is pre-folded into the downstream weights."""
    return v * jnp.clip(v + 3.0, 0.0, 6.0)


def _batchnorm(v, gamma, beta):
    """Training-mode BatchNorm2d folded to per-channel scale/shift.

    v: (C, N); batch+spatial reduction along the lane axis. Single-pass
    E[x^2]-E[x]^2 variance (one data pass); rsqrt goes to the EUP; apply is a
    single FMA-able v*scale + shift.
    """
    m = jnp.mean(v, axis=1, keepdims=True)
    msq = jnp.mean(v * v, axis=1, keepdims=True)
    var = jnp.maximum(msq - m * m, 0.0)
    scale = gamma * jax.lax.rsqrt(var + EPS)
    shift = beta - m * scale
    return v * scale + shift


def _tree_sum(terms):
    terms = list(terms)
    while len(terms) > 1:
        nxt = [terms[i] + terms[i + 1] for i in range(0, len(terms) - 1, 2)]
        if len(terms) % 2:
            nxt.append(terms[-1])
        terms = nxt
    return terms[0]


def _mac_rows(wT, src, bias, n_src, n_par=2):
    """bias + sum_c wT[:, c:c+1] * src[c:c+1, :], with n_par independent
    partial-sum chains combined by a tree add (ILP for the 4 VALU slots)."""
    n_par = max(1, min(n_par, n_src))
    parts = []
    for p in range(n_par):
        cols = list(range(p, n_src, n_par))
        acc = wT[:, cols[0]:cols[0] + 1] * src[cols[0]:cols[0] + 1, :]
        for c in cols[1:]:
            acc = acc + wT[:, c:c + 1] * src[c:c + 1, :]
        parts.append(acc)
    return _tree_sum(parts) + bias


# -----------------------------------------------------------------------------
# Fused kernel
# -----------------------------------------------------------------------------
def residual_bottleneck_kernel(x_ref, p_ref, o_ref, *, batch, height, width):
    Cin, E, k = IN_CH, EXP, KSIZE
    HW = height * width
    BHW = batch * HW
    pow2 = (width & (width - 1)) == 0 and (height & (height - 1)) == 0

    P = p_ref[...]

    def par(name):
        rows, off, cols = PARAM_LAYOUT[name]
        return P[:rows, off:off + cols]

    # ---- input: already a lane-dense (Cin, B*HW) slab (host permute) ---------
    xt = x_ref[...].astype(jnp.float32)                          # (Cin, BHW)

    # ---- conv1x1_up (Cin->E) + bn1 + Hardswish (x6; /6 folded into w_dw) -----
    r = _mac_rows(par("w_upT"), xt, par("b_up"), Cin, n_par=2)   # (E, BHW)
    r = _hardswish6(_batchnorm(r, par("g1"), par("bt1")))

    # ---- depthwise kxk conv (groups==channels, pad k//2, stride 1) -----------
    # Circular lane rolls (XLU) per tap; (1, BHW) boundary masks zero exactly
    # the lanes a wrap would corrupt (incl. cross-image / cross-batch leakage).
    lane = jax.lax.broadcasted_iota(jnp.int32, (1, BHW), 1)
    if pow2:
        w_id = jnp.bitwise_and(lane, width - 1)
        h_id = jnp.bitwise_and(
            jnp.right_shift(lane, (width - 1).bit_length()), height - 1)
    else:  # generic fallback (unused for the power-of-two test shapes)
        w_id = lane % width
        h_id = (lane // width) % height

    w_dwT = par("w_dwT")                                         # (E, k*k), /6
    c0 = (k // 2) * k + (k // 2)
    acc_a = par("b_dw") + r * w_dwT[:, c0:c0 + 1]                # bias + center
    acc_b = None
    tap_i = 0
    for dy in range(k):
        for dx in range(k):
            dh, dw = dy - k // 2, dx - k // 2
            if dh == 0 and dw == 0:
                continue
            delta = dh * width + dw
            shifted = pltpu.roll(r, shift=(-delta) % BHW, axis=1)
            cond = None
            if dw == 1:
                cond = w_id < (width - 1)
            elif dw == -1:
                cond = w_id > 0
            if dh == 1:
                c2 = h_id < (height - 1)
                cond = c2 if cond is None else jnp.logical_and(cond, c2)
            elif dh == -1:
                c2 = h_id > 0
                cond = c2 if cond is None else jnp.logical_and(cond, c2)
            mf = cond.astype(jnp.float32)                        # (1, BHW)
            t = dy * k + dx
            contrib = (shifted * mf) * w_dwT[:, t:t + 1]
            if tap_i % 2 == 0:
                acc_a = acc_a + contrib
            else:
                acc_b = contrib if acc_b is None else acc_b + contrib
            tap_i += 1
    acc = acc_a + acc_b if acc_b is not None else acc_a          # (E, BHW)

    # ---- pointwise 1x1 (E->E) + bn2 + Hardswish (x6; /6 folded downstream) ---
    pw = _mac_rows(par("w_pwT"), acc, par("b_pw"), E, n_par=2)
    s2 = _hardswish6(_batchnorm(pw, par("g2"), par("bt2")))      # (E, BHW)

    # ---- SE: pool -> FC -> ReLU -> FC -> sigmoid -> gate ---------------------
    # FC1: sublane reduce of (E,hid)*(E,1); FC2: lane reduce of (E,hid)*(1,hid).
    # The gate is applied to the whole slab via (1,BHW) batch masks.
    w_se1, w_se2T = par("w_se1"), par("w_se2T")
    b_se1, b_se2 = par("b_se1"), par("b_se2")
    inv_hw = jnp.float32(1.0 / HW)
    lane2 = jax.lax.broadcasted_iota(jnp.int32, (1, BHW), 1)
    if pow2:
        b_id = jnp.right_shift(lane2, (HW - 1).bit_length())
    else:
        b_id = lane2 // HW

    gate_slab = None
    for b in range(batch):
        pooled = jnp.sum(s2[:, b * HW:(b + 1) * HW],             # lane-aligned slice
                         axis=1, keepdims=True) * inv_hw         # (E, 1)
        z = jnp.sum(w_se1 * pooled, axis=0, keepdims=True) + b_se1   # (1, hid)
        z = jnp.maximum(z, 0.0)
        g = jnp.sum(w_se2T * z, axis=1, keepdims=True) + b_se2       # (E, 1)
        gate = jax.nn.sigmoid(g)
        bm = (b_id == b).astype(jnp.float32)                         # (1, BHW)
        contrib = gate * bm                                          # (E, BHW)
        gate_slab = contrib if gate_slab is None else gate_slab + contrib
    s2g = s2 * gate_slab                                             # (E, BHW)

    # ---- conv1x1_down (E->Cin) + bn3 + residual; one full-block store --------
    d = _mac_rows(par("w_downT"), s2g, par("b_down"), E, n_par=4)    # (Cin, BHW)
    d = _batchnorm(d, par("g3"), par("bt3"))
    o_ref[...] = (xt + d).astype(o_ref.dtype)


# -----------------------------------------------------------------------------
# Wrapper
# -----------------------------------------------------------------------------
def residual_bottleneck(x_nchw, params):
    """x_nchw: (B, IN_CH, H, W) float32 (PyTorch layout). Returns same layout."""
    B, Cin, H, W = x_nchw.shape
    assert Cin == IN_CH
    HW = H * W
    # One host-side permute to the channels-on-sublanes / batch-major-spatial-
    # on-lanes layout; the kernel then does a single full-block load and store.
    xt = jnp.transpose(x_nchw.reshape(B, Cin, HW), (1, 0, 2)).reshape(Cin, B * HW)
    xt = xt.astype(jnp.float32)
    pslab = pack_params(params)

    kernel = functools.partial(residual_bottleneck_kernel, batch=B, height=H, width=W)
    out = pl.pallas_call(
        kernel,
        out_shape=jax.ShapeDtypeStruct((Cin, B * HW), jnp.float32),
        grid=(1,),
        in_specs=[
            pl.BlockSpec((Cin, B * HW), lambda i: (0, 0)),
            pl.BlockSpec((EXP, PSLAB_COLS), lambda i: (0, 0)),
        ],
        out_specs=pl.BlockSpec((Cin, B * HW), lambda i: (0, 0)),
        compiler_params=pltpu.CompilerParams(dimension_semantics=("arbitrary",)),
    )(xt, pslab)
    return jnp.transpose(out.reshape(Cin, B, HW), (1, 0, 2)).reshape(B, Cin, H, W)


# -----------------------------------------------------------------------------
# Parameters (PyTorch-like shapes) and pure-JAX reference
# -----------------------------------------------------------------------------
def make_params(key):
    keys = jax.random.split(key, 18)

    def u(k, shape, scale=0.2):
        return jax.random.uniform(k, shape, jnp.float32, -1.0, 1.0) * scale

    return dict(
        w_up=u(keys[0], (IN_CH, EXP)),          # Conv2d(in, exp, 1) weight (Cin, E)
        b_up=u(keys[1], (1, EXP)),
        g1=1.0 + u(keys[2], (1, EXP), 0.1),     # BatchNorm2d(exp) gamma / beta
        bt1=u(keys[3], (1, EXP), 0.1),
        w_dw=u(keys[4], (KSIZE * KSIZE, EXP)),  # depthwise (exp,1,k,k) -> (k*k, E)
        b_dw=u(keys[5], (1, EXP)),
        w_pw=u(keys[6], (EXP, EXP)),            # Conv2d(exp, exp, 1) weight
        b_pw=u(keys[7], (1, EXP)),
        g2=1.0 + u(keys[8], (1, EXP), 0.1),
        bt2=u(keys[9], (1, EXP), 0.1),
        w_se1=u(keys[10], (EXP, SE_HID)),       # Linear(exp, exp//reduce)
        b_se1=u(keys[11], (1, SE_HID)),
        w_se2=u(keys[12], (SE_HID, EXP)),       # Linear(exp//reduce, exp)
        b_se2=u(keys[13], (1, EXP)),
        w_down=u(keys[14], (EXP, IN_CH)),       # Conv2d(exp, in, 1) weight
        b_down=u(keys[15], (1, IN_CH)),
        g3=1.0 + u(keys[16], (1, IN_CH), 0.1),
        bt3=u(keys[17], (1, IN_CH), 0.1),
    )


def reference(x_nchw, pr):
    """Pure-JAX reference mirroring the PyTorch forward."""
    x = jnp.transpose(x_nchw, (0, 2, 3, 1)).astype(jnp.float32)
    B, H, W, Cin = x.shape

    def bn(v, g, b):
        m = jnp.mean(v, axis=0, keepdims=True)
        var = jnp.mean((v - m) ** 2, axis=0, keepdims=True)
        return g * (v - m) / jnp.sqrt(var + EPS) + b

    def hs(v):
        return v * jnp.clip(v + 3.0, 0.0, 6.0) / 6.0

    xm = x.reshape(-1, Cin)
    r = hs(bn(xm @ pr["w_up"] + pr["b_up"], pr["g1"], pr["bt1"]))
    r4 = r.reshape(B, H, W, EXP)
    pad = KSIZE // 2
    xp = jnp.pad(r4, ((0, 0), (pad, pad), (pad, pad), (0, 0)))
    acc = jnp.zeros((B, H, W, EXP)) + pr["b_dw"].reshape(1, 1, 1, EXP)
    for dy in range(KSIZE):
        for dx in range(KSIZE):
            acc = acc + xp[:, dy:dy + H, dx:dx + W, :] * pr["w_dw"][dy * KSIZE + dx].reshape(1, 1, 1, EXP)
    rm = acc.reshape(-1, EXP) @ pr["w_pw"] + pr["b_pw"]
    rm = hs(bn(rm, pr["g2"], pr["bt2"]))
    pooled = jnp.mean(rm.reshape(B, H * W, EXP), axis=1)
    s = jnp.maximum(pooled @ pr["w_se1"] + pr["b_se1"], 0.0)
    s = jax.nn.sigmoid(s @ pr["w_se2"] + pr["b_se2"])
    rm = (rm.reshape(B, H * W, EXP) * s.reshape(B, 1, EXP)).reshape(-1, EXP)
    d = bn(rm @ pr["w_down"] + pr["b_down"], pr["g3"], pr["bt3"])
    y = (xm + d).reshape(B, H, W, Cin)
    return jnp.transpose(y, (0, 3, 1, 2))


if __name__ == "__main__":
    key = jax.random.PRNGKey(0)
    kx, kp = jax.random.split(key)
    x = jax.random.normal(kx, (2, IN_CH, 16, 16), jnp.float32)   # NCHW like PyTorch
    params = make_params(kp)

    y = residual_bottleneck(x, params)
    jax.block_until_ready(y)

    y_ref = reference(x, params)
    assert y.shape == x.shape, (y.shape, x.shape)
    assert bool(jnp.all(jnp.isfinite(y)))
    assert bool(jnp.allclose(y, y_ref, atol=2e-3, rtol=2e-3)), float(
        jnp.max(jnp.abs(y - y_ref)))
    print("KERNEL_OK")
</pallas_src>

<mosaic_0001>
module attributes {stable_mosaic.version = 11 : i64} {
  func.func @residual_bottleneck_kernel(%arg0: i32, %arg1: memref<4x512xf32, #tpu.memory_space<vmem>>, %arg2: memref<16x128xf32, #tpu.memory_space<vmem>>, %arg3: memref<4x512xf32, #tpu.memory_space<vmem>>) attributes {dimension_semantics = [#tpu.dimension_semantics<arbitrary>], iteration_bounds = array<i64: 1>, scalar_prefetch = 0 : i64, scratch_operands = 0 : i64, tpu.core_type = #tpu.core_type<tc>, window_params = [{pipeline_mode = #tpu.pipeline_mode<synchronous>, transform_indices = @transform_0, window_bounds = array<i64: 4, 512>}, {pipeline_mode = #tpu.pipeline_mode<synchronous>, transform_indices = @transform_1, window_bounds = array<i64: 16, 128>}, {pipeline_mode = #tpu.pipeline_mode<synchronous>, transform_indices = @transform_2, window_bounds = array<i64: 4, 512>}]} {
    %c0 = arith.constant 0 : index
    %c0_0 = arith.constant 0 : index
    %0 = vector.load %arg2[%c0, %c0_0] : memref<16x128xf32, #tpu.memory_space<vmem>>, vector<16x128xf32>
    %c0_1 = arith.constant 0 : index
    %c0_2 = arith.constant 0 : index
    %1 = vector.load %arg1[%c0_1, %c0_2] : memref<4x512xf32, #tpu.memory_space<vmem>>, vector<4x512xf32>
    %2 = vector.extract_strided_slice %0 {offsets = [0, 0], sizes = [16, 4], strides = [1, 1]} : vector<16x128xf32> to vector<16x4xf32>
    %3 = vector.extract_strided_slice %0 {offsets = [0, 57], sizes = [16, 1], strides = [1, 1]} : vector<16x128xf32> to vector<16x1xf32>
    %4 = vector.extract_strided_slice %2 {offsets = [0, 0], sizes = [16, 1], strides = [1, 1]} : vector<16x4xf32> to vector<16x1xf32>
    %5 = vector.extract_strided_slice %1 {offsets = [0, 0], sizes = [1, 512], strides = [1, 1]} : vector<4x512xf32> to vector<1x512xf32>
    %6 = vector.broadcast %4 : vector<16x1xf32> to vector<16x512xf32>
    %7 = vector.broadcast %5 : vector<1x512xf32> to vector<16x512xf32>
    %8 = arith.mulf %6, %7 : vector<16x512xf32>
    %9 = vector.extract_strided_slice %2 {offsets = [0, 2], sizes = [16, 1], strides = [1, 1]} : vector<16x4xf32> to vector<16x1xf32>
    %10 = vector.extract_strided_slice %1 {offsets = [2, 0], sizes = [1, 512], strides = [1, 1]} : vector<4x512xf32> to vector<1x512xf32>
    %11 = vector.broadcast %9 : vector<16x1xf32> to vector<16x512xf32>
    %12 = vector.broadcast %10 : vector<1x512xf32> to vector<16x512xf32>
    %13 = arith.mulf %11, %12 : vector<16x512xf32>
    %14 = arith.addf %8, %13 : vector<16x512xf32>
    %15 = vector.extract_strided_slice %2 {offsets = [0, 1], sizes = [16, 1], strides = [1, 1]} : vector<16x4xf32> to vector<16x1xf32>
    %16 = vector.extract_strided_slice %1 {offsets = [1, 0], sizes = [1, 512], strides = [1, 1]} : vector<4x512xf32> to vector<1x512xf32>
    %17 = vector.broadcast %15 : vector<16x1xf32> to vector<16x512xf32>
    %18 = vector.broadcast %16 : vector<1x512xf32> to vector<16x512xf32>
    %19 = arith.mulf %17, %18 : vector<16x512xf32>
    %20 = vector.extract_strided_slice %2 {offsets = [0, 3], sizes = [16, 1], strides = [1, 1]} : vector<16x4xf32> to vector<16x1xf32>
    %21 = vector.extract_strided_slice %1 {offsets = [3, 0], sizes = [1, 512], strides = [1, 1]} : vector<4x512xf32> to vector<1x512xf32>
    %22 = vector.broadcast %20 : vector<16x1xf32> to vector<16x512xf32>
    %23 = vector.broadcast %21 : vector<1x512xf32> to vector<16x512xf32>
    %24 = arith.mulf %22, %23 : vector<16x512xf32>
    %25 = arith.addf %19, %24 : vector<16x512xf32>
    %26 = arith.addf %14, %25 : vector<16x512xf32>
    %27 = vector.broadcast %3 : vector<16x1xf32> to vector<16x512xf32>
    %28 = arith.addf %26, %27 : vector<16x512xf32>
    %29 = vector.extract_strided_slice %0 {offsets = [0, 58], sizes = [16, 1], strides = [1, 1]} : vector<16x128xf32> to vector<16x1xf32>
    %30 = vector.extract_strided_slice %0 {offsets = [0, 59], sizes = [16, 1], strides = [1, 1]} : vector<16x128xf32> to vector<16x1xf32>
    %cst = arith.constant dense<0.000000e+00> : vector<16xf32>
    %31 = vector.multi_reduction <add>, %28, %cst [1] : vector<16x512xf32> to vector<16xf32>
    %32 = vector.shape_cast %31 : vector<16xf32> to vector<16x1xf32>
    %cst_3 = arith.constant 5.120000e+02 : f32
    %33 = vector.broadcast %cst_3 : f32 to vector<16x1xf32>
    %34 = arith.divf %32, %33 : vector<16x1xf32>
    %35 = arith.mulf %28, %28 : vector<16x512xf32>
    %cst_4 = arith.constant dense<0.000000e+00> : vector<16xf32>
    %36 = vector.multi_reduction <add>, %35, %cst_4 [1] : vector<16x512xf32> to vector<16xf32>
    %37 = vector.shape_cast %36 : vector<16xf32> to vector<16x1xf32>
    %cst_5 = arith.constant 5.120000e+02 : f32
    %38 = vector.broadcast %cst_5 : f32 to vector<16x1xf32>
    %39 = arith.divf %37, %38 : vector<16x1xf32>
    %40 = arith.mulf %34, %34 : vector<16x1xf32>
    %41 = arith.subf %39, %40 : vector<16x1xf32>
    %cst_6 = arith.constant 0.000000e+00 : f32
    %42 = vector.broadcast %cst_6 : f32 to vector<16x1xf32>
    %43 = arith.maximumf %41, %42 : vector<16x1xf32>
    %cst_7 = arith.constant 9.99999974E-6 : f32
    %44 = vector.broadcast %cst_7 : f32 to vector<16x1xf32>
    %45 = arith.addf %43, %44 : vector<16x1xf32>
    %46 = math.rsqrt %45 : vector<16x1xf32>
    %47 = arith.mulf %29, %46 : vector<16x1xf32>
    %48 = arith.mulf %34, %47 : vector<16x1xf32>
    %49 = arith.subf %30, %48 : vector<16x1xf32>
    %50 = vector.broadcast %47 : vector<16x1xf32> to vector<16x512xf32>
    %51 = arith.mulf %28, %50 : vector<16x512xf32>
    %52 = vector.broadcast %49 : vector<16x1xf32> to vector<16x512xf32>
    %53 = arith.addf %51, %52 : vector<16x512xf32>
    %cst_8 = arith.constant 3.000000e+00 : f32
    %54 = vector.broadcast %cst_8 : f32 to vector<16x512xf32>
    %55 = arith.addf %53, %54 : vector<16x512xf32>
    %cst_9 = arith.constant 0.000000e+00 : f32
    %cst_10 = arith.constant 6.000000e+00 : f32
    %56 = vector.broadcast %cst_9 : f32 to vector<16x512xf32>
    %57 = arith.maximumf %56, %55 : vector<16x512xf32>
    %58 = vector.broadcast %cst_10 : f32 to vector<16x512xf32>
    %59 = arith.minimumf %58, %57 : vector<16x512xf32>
    %60 = arith.mulf %53, %59 : vector<16x512xf32>
    %61 = tpu.iota {dimensions = array<i32: 1>} : vector<1x512xi32>
    %c15_i32 = arith.constant 15 : i32
    %62 = vector.broadcast %c15_i32 : i32 to vector<1x512xi32>
    %63 = arith.andi %61, %62 : vector<1x512xi32>
    %c4_i32 = arith.constant 4 : i32
    %64 = vector.broadcast %c4_i32 : i32 to vector<1x512xi32>
    %65 = arith.shrsi %61, %64 : vector<1x512xi32>
    %c15_i32_11 = arith.constant 15 : i32
    %66 = vector.broadcast %c15_i32_11 : i32 to vector<1x512xi32>
    %67 = arith.andi %65, %66 : vector<1x512xi32>
    %68 = vector.extract_strided_slice %0 {offsets = [0, 4], sizes = [16, 9], strides = [1, 1]} : vector<16x128xf32> to vector<16x9xf32>
    %69 = vector.extract_strided_slice %0 {offsets = [0, 60], sizes = [16, 1], strides = [1, 1]} : vector<16x128xf32> to vector<16x1xf32>
    %70 = vector.extract_strided_slice %68 {offsets = [0, 4], sizes = [16, 1], strides = [1, 1]} : vector<16x9xf32> to vector<16x1xf32>
    %71 = vector.broadcast %70 : vector<16x1xf32> to vector<16x512xf32>
    %72 = arith.mulf %60, %71 : vector<16x512xf32>
    %73 = vector.broadcast %69 : vector<16x1xf32> to vector<16x512xf32>
    %74 = arith.addf %73, %72 : vector<16x512xf32>
    %c17_i32 = arith.constant 17 : i32
    %75 = tpu.dynamic_rotate %60 by %c17_i32 dim 1 : vector<16x512xf32>, i32 -> vector<16x512xf32>
    %c0_i32 = arith.constant 0 : i32
    %76 = vector.broadcast %c0_i32 : i32 to vector<1x512xi32>
    %77 = arith.cmpi sgt, %63, %76 : vector<1x512xi32>
    %c0_i32_12 = arith.constant 0 : i32
    %78 = vector.broadcast %c0_i32_12 : i32 to vector<1x512xi32>
    %79 = arith.cmpi sgt, %67, %78 : vector<1x512xi32>
    %80 = arith.andi %77, %79 : vector<1x512xi1>
    %81 = arith.extui %80 : vector<1x512xi1> to vector<1x512xi32>
    %82 = arith.sitofp %81 : vector<1x512xi32> to vector<1x512xf32>
    %83 = vector.broadcast %82 : vector<1x512xf32> to vector<16x512xf32>
    %84 = arith.mulf %75, %83 : vector<16x512xf32>
    %85 = vector.extract_strided_slice %68 {offsets = [0, 0], sizes = [16, 1], strides = [1, 1]} : vector<16x9xf32> to vector<16x1xf32>
    %86 = vector.broadcast %85 : vector<16x1xf32> to vector<16x512xf32>
    %87 = arith.mulf %84, %86 : vector<16x512xf32>
    %88 = arith.addf %74, %87 : vector<16x512xf32>
    %c16_i32 = arith.constant 16 : i32
    %89 = tpu.dynamic_rotate %60 by %c16_i32 dim 1 : vector<16x512xf32>, i32 -> vector<16x512xf32>
    %c0_i32_13 = arith.constant 0 : i32
    %90 = vector.broadcast %c0_i32_13 : i32 to vector<1x512xi32>
    %91 = arith.cmpi sgt, %67, %90 : vector<1x512xi32>
    %92 = arith.extui %91 : vector<1x512xi1> to vector<1x512xi32>
    %93 = arith.sitofp %92 : vector<1x512xi32> to vector<1x512xf32>
    %94 = vector.broadcast %93 : vector<1x512xf32> to vector<16x512xf32>
    %95 = arith.mulf %89, %94 : vector<16x512xf32>
    %96 = vector.extract_strided_slice %68 {offsets = [0, 1], sizes = [16, 1], strides = [1, 1]} : vector<16x9xf32> to vector<16x1xf32>
    %97 = vector.broadcast %96 : vector<16x1xf32> to vector<16x512xf32>
    %98 = arith.mulf %95, %97 : vector<16x512xf32>
    %c15_i32_14 = arith.constant 15 : i32
    %99 = tpu.dynamic_rotate %60 by %c15_i32_14 dim 1 : vector<16x512xf32>, i32 -> vector<16x512xf32>
    %c15_i32_15 = arith.constant 15 : i32
    %100 = vector.broadcast %c15_i32_15 : i32 to vector<1x512xi32>
    %101 = arith.cmpi slt, %63, %100 : vector<1x512xi32>
    %c0_i32_16 = arith.constant 0 : i32
    %102 = vector.broadcast %c0_i32_16 : i32 to vector<1x512xi32>
    %103 = arith.cmpi sgt, %67, %102 : vector<1x512xi32>
    %104 = arith.andi %101, %103 : vector<1x512xi1>
    %105 = arith.extui %104 : vector<1x512xi1> to vector<1x512xi32>
    %106 = arith.sitofp %105 : vector<1x512xi32> to vector<1x512xf32>
    %107 = vector.broadcast %106 : vector<1x512xf32> to vector<16x512xf32>
    %108 = arith.mulf %99, %107 : vector<16x512xf32>
    %109 = vector.extract_strided_slice %68 {offsets = [0, 2], sizes = [16, 1], strides = [1, 1]} : vector<16x9xf32> to vector<16x1xf32>
    %110 = vector.broadcast %109 : vector<16x1xf32> to vector<16x512xf32>
    %111 = arith.mulf %108, %110 : vector<16x512xf32>
    %112 = arith.addf %88, %111 : vector<16x512xf32>
    %c1_i32 = arith.constant 1 : i32
    %113 = tpu.dynamic_rotate %60 by %c1_i32 dim 1 : vector<16x512xf32>, i32 -> vector<16x512xf32>
    %c0_i32_17 = arith.constant 0 : i32
    %114 = vector.broadcast %c0_i32_17 : i32 to vector<1x512xi32>
    %115 = arith.cmpi sgt, %63, %114 : vector<1x512xi32>
    %116 = arith.extui %115 : vector<1x512xi1> to vector<1x512xi32>
    %117 = arith.sitofp %116 : vector<1x512xi32> to vector<1x512xf32>
    %118 = vector.broadcast %117 : vector<1x512xf32> to vector<16x512xf32>
    %119 = arith.mulf %113, %118 : vector<16x512xf32>
    %120 = vector.extract_strided_slice %68 {offsets = [0, 3], sizes = [16, 1], strides = [1, 1]} : vector<16x9xf32> to vector<16x1xf32>
    %121 = vector.broadcast %120 : vector<16x1xf32> to vector<16x512xf32>
    %122 = arith.mulf %119, %121 : vector<16x512xf32>
    %123 = arith.addf %98, %122 : vector<16x512xf32>
    %c511_i32 = arith.constant 511 : i32
    %124 = tpu.dynamic_rotate %60 by %c511_i32 dim 1 : vector<16x512xf32>, i32 -> vector<16x512xf32>
    %c15_i32_18 = arith.constant 15 : i32
    %125 = vector.broadcast %c15_i32_18 : i32 to vector<1x512xi32>
    %126 = arith.cmpi slt, %63, %125 : vector<1x512xi32>
    %127 = arith.extui %126 : vector<1x512xi1> to vector<1x512xi32>
    %128 = arith.sitofp %127 : vector<1x512xi32> to vector<1x512xf32>
    %129 = vector.broadcast %128 : vector<1x512xf32> to vector<16x512xf32>
    %130 = arith.mulf %124, %129 : vector<16x512xf32>
    %131 = vector.extract_strided_slice %68 {offsets = [0, 5], sizes = [16, 1], strides = [1, 1]} : vector<16x9xf32> to vector<16x1xf32>
    %132 = vector.broadcast %131 : vector<16x1xf32> to vector<16x512xf32>
    %133 = arith.mulf %130, %132 : vector<16x512xf32>
    %134 = arith.addf %112, %133 : vector<16x512xf32>
    %c497_i32 = arith.constant 497 : i32
    %135 = tpu.dynamic_rotate %60 by %c497_i32 dim 1 : vector<16x512xf32>, i32 -> vector<16x512xf32>
    %c0_i32_19 = arith.constant 0 : i32
    %136 = vector.broadcast %c0_i32_19 : i32 to vector<1x512xi32>
    %137 = arith.cmpi sgt, %63, %136 : vector<1x512xi32>
    %c15_i32_20 = arith.constant 15 : i32
    %138 = vector.broadcast %c15_i32_20 : i32 to vector<1x512xi32>
    %139 = arith.cmpi slt, %67, %138 : vector<1x512xi32>
    %140 = arith.andi %137, %139 : vector<1x512xi1>
    %141 = arith.extui %140 : vector<1x512xi1> to vector<1x512xi32>
    %142 = arith.sitofp %141 : vector<1x512xi32> to vector<1x512xf32>
    %143 = vector.broadcast %142 : vector<1x512xf32> to vector<16x512xf32>
    %144 = arith.mulf %135, %143 : vector<16x512xf32>
    %145 = vector.extract_strided_slice %68 {offsets = [0, 6], sizes = [16, 1], strides = [1, 1]} : vector<16x9xf32> to vector<16x1xf32>
    %146 = vector.broadcast %145 : vector<16x1xf32> to vector<16x512xf32>
    %147 = arith.mulf %144, %146 : vector<16x512xf32>
    %148 = arith.addf %123, %147 : vector<16x512xf32>
    %c496_i32 = arith.constant 496 : i32
    %149 = tpu.dynamic_rotate %60 by %c496_i32 dim 1 : vector<16x512xf32>, i32 -> vector<16x512xf32>
    %c15_i32_21 = arith.constant 15 : i32
    %150 = vector.broadcast %c15_i32_21 : i32 to vector<1x512xi32>
    %151 = arith.cmpi slt, %67, %150 : vector<1x512xi32>
    %152 = arith.extui %151 : vector<1x512xi1> to vector<1x512xi32>
    %153 = arith.sitofp %152 : vector<1x512xi32> to vector<1x512xf32>
    %154 = vector.broadcast %153 : vector<1x512xf32> to vector<16x512xf32>
    %155 = arith.mulf %149, %154 : vector<16x512xf32>
    %156 = vector.extract_strided_slice %68 {offsets = [0, 7], sizes = [16, 1], strides = [1, 1]} : vector<16x9xf32> to vector<16x1xf32>
    %157 = vector.broadcast %156 : vector<16x1xf32> to vector<16x512xf32>
    %158 = arith.mulf %155, %157 : vector<16x512xf32>
    %159 = arith.addf %134, %158 : vector<16x512xf32>
    %c495_i32 = arith.constant 495 : i32
    %160 = tpu.dynamic_rotate %60 by %c495_i32 dim 1 : vector<16x512xf32>, i32 -> vector<16x512xf32>
    %c15_i32_22 = arith.constant 15 : i32
    %161 = vector.broadcast %c15_i32_22 : i32 to vector<1x512xi32>
    %162 = arith.cmpi slt, %63, %161 : vector<1x512xi32>
    %c15_i32_23 = arith.constant 15 : i32
    %163 = vector.broadcast %c15_i32_23 : i32 to vector<1x512xi32>
    %164 = arith.cmpi slt, %67, %163 : vector<1x512xi32>
    %165 = arith.andi %162, %164 : vector<1x512xi1>
    %166 = arith.extui %165 : vector<1x512xi1> to vector<1x512xi32>
    %167 = arith.sitofp %166 : vector<1x512xi32> to vector<1x512xf32>
    %168 = vector.broadcast %167 : vector<1x512xf32> to vector<16x512xf32>
    %169 = arith.mulf %160, %168 : vector<16x512xf32>
    %170 = vector.extract_strided_slice %68 {offsets = [0, 8], sizes = [16, 1], strides = [1, 1]} : vector<16x9xf32> to vector<16x1xf32>
    %171 = vector.broadcast %170 : vector<16x1xf32> to vector<16x512xf32>
    %172 = arith.mulf %169, %171 : vector<16x512xf32>
    %173 = arith.addf %148, %172 : vector<16x512xf32>
    %174 = arith.addf %159, %173 : vector<16x512xf32>
    %175 = vector.extract_strided_slice %0 {offsets = [0, 13], sizes = [16, 16], strides = [1, 1]} : vector<16x128xf32> to vector<16x16xf32>
    %176 = vector.extract_strided_slice %0 {offsets = [0, 61], sizes = [16, 1], strides = [1, 1]} : vector<16x128xf32> to vector<16x1xf32>
    %177 = vector.extract_strided_slice %175 {offsets = [0, 0], sizes = [16, 1], strides = [1, 1]} : vector<16x16xf32> to vector<16x1xf32>
    %178 = vector.extract_strided_slice %174 {offsets = [0, 0], sizes = [1, 512], strides = [1, 1]} : vector<16x512xf32> to vector<1x512xf32>
    %179 = vector.broadcast %177 : vector<16x1xf32> to vector<16x512xf32>
    %180 = vector.broadcast %178 : vector<1x512xf32> to vector<16x512xf32>
    %181 = arith.mulf %179, %180 : vector<16x512xf32>
    %182 = vector.extract_strided_slice %175 {offsets = [0, 2], sizes = [16, 1], strides = [1, 1]} : vector<16x16xf32> to vector<16x1xf32>
    %183 = vector.extract_strided_slice %174 {offsets = [2, 0], sizes = [1, 512], strides = [1, 1]} : vector<16x512xf32> to vector<1x512xf32>
    %184 = vector.broadcast %182 : vector<16x1xf32> to vector<16x512xf32>
    %185 = vector.broadcast %183 : vector<1x512xf32> to vector<16x512xf32>
    %186 = arith.mulf %184, %185 : vector<16x512xf32>
    %187 = arith.addf %181, %186 : vector<16x512xf32>
    %188 = vector.extract_strided_slice %175 {offsets = [0, 4], sizes = [16, 1], strides = [1, 1]} : vector<16x16xf32> to vector<16x1xf32>
    %189 = vector.extract_strided_slice %174 {offsets = [4, 0], sizes = [1, 512], strides = [1, 1]} : vector<16x512xf32> to vector<1x512xf32>
    %190 = vector.broadcast %188 : vector<16x1xf32> to vector<16x512xf32>
    %191 = vector.broadcast %189 : vector<1x512xf32> to vector<16x512xf32>
    %192 = arith.mulf %190, %191 : vector<16x512xf32>
    %193 = arith.addf %187, %192 : vector<16x512xf32>
    %194 = vector.extract_strided_slice %175 {offsets = [0, 6], sizes = [16, 1], strides = [1, 1]} : vector<16x16xf32> to vector<16x1xf32>
    %195 = vector.extract_strided_slice %174 {offsets = [6, 0], sizes = [1, 512], strides = [1, 1]} : vector<16x512xf32> to vector<1x512xf32>
    %196 = vector.broadcast %194 : vector<16x1xf32> to vector<16x512xf32>
    %197 = vector.broadcast %195 : vector<1x512xf32> to vector<16x512xf32>
    %198 = arith.mulf %196, %197 : vector<16x512xf32>
    %199 = arith.addf %193, %198 : vector<16x512xf32>
    %200 = vector.extract_strided_slice %175 {offsets = [0, 8], sizes = [16, 1], strides = [1, 1]} : vector<16x16xf32> to vector<16x1xf32>
    %201 = vector.extract_strided_slice %174 {offsets = [8, 0], sizes = [1, 512], strides = [1, 1]} : vector<16x512xf32> to vector<1x512xf32>
    %202 = vector.broadcast %200 : vector<16x1xf32> to vector<16x512xf32>
    %203 = vector.broadcast %201 : vector<1x512xf32> to vector<16x512xf32>
    %204 = arith.mulf %202, %203 : vector<16x512xf32>
    %205 = arith.addf %199, %204 : vector<16x512xf32>
    %206 = vector.extract_strided_slice %175 {offsets = [0, 10], sizes = [16, 1], strides = [1, 1]} : vector<16x16xf32> to vector<16x1xf32>
    %207 = vector.extract_strided_slice %174 {offsets = [10, 0], sizes = [1, 512], strides = [1, 1]} : vector<16x512xf32> to vector<1x512xf32>
    %208 = vector.broadcast %206 : vector<16x1xf32> to vector<16x512xf32>
    %209 = vector.broadcast %207 : vector<1x512xf32> to vector<16x512xf32>
    %210 = arith.mulf %208, %209 : vector<16x512xf32>
    %211 = arith.addf %205, %210 : vector<16x512xf32>
    %212 = vector.extract_strided_slice %175 {offsets = [0, 12], sizes = [16, 1], strides = [1, 1]} : vector<16x16xf32> to vector<16x1xf32>
    %213 = vector.extract_strided_slice %174 {offsets = [12, 0], sizes = [1, 512], strides = [1, 1]} : vector<16x512xf32> to vector<1x512xf32>
    %214 = vector.broadcast %212 : vector<16x1xf32> to vector<16x512xf32>
    %215 = vector.broadcast %213 : vector<1x512xf32> to vector<16x512xf32>
    %216 = arith.mulf %214, %215 : vector<16x512xf32>
    %217 = arith.addf %211, %216 : vector<16x512xf32>
    %218 = vector.extract_strided_slice %175 {offsets = [0, 14], sizes = [16, 1], strides = [1, 1]} : vector<16x16xf32> to vector<16x1xf32>
    %219 = vector.extract_strided_slice %174 {offsets = [14, 0], sizes = [1, 512], strides = [1, 1]} : vector<16x512xf32> to vector<1x512xf32>
    %220 = vector.broadcast %218 : vector<16x1xf32> to vector<16x512xf32>
    %221 = vector.broadcast %219 : vector<1x512xf32> to vector<16x512xf32>
    %222 = arith.mulf %220, %221 : vector<16x512xf32>
    %223 = arith.addf %217, %222 : vector<16x512xf32>
    %224 = vector.extract_strided_slice %175 {offsets = [0, 1], sizes = [16, 1], strides = [1, 1]} : vector<16x16xf32> to vector<16x1xf32>
    %225 = vector.extract_strided_slice %174 {offsets = [1, 0], sizes = [1, 512], strides = [1, 1]} : vector<16x512xf32> to vector<1x512xf32>
    %226 = vector.broadcast %224 : vector<16x1xf32> to vector<16x512xf32>
    %227 = vector.broadcast %225 : vector<1x512xf32> to vector<16x512xf32>
    %228 = arith.mulf %226, %227 : vector<16x512xf32>
    %229 = vector.extract_strided_slice %175 {offsets = [0, 3], sizes = [16, 1], strides = [1, 1]} : vector<16x16xf32> to vector<16x1xf32>
    %230 = vector.extract_strided_slice %174 {offsets = [3, 0], sizes = [1, 512], strides = [1, 1]} : vector<16x512xf32> to vector<1x512xf32>
    %231 = vector.broadcast %229 : vector<16x1xf32> to vector<16x512xf32>
    %232 = vector.broadcast %230 : vector<1x512xf32> to vector<16x512xf32>
    %233 = arith.mulf %231, %232 : vector<16x512xf32>
    %234 = arith.addf %228, %233 : vector<16x512xf32>
    %235 = vector.extract_strided_slice %175 {offsets = [0, 5], sizes = [16, 1], strides = [1, 1]} : vector<16x16xf32> to vector<16x1xf32>
    %236 = vector.extract_strided_slice %174 {offsets = [5, 0], sizes = [1, 512], strides = [1, 1]} : vector<16x512xf32> to vector<1x512xf32>
    %237 = vector.broadcast %235 : vector<16x1xf32> to vector<16x512xf32>
    %238 = vector.broadcast %236 : vector<1x512xf32> to vector<16x512xf32>
    %239 = arith.mulf %237, %238 : vector<16x512xf32>
    %240 = arith.addf %234, %239 : vector<16x512xf32>
    %241 = vector.extract_strided_slice %175 {offsets = [0, 7], sizes = [16, 1], strides = [1, 1]} : vector<16x16xf32> to vector<16x1xf32>
    %242 = vector.extract_strided_slice %174 {offsets = [7, 0], sizes = [1, 512], strides = [1, 1]} : vector<16x512xf32> to vector<1x512xf32>
    %243 = vector.broadcast %241 : vector<16x1xf32> to vector<16x512xf32>
    %244 = vector.broadcast %242 : vector<1x512xf32> to vector<16x512xf32>
    %245 = arith.mulf %243, %244 : vector<16x512xf32>
    %246 = arith.addf %240, %245 : vector<16x512xf32>
    %247 = vector.extract_strided_slice %175 {offsets = [0, 9], sizes = [16, 1], strides = [1, 1]} : vector<16x16xf32> to vector<16x1xf32>
    %248 = vector.extract_strided_slice %174 {offsets = [9, 0], sizes = [1, 512], strides = [1, 1]} : vector<16x512xf32> to vector<1x512xf32>
    %249 = vector.broadcast %247 : vector<16x1xf32> to vector<16x512xf32>
    %250 = vector.broadcast %248 : vector<1x512xf32> to vector<16x512xf32>
    %251 = arith.mulf %249, %250 : vector<16x512xf32>
    %252 = arith.addf %246, %251 : vector<16x512xf32>
    %253 = vector.extract_strided_slice %175 {offsets = [0, 11], sizes = [16, 1], strides = [1, 1]} : vector<16x16xf32> to vector<16x1xf32>
    %254 = vector.extract_strided_slice %174 {offsets = [11, 0], sizes = [1, 512], strides = [1, 1]} : vector<16x512xf32> to vector<1x512xf32>
    %255 = vector.broadcast %253 : vector<16x1xf32> to vector<16x512xf32>
    %256 = vector.broadcast %254 : vector<1x512xf32> to vector<16x512xf32>
    %257 = arith.mulf %255, %256 : vector<16x512xf32>
    %258 = arith.addf %252, %257 : vector<16x512xf32>
    %259 = vector.extract_strided_slice %175 {offsets = [0, 13], sizes = [16, 1], strides = [1, 1]} : vector<16x16xf32> to vector<16x1xf32>
    %260 = vector.extract_strided_slice %174 {offsets = [13, 0], sizes = [1, 512], strides = [1, 1]} : vector<16x512xf32> to vector<1x512xf32>
    %261 = vector.broadcast %259 : vector<16x1xf32> to vector<16x512xf32>
    %262 = vector.broadcast %260 : vector<1x512xf32> to vector<16x512xf32>
    %263 = arith.mulf %261, %262 : vector<16x512xf32>
    %264 = arith.addf %258, %263 : vector<16x512xf32>
    %265 = vector.extract_strided_slice %175 {offsets = [0, 15], sizes = [16, 1], strides = [1, 1]} : vector<16x16xf32> to vector<16x1xf32>
    %266 = vector.extract_strided_slice %174 {offsets = [15, 0], sizes = [1, 512], strides = [1, 1]} : vector<16x512xf32> to vector<1x512xf32>
    %267 = vector.broadcast %265 : vector<16x1xf32> to vector<16x512xf32>
    %268 = vector.broadcast %266 : vector<1x512xf32> to vector<16x512xf32>
    %269 = arith.mulf %267, %268 : vector<16x512xf32>
    %270 = arith.addf %264, %269 : vector<16x512xf32>
    %271 = arith.addf %223, %270 : vector<16x512xf32>
    %272 = vector.broadcast %176 : vector<16x1xf32> to vector<16x512xf32>
    %273 = arith.addf %271, %272 : vector<16x512xf32>
    %274 = vector.extract_strided_slice %0 {offsets = [0, 62], sizes = [16, 1], strides = [1, 1]} : vector<16x128xf32> to vector<16x1xf32>
    %275 = vector.extract_strided_slice %0 {offsets = [0, 63], sizes = [16, 1], strides = [1, 1]} : vector<16x128xf32> to vector<16x1xf32>
    %cst_24 = arith.constant dense<0.000000e+00> : vector<16xf32>
    %276 = vector.multi_reduction <add>, %273, %cst_24 [1] : vector<16x512xf32> to vector<16xf32>
    %277 = vector.shape_cast %276 : vector<16xf32> to vector<16x1xf32>
    %cst_25 = arith.constant 5.120000e+02 : f32
    %278 = vector.broadcast %cst_25 : f32 to vector<16x1xf32>
    %279 = arith.divf %277, %278 : vector<16x1xf32>
    %280 = arith.mulf %273, %273 : vector<16x512xf32>
    %cst_26 = arith.constant dense<0.000000e+00> : vector<16xf32>
    %281 = vector.multi_reduction <add>, %280, %cst_26 [1] : vector<16x512xf32> to vector<16xf32>
    %282 = vector.shape_cast %281 : vector<16xf32> to vector<16x1xf32>
    %cst_27 = arith.constant 5.120000e+02 : f32
    %283 = vector.broadcast %cst_27 : f32 to vector<16x1xf32>
    %284 = arith.divf %282, %283 : vector<16x1xf32>
    %285 = arith.mulf %279, %279 : vector<16x1xf32>
    %286 = arith.subf %284, %285 : vector<16x1xf32>
    %cst_28 = arith.constant 0.000000e+00 : f32
    %287 = vector.broadcast %cst_28 : f32 to vector<16x1xf32>
    %288 = arith.maximumf %286, %287 : vector<16x1xf32>
    %cst_29 = arith.constant 9.99999974E-6 : f32
    %289 = vector.broadcast %cst_29 : f32 to vector<16x1xf32>
    %290 = arith.addf %288, %289 : vector<16x1xf32>
    %291 = math.rsqrt %290 : vector<16x1xf32>
    %292 = arith.mulf %274, %291 : vector<16x1xf32>
    %293 = arith.mulf %279, %292 : vector<16x1xf32>
    %294 = arith.subf %275, %293 : vector<16x1xf32>
    %295 = vector.broadcast %292 : vector<16x1xf32> to vector<16x512xf32>
    %296 = arith.mulf %273, %295 : vector<16x512xf32>
    %297 = vector.broadcast %294 : vector<16x1xf32> to vector<16x512xf32>
    %298 = arith.addf %296, %297 : vector<16x512xf32>
    %cst_30 = arith.constant 3.000000e+00 : f32
    %299 = vector.broadcast %cst_30 : f32 to vector<16x512xf32>
    %300 = arith.addf %298, %299 : vector<16x512xf32>
    %cst_31 = arith.constant 0.000000e+00 : f32
    %cst_32 = arith.constant 6.000000e+00 : f32
    %301 = vector.broadcast %cst_31 : f32 to vector<16x512xf32>
    %302 = arith.maximumf %301, %300 : vector<16x512xf32>
    %303 = vector.broadcast %cst_32 : f32 to vector<16x512xf32>
    %304 = arith.minimumf %303, %302 : vector<16x512xf32>
    %305 = arith.mulf %298, %304 : vector<16x512xf32>
    %306 = vector.extract_strided_slice %0 {offsets = [0, 45], sizes = [16, 4], strides = [1, 1]} : vector<16x128xf32> to vector<16x4xf32>
    %307 = vector.extract_strided_slice %0 {offsets = [0, 49], sizes = [16, 4], strides = [1, 1]} : vector<16x128xf32> to vector<16x4xf32>
    %308 = vector.extract_strided_slice %0 {offsets = [0, 53], sizes = [1, 4], strides = [1, 1]} : vector<16x128xf32> to vector<1x4xf32>
    %309 = vector.extract_strided_slice %0 {offsets = [0, 64], sizes = [16, 1], strides = [1, 1]} : vector<16x128xf32> to vector<16x1xf32>
    %310 = tpu.iota {dimensions = array<i32: 1>} : vector<1x512xi32>
    %c8_i32 = arith.constant 8 : i32
    %311 = vector.broadcast %c8_i32 : i32 to vector<1x512xi32>
    %312 = arith.shrsi %310, %311 : vector<1x512xi32>
    %313 = vector.extract_strided_slice %305 {offsets = [0, 0], sizes = [16, 256], strides = [1, 1]} : vector<16x512xf32> to vector<16x256xf32>
    %cst_33 = arith.constant dense<0.000000e+00> : vector<16xf32>
    %314 = vector.multi_reduction <add>, %313, %cst_33 [1] : vector<16x256xf32> to vector<16xf32>
    %315 = vector.shape_cast %314 : vector<16xf32> to vector<16x1xf32>
    %cst_34 = arith.constant 3.906250e-03 : f32
    %316 = vector.broadcast %cst_34 : f32 to vector<16x1xf32>
    %317 = arith.mulf %315, %316 : vector<16x1xf32>
    %318 = vector.broadcast %317 : vector<16x1xf32> to vector<16x4xf32>
    %319 = arith.mulf %306, %318 : vector<16x4xf32>
    %cst_35 = arith.constant dense<0.000000e+00> : vector<4xf32>
    %320 = vector.multi_reduction <add>, %319, %cst_35 [0] : vector<16x4xf32> to vector<4xf32>
    %321 = vector.shape_cast %320 : vector<4xf32> to vector<1x4xf32>
    %322 = arith.addf %321, %308 : vector<1x4xf32>
    %cst_36 = arith.constant 0.000000e+00 : f32
    %323 = vector.broadcast %cst_36 : f32 to vector<1x4xf32>
    %324 = arith.maximumf %322, %323 : vector<1x4xf32>
    %325 = vector.broadcast %324 : vector<1x4xf32> to vector<16x4xf32>
    %326 = arith.mulf %307, %325 : vector<16x4xf32>
    %cst_37 = arith.constant dense<0.000000e+00> : vector<16xf32>
    %327 = vector.multi_reduction <add>, %326, %cst_37 [1] : vector<16x4xf32> to vector<16xf32>
    %328 = vector.shape_cast %327 : vector<16xf32> to vector<16x1xf32>
    %329 = arith.addf %328, %309 : vector<16x1xf32>
    %330 = arith.negf %329 : vector<16x1xf32>
    %331 = math.exp %330 : vector<16x1xf32>
    %cst_38 = arith.constant 1.000000e+00 : f32
    %332 = vector.broadcast %cst_38 : f32 to vector<16x1xf32>
    %333 = arith.addf %332, %331 : vector<16x1xf32>
    %334 = arith.divf %332, %333 : vector<16x1xf32>
    %c0_i32_39 = arith.constant 0 : i32
    %335 = vector.broadcast %c0_i32_39 : i32 to vector<1x512xi32>
    %336 = arith.cmpi eq, %312, %335 : vector<1x512xi32>
    %337 = arith.extui %336 : vector<1x512xi1> to vector<1x512xi32>
    %338 = arith.sitofp %337 : vector<1x512xi32> to vector<1x512xf32>
    %339 = vector.broadcast %334 : vector<16x1xf32> to vector<16x512xf32>
    %340 = vector.broadcast %338 : vector<1x512xf32> to vector<16x512xf32>
    %341 = arith.mulf %339, %340 : vector<16x512xf32>
    %342 = vector.extract_strided_slice %305 {offsets = [0, 256], sizes = [16, 256], strides = [1, 1]} : vector<16x512xf32> to vector<16x256xf32>
    %cst_40 = arith.constant dense<0.000000e+00> : vector<16xf32>
    %343 = vector.multi_reduction <add>, %342, %cst_40 [1] : vector<16x256xf32> to vector<16xf32>
    %344 = vector.shape_cast %343 : vector<16xf32> to vector<16x1xf32>
    %cst_41 = arith.constant 3.906250e-03 : f32
    %345 = vector.broadcast %cst_41 : f32 to vector<16x1xf32>
    %346 = arith.mulf %344, %345 : vector<16x1xf32>
    %347 = vector.broadcast %346 : vector<16x1xf32> to vector<16x4xf32>
    %348 = arith.mulf %306, %347 : vector<16x4xf32>
    %cst_42 = arith.constant dense<0.000000e+00> : vector<4xf32>
    %349 = vector.multi_reduction <add>, %348, %cst_42 [0] : vector<16x4xf32> to vector<4xf32>
    %350 = vector.shape_cast %349 : vector<4xf32> to vector<1x4xf32>
    %351 = arith.addf %350, %308 : vector<1x4xf32>
    %cst_43 = arith.constant 0.000000e+00 : f32
    %352 = vector.broadcast %cst_43 : f32 to vector<1x4xf32>
    %353 = arith.maximumf %351, %352 : vector<1x4xf32>
    %354 = vector.broadcast %353 : vector<1x4xf32> to vector<16x4xf32>
    %355 = arith.mulf %307, %354 : vector<16x4xf32>
    %cst_44 = arith.constant dense<0.000000e+00> : vector<16xf32>
    %356 = vector.multi_reduction <add>, %355, %cst_44 [1] : vector<16x4xf32> to vector<16xf32>
    %357 = vector.shape_cast %356 : vector<16xf32> to vector<16x1xf32>
    %358 = arith.addf %357, %309 : vector<16x1xf32>
    %359 = arith.negf %358 : vector<16x1xf32>
    %360 = math.exp %359 : vector<16x1xf32>
    %cst_45 = arith.constant 1.000000e+00 : f32
    %361 = vector.broadcast %cst_45 : f32 to vector<16x1xf32>
    %362 = arith.addf %361, %360 : vector<16x1xf32>
    %363 = arith.divf %361, %362 : vector<16x1xf32>
    %c1_i32_46 = arith.constant 1 : i32
    %364 = vector.broadcast %c1_i32_46 : i32 to vector<1x512xi32>
    %365 = arith.cmpi eq, %312, %364 : vector<1x512xi32>
    %366 = arith.extui %365 : vector<1x512xi1> to vector<1x512xi32>
    %367 = arith.sitofp %366 : vector<1x512xi32> to vector<1x512xf32>
    %368 = vector.broadcast %363 : vector<16x1xf32> to vector<16x512xf32>
    %369 = vector.broadcast %367 : vector<1x512xf32> to vector<16x512xf32>
    %370 = arith.mulf %368, %369 : vector<16x512xf32>
    %371 = arith.addf %341, %370 : vector<16x512xf32>
    %372 = arith.mulf %305, %371 : vector<16x512xf32>
    %373 = vector.extract_strided_slice %0 {offsets = [0, 29], sizes = [4, 16], strides = [1, 1]} : vector<16x128xf32> to vector<4x16xf32>
    %374 = vector.extract_strided_slice %0 {offsets = [0, 65], sizes = [4, 1], strides = [1, 1]} : vector<16x128xf32> to vector<4x1xf32>
    %375 = vector.extract_strided_slice %373 {offsets = [0, 0], sizes = [4, 1], strides = [1, 1]} : vector<4x16xf32> to vector<4x1xf32>
    %376 = vector.extract_strided_slice %372 {offsets = [0, 0], sizes = [1, 512], strides = [1, 1]} : vector<16x512xf32> to vector<1x512xf32>
    %377 = vector.broadcast %375 : vector<4x1xf32> to vector<4x512xf32>
    %378 = vector.broadcast %376 : vector<1x512xf32> to vector<4x512xf32>
    %379 = arith.mulf %377, %378 : vector<4x512xf32>
    %380 = vector.extract_strided_slice %373 {offsets = [0, 4], sizes = [4, 1], strides = [1, 1]} : vector<4x16xf32> to vector<4x1xf32>
    %381 = vector.extract_strided_slice %372 {offsets = [4, 0], sizes = [1, 512], strides = [1, 1]} : vector<16x512xf32> to vector<1x512xf32>
    %382 = vector.broadcast %380 : vector<4x1xf32> to vector<4x512xf32>
    %383 = vector.broadcast %381 : vector<1x512xf32> to vector<4x512xf32>
    %384 = arith.mulf %382, %383 : vector<4x512xf32>
    %385 = arith.addf %379, %384 : vector<4x512xf32>
    %386 = vector.extract_strided_slice %373 {offsets = [0, 8], sizes = [4, 1], strides = [1, 1]} : vector<4x16xf32> to vector<4x1xf32>
    %387 = vector.extract_strided_slice %372 {offsets = [8, 0], sizes = [1, 512], strides = [1, 1]} : vector<16x512xf32> to vector<1x512xf32>
    %388 = vector.broadcast %386 : vector<4x1xf32> to vector<4x512xf32>
    %389 = vector.broadcast %387 : vector<1x512xf32> to vector<4x512xf32>
    %390 = arith.mulf %388, %389 : vector<4x512xf32>
    %391 = arith.addf %385, %390 : vector<4x512xf32>
    %392 = vector.extract_strided_slice %373 {offsets = [0, 12], sizes = [4, 1], strides = [1, 1]} : vector<4x16xf32> to vector<4x1xf32>
    %393 = vector.extract_strided_slice %372 {offsets = [12, 0], sizes = [1, 512], strides = [1, 1]} : vector<16x512xf32> to vector<1x512xf32>
    %394 = vector.broadcast %392 : vector<4x1xf32> to vector<4x512xf32>
    %395 = vector.broadcast %393 : vector<1x512xf32> to vector<4x512xf32>
    %396 = arith.mulf %394, %395 : vector<4x512xf32>
    %397 = arith.addf %391, %396 : vector<4x512xf32>
    %398 = vector.extract_strided_slice %373 {offsets = [0, 1], sizes = [4, 1], strides = [1, 1]} : vector<4x16xf32> to vector<4x1xf32>
    %399 = vector.extract_strided_slice %372 {offsets = [1, 0], sizes = [1, 512], strides = [1, 1]} : vector<16x512xf32> to vector<1x512xf32>
    %400 = vector.broadcast %398 : vector<4x1xf32> to vector<4x512xf32>
    %401 = vector.broadcast %399 : vector<1x512xf32> to vector<4x512xf32>
    %402 = arith.mulf %400, %401 : vector<4x512xf32>
    %403 = vector.extract_strided_slice %373 {offsets = [0, 5], sizes = [4, 1], strides = [1, 1]} : vector<4x16xf32> to vector<4x1xf32>
    %404 = vector.extract_strided_slice %372 {offsets = [5, 0], sizes = [1, 512], strides = [1, 1]} : vector<16x512xf32> to vector<1x512xf32>
    %405 = vector.broadcast %403 : vector<4x1xf32> to vector<4x512xf32>
    %406 = vector.broadcast %404 : vector<1x512xf32> to vector<4x512xf32>
    %407 = arith.mulf %405, %406 : vector<4x512xf32>
    %408 = arith.addf %402, %407 : vector<4x512xf32>
    %409 = vector.extract_strided_slice %373 {offsets = [0, 9], sizes = [4, 1], strides = [1, 1]} : vector<4x16xf32> to vector<4x1xf32>
    %410 = vector.extract_strided_slice %372 {offsets = [9, 0], sizes = [1, 512], strides = [1, 1]} : vector<16x512xf32> to vector<1x512xf32>
    %411 = vector.broadcast %409 : vector<4x1xf32> to vector<4x512xf32>
    %412 = vector.broadcast %410 : vector<1x512xf32> to vector<4x512xf32>
    %413 = arith.mulf %411, %412 : vector<4x512xf32>
    %414 = arith.addf %408, %413 : vector<4x512xf32>
    %415 = vector.extract_strided_slice %373 {offsets = [0, 13], sizes = [4, 1], strides = [1, 1]} : vector<4x16xf32> to vector<4x1xf32>
    %416 = vector.extract_strided_slice %372 {offsets = [13, 0], sizes = [1, 512], strides = [1, 1]} : vector<16x512xf32> to vector<1x512xf32>
    %417 = vector.broadcast %415 : vector<4x1xf32> to vector<4x512xf32>
    %418 = vector.broadcast %416 : vector<1x512xf32> to vector<4x512xf32>
    %419 = arith.mulf %417, %418 : vector<4x512xf32>
    %420 = arith.addf %414, %419 : vector<4x512xf32>
    %421 = vector.extract_strided_slice %373 {offsets = [0, 2], sizes = [4, 1], strides = [1, 1]} : vector<4x16xf32> to vector<4x1xf32>
    %422 = vector.extract_strided_slice %372 {offsets = [2, 0], sizes = [1, 512], strides = [1, 1]} : vector<16x512xf32> to vector<1x512xf32>
    %423 = vector.broadcast %421 : vector<4x1xf32> to vector<4x512xf32>
    %424 = vector.broadcast %422 : vector<1x512xf32> to vector<4x512xf32>
    %425 = arith.mulf %423, %424 : vector<4x512xf32>
    %426 = vector.extract_strided_slice %373 {offsets = [0, 6], sizes = [4, 1], strides = [1, 1]} : vector<4x16xf32> to vector<4x1xf32>
    %427 = vector.extract_strided_slice %372 {offsets = [6, 0], sizes = [1, 512], strides = [1, 1]} : vector<16x512xf32> to vector<1x512xf32>
    %428 = vector.broadcast %426 : vector<4x1xf32> to vector<4x512xf32>
    %429 = vector.broadcast %427 : vector<1x512xf32> to vector<4x512xf32>
    %430 = arith.mulf %428, %429 : vector<4x512xf32>
    %431 = arith.addf %425, %430 : vector<4x512xf32>
    %432 = vector.extract_strided_slice %373 {offsets = [0, 10], sizes = [4, 1], strides = [1, 1]} : vector<4x16xf32> to vector<4x1xf32>
    %433 = vector.extract_strided_slice %372 {offsets = [10, 0], sizes = [1, 512], strides = [1, 1]} : vector<16x512xf32> to vector<1x512xf32>
    %434 = vector.broadcast %432 : vector<4x1xf32> to vector<4x512xf32>
    %435 = vector.broadcast %433 : vector<1x512xf32> to vector<4x512xf32>
    %436 = arith.mulf %434, %435 : vector<4x512xf32>
    %437 = arith.addf %431, %436 : vector<4x512xf32>
    %438 = vector.extract_strided_slice %373 {offsets = [0, 14], sizes = [4, 1], strides = [1, 1]} : vector<4x16xf32> to vector<4x1xf32>
    %439 = vector.extract_strided_slice %372 {offsets = [14, 0], sizes = [1, 512], strides = [1, 1]} : vector<16x512xf32> to vector<1x512xf32>
    %440 = vector.broadcast %438 : vector<4x1xf32> to vector<4x512xf32>
    %441 = vector.broadcast %439 : vector<1x512xf32> to vector<4x512xf32>
    %442 = arith.mulf %440, %441 : vector<4x512xf32>
    %443 = arith.addf %437, %442 : vector<4x512xf32>
    %444 = vector.extract_strided_slice %373 {offsets = [0, 3], sizes = [4, 1], strides = [1, 1]} : vector<4x16xf32> to vector<4x1xf32>
    %445 = vector.extract_strided_slice %372 {offsets = [3, 0], sizes = [1, 512], strides = [1, 1]} : vector<16x512xf32> to vector<1x512xf32>
    %446 = vector.broadcast %444 : vector<4x1xf32> to vector<4x512xf32>
    %447 = vector.broadcast %445 : vector<1x512xf32> to vector<4x512xf32>
    %448 = arith.mulf %446, %447 : vector<4x512xf32>
    %449 = vector.extract_strided_slice %373 {offsets = [0, 7], sizes = [4, 1], strides = [1, 1]} : vector<4x16xf32> to vector<4x1xf32>
    %450 = vector.extract_strided_slice %372 {offsets = [7, 0], sizes = [1, 512], strides = [1, 1]} : vector<16x512xf32> to vector<1x512xf32>
    %451 = vector.broadcast %449 : vector<4x1xf32> to vector<4x512xf32>
    %452 = vector.broadcast %450 : vector<1x512xf32> to vector<4x512xf32>
    %453 = arith.mulf %451, %452 : vector<4x512xf32>
    %454 = arith.addf %448, %453 : vector<4x512xf32>
    %455 = vector.extract_strided_slice %373 {offsets = [0, 11], sizes = [4, 1], strides = [1, 1]} : vector<4x16xf32> to vector<4x1xf32>
    %456 = vector.extract_strided_slice %372 {offsets = [11, 0], sizes = [1, 512], strides = [1, 1]} : vector<16x512xf32> to vector<1x512xf32>
    %457 = vector.broadcast %455 : vector<4x1xf32> to vector<4x512xf32>
    %458 = vector.broadcast %456 : vector<1x512xf32> to vector<4x512xf32>
    %459 = arith.mulf %457, %458 : vector<4x512xf32>
    %460 = arith.addf %454, %459 : vector<4x512xf32>
    %461 = vector.extract_strided_slice %373 {offsets = [0, 15], sizes = [4, 1], strides = [1, 1]} : vector<4x16xf32> to vector<4x1xf32>
    %462 = vector.extract_strided_slice %372 {offsets = [15, 0], sizes = [1, 512], strides = [1, 1]} : vector<16x512xf32> to vector<1x512xf32>
    %463 = vector.broadcast %461 : vector<4x1xf32> to vector<4x512xf32>
    %464 = vector.broadcast %462 : vector<1x512xf32> to vector<4x512xf32>
    %465 = arith.mulf %463, %464 : vector<4x512xf32>
    %466 = arith.addf %460, %465 : vector<4x512xf32>
    %467 = arith.addf %397, %420 : vector<4x512xf32>
    %468 = arith.addf %443, %466 : vector<4x512xf32>
    %469 = arith.addf %467, %468 : vector<4x512xf32>
    %470 = vector.broadcast %374 : vector<4x1xf32> to vector<4x512xf32>
    %471 = arith.addf %469, %470 : vector<4x512xf32>
    %472 = vector.extract_strided_slice %0 {offsets = [0, 66], sizes = [4, 1], strides = [1, 1]} : vector<16x128xf32> to vector<4x1xf32>
    %473 = vector.extract_strided_slice %0 {offsets = [0, 67], sizes = [4, 1], strides = [1, 1]} : vector<16x128xf32> to vector<4x1xf32>
    %cst_47 = arith.constant dense<0.000000e+00> : vector<4xf32>
    %474 = vector.multi_reduction <add>, %471, %cst_47 [1] : vector<4x512xf32> to vector<4xf32>
    %475 = vector.shape_cast %474 : vector<4xf32> to vector<4x1xf32>
    %cst_48 = arith.constant 5.120000e+02 : f32
    %476 = vector.broadcast %cst_48 : f32 to vector<4x1xf32>
    %477 = arith.divf %475, %476 : vector<4x1xf32>
    %478 = arith.mulf %471, %471 : vector<4x512xf32>
    %cst_49 = arith.constant dense<0.000000e+00> : vector<4xf32>
    %479 = vector.multi_reduction <add>, %478, %cst_49 [1] : vector<4x512xf32> to vector<4xf32>
    %480 = vector.shape_cast %479 : vector<4xf32> to vector<4x1xf32>
    %cst_50 = arith.constant 5.120000e+02 : f32
    %481 = vector.broadcast %cst_50 : f32 to vector<4x1xf32>
    %482 = arith.divf %480, %481 : vector<4x1xf32>
    %483 = arith.mulf %477, %477 : vector<4x1xf32>
    %484 = arith.subf %482, %483 : vector<4x1xf32>
    %cst_51 = arith.constant 0.000000e+00 : f32
    %485 = vector.broadcast %cst_51 : f32 to vector<4x1xf32>
    %486 = arith.maximumf %484, %485 : vector<4x1xf32>
    %cst_52 = arith.constant 9.99999974E-6 : f32
    %487 = vector.broadcast %cst_52 : f32 to vector<4x1xf32>
    %488 = arith.addf %486, %487 : vector<4x1xf32>
    %489 = math.rsqrt %488 : vector<4x1xf32>
    %490 = arith.mulf %472, %489 : vector<4x1xf32>
    %491 = arith.mulf %477, %490 : vector<4x1xf32>
    %492 = arith.subf %473, %491 : vector<4x1xf32>
    %493 = vector.broadcast %490 : vector<4x1xf32> to vector<4x512xf32>
    %494 = arith.mulf %471, %493 : vector<4x512xf32>
    %495 = vector.broadcast %492 : vector<4x1xf32> to vector<4x512xf32>
    %496 = arith.addf %494, %495 : vector<4x512xf32>
    %497 = arith.addf %1, %496 : vector<4x512xf32>
    %c0_53 = arith.constant 0 : index
    %c0_54 = arith.constant 0 : index
    %498 = vector.load %arg3[%c0_53, %c0_54] : memref<4x512xf32, #tpu.memory_space<vmem>>, vector<4x512xf32>
    tpu.vector_store %arg3[%c0_53, %c0_54], %497 {strides = array<i32>} : memref<4x512xf32, #tpu.memory_space<vmem>>, vector<4x512xf32>,
    return
  }
  func.func @transform_0(%arg0: i32) -> (i32, i32) {
    %c0_i32 = arith.constant 0 : i32
    %c0_i32_0 = arith.constant 0 : i32
    %c0_i32_1 = arith.constant 0 : i32
    return %c0_i32, %c0_i32_0 : i32, i32
  }
  func.func @transform_1(%arg0: i32) -> (i32, i32) {
    %c0_i32 = arith.constant 0 : i32
    %c0_i32_0 = arith.constant 0 : i32
    %c0_i32_1 = arith.constant 0 : i32
    return %c0_i32, %c0_i32_0 : i32, i32
  }
  func.func @transform_2(%arg0: i32) -> (i32, i32) {
    %c0_i32 = arith.constant 0 : i32
    %c0_i32_0 = arith.constant 0 : i32
    %c0_i32_1 = arith.constant 0 : i32
    return %c0_i32, %c0_i32_0 : i32, i32
  }
}

</mosaic_0001>

<bundles_post_ra>
// kernel: tpu_custom_call.1
= control target key start
LH: loop header
LB: loop body
LE: loop exit
PB: predicated region body
PF: predicated region fallthrough
CT: control target
= control target key end

     0   :  { %7 = vsyncpa [#allocation3], 0  ;;  %s5017_s0 = inlined_call_operand.hbm [shape: f32[4,512], index: 0, kind: input, shape index: {}]   ;;  %s5018_s1 = inlined_call_operand.hbm [shape: f32[16,128], index: 1, kind: input, shape index: {}]   ;;  %s5019_s2 = inlined_call_operand.hbm [shape: f32[4,512], index: 2, kind: output, shape index: {}]  }
   0x1   :  { %8 = vsyncpa [#allocation6], 0 }
   0x2   :  { %9 = vsyncpa [#allocation4], 0  ;;  %s2838_s9 = smov [#allocation2]   ;;  %s2839_s11 = smov [#allocation5]  }
   0x3   :  { %s16_s10 = sshll.u32 %s2838_s9, 4  ;;  %s25_s12 = sshll.u32 %s2839_s11, 4  ;;  %s17_s10 = int_to_ptr.vmem [resolvable:$true] %s16_s10  ;;  %s2926_s12 = int_to_ptr.vmem [resolvable:$true] %s25_s12 }
   0x4   :  { %s2766_s15 = scalar_lea.hbm %s5017_s0, 256 }
   0x5   :  { %p2767_p0 = scmp.ne.s32.totalorder %s5017_s0, %s2766_s15  ;;  %p2770_p1 = scmp.lt.u32.totalorder %s2766_s15, %s5017_s0 }
   0x7   :  { %p2772_p2 = pnand %p2770_p1, %p2767_p0 }
   0x9   :  { %2775 = shalt.err (!%p2772_p2)
}
   0xa   :  { %s2776_s20 = scalar_lea.vmem %s17_s10, 256  ;;  %p2781_p4 = scmp.lt.s32.totalorder %s17_s10, %s17_s10 }
   0xb   :  { %p2777_p3 = scmp.ne.s32.totalorder %s17_s10, %s2776_s20  ;;  %p2782_p5 = scmp.lt.s32.totalorder %s2776_s20, %s2776_s20 }
   0xd   :  { %p2783_p6 = por %p2782_p5, %p2781_p4 }
   0xf   :  { %p2784_p7 = pnand %p2783_p6, %p2777_p3 }
  0x11   :  { %2787 = shalt.err (!%p2784_p7)
}
  0x12   :  { %19 = dma.hbm_to_vmem [thread:$0]  %s5017_s0, 256, %s17_s10, [#allocation3]  }
  0x13   :  { %s2788_s25 = scalar_lea.hbm %s5018_s1, 256 }
  0x14   :  { %p2789_p8 = scmp.ne.s32.totalorder %s5018_s1, %s2788_s25  ;;  %p2792_p9 = scmp.lt.u32.totalorder %s2788_s25, %s5018_s1 }
  0x16   :  { %p2794_p10 = pnand %p2792_p9, %p2789_p8 }
  0x18   :  { %2797 = shalt.err (!%p2794_p10)
}
  0x19   :  { %s2798_s30 = scalar_lea.vmem %s2926_s12, 256  ;;  %p2803_p12 = scmp.lt.s32.totalorder %s2926_s12, %s2926_s12 }
  0x1a   :  { %p2799_p11 = scmp.ne.s32.totalorder %s2926_s12, %s2798_s30  ;;  %p2804_p13 = scmp.lt.s32.totalorder %s2798_s30, %s2798_s30 }
  0x1c   :  { %p2805_p0 = por %p2804_p13, %p2803_p12 }
  0x1e   :  { %p2806_p1 = pnand %p2805_p0, %p2799_p11 }
  0x20   :  { %2809 = shalt.err (!%p2806_p1)
}
  0x21   :  { %s2840_s0 = smov 128   ;;  %s2841_s3 = smov 8  }
  0x22   :  { %31 = dma.hbm_to_vmem [thread:$0]  %s5018_s1, 256, %s2926_s12, [#allocation6], %s2840_s0, %s2840_s0, %s2841_s3  }
  0x23   :  { %2832 = dma.done.wait [#allocation3], 256  }
  0x24   :  { %2833 = vsyncadd [#allocation3], 4294967040 }
  0x25   :  { %2834 = dma.done.wait [#allocation6], 256  }
  0x26   :  { %2835 = vsyncadd [#allocation6], 4294967040  ;;  %v2842_v0 = vmov 1   ;;  %v2843_v1 = vmov 0   ;;  %v2957_v2 = vld [vmem:[#allocation5] sm:$0xff]  ;;  %v2844_v3 = vmov 3   ;;  %v5020_v20 = vlaneseq }
  0x27   :  { %2649 = vset.pattern.permute.xlu1 %v2842_v0  ;;  %2647 = vset.pattern.permute.xlu0 %v2843_v1  ;;  %v2845_v4 = vmov 2   ;;  %v2963_v5 = vld [vmem:[#allocation5 + $0x8] sm:$0xff]  ;;  %v2846_v6 = vmov 60   ;;  %v2847_v7 = vmov 57   ;;  %v2848_v8 = vmov 6   ;;  %v40_v28 = vld [vmem:[#allocation2] sm:$0xff] }
  0x28   :  { %159 = vperm.xlu1 %2649, %v2957_v2   ;;  %44 = vperm.xlu0 %2647, %v2957_v2   ;;  %v2849_v9 = vmov 8   ;;  %v2850_v10 = vmov 10   ;;  %v2851_v11 = vmov 4   ;;  %v2852_v12 = vmov 5   ;;  %v41_v29 = vld [vmem:[#allocation2 + $0x8] sm:$0xff]  ;;  %s2869_s1 = smov 1  }
  0x29   :  { %v2853_v13 = vmov 12   ;;  %v2854_v14 = vmov 7   ;;  %v2855_v15 = vmov 9   ;;  %v2856_v16 = vmov 13   ;;  %s2875_s6 = smov 17   ;;  %s2876_s7 = smov 16  }
  0x2a   :  { %v2857_v17 = vmov 11   ;;  %v2858_v18 = vmov 15   ;;  %v5021_v19 = vmov 14   ;;  %v55_v21 = vshrl.u32 %v5020_v20, 7  ;;  %s2877_s8 = smov 15   ;;  %s2878_s9 = smov 127  }
  0x2b   :  { %s2879_s10 = smov 113   ;;  %s2880_s11 = smov 112  }
  0x2c   :  { %2650 = vset.pattern.permute.xlu1 %v2844_v3  ;;  %2648 = vset.pattern.permute.xlu0 %v2845_v4  ;;  %v2996_v22 = vsub.s32 0, %v55_v21  ;;  %v2998_v23 = vsub.s32 4, %v55_v21  ;;  %v3000_v24 = vsub.s32 3, %v55_v21  ;;  %v3002_v25 = vsub.s32 7, %v55_v21  ;;  %s2881_s12 = smov 111   ;;  %s2887_s13 = smov 120  }
  0x2d   :  { %211 = vperm.xlu1 %2650, %v2957_v2   ;;  %99 = vperm.xlu0 %2648, %v2957_v2   ;;  %v3004_v26 = vsub.s32 2, %v55_v21  ;;  %v3006_v27 = vsub.s32 6, %v55_v21  ;;  %v3008_v30 = vsub.s32 1, %v55_v21  ;;  %v3010_v31 = vsub.s32 5, %v55_v21  ;;  %s2888_s14 = smov 4   ;;  %s2890_s15 = smov 79  }
  0x2e   :  { %5139 = vst [vmem:[#allocation11_spill] sm:$0xff] %v2996_v22  ;;  %5140 = vst [vmem:[#allocation12_spill] sm:$0xff] %v2998_v23  ;;  %v57_v33 = vrot.slane %v40_v28, %v2996_v22  ;;  %v61_v34 = vrot.slane %v40_v28, %v2998_v23  ;;  %v65_v35 = vrot.slane %v41_v29, %v2996_v22  ;;  %s2910_s16 = smov [#allocation7]  }
  0x2f   :  { %5141 = vst [vmem:[#allocation13_spill] sm:$0xff] %v3000_v24  ;;  %5142 = vst [vmem:[#allocation14_spill] sm:$0xff] %v3002_v25  ;;  %v69_v36 = vrot.slane %v41_v29, %v2998_v23  ;;  %v221_v38 = vrot.slane %v40_v28, %v3000_v24  ;;  %v225_v39 = vrot.slane %v40_v28, %v3002_v25  ;;  %s2520_s17 = sshll.u32 %s2910_s16, 4  ;;  %s2521_s17 = int_to_ptr.vmem [resolvable:$true] %s2520_s17 }
  0x30   :  { %5143 = vst [vmem:[#allocation15_spill] sm:$0xff] %v3004_v26  ;;  %5144 = vst [vmem:[#allocation16_spill] sm:$0xff] %v3006_v27  ;;  %v229_v40 = vrot.slane %v41_v29, %v3000_v24  ;;  %v233_v41 = vrot.slane %v41_v29, %v3002_v25  ;;  %v109_v42 = vrot.slane %v40_v28, %v3004_v26  ;;  %s2810_s18 = scalar_lea.vmem %s2521_s17, 256  ;;  %p2815_p3 = scmp.lt.s32.totalorder %s2521_s17, %s2521_s17 }
  0x31   :  { %2651 = vset.pattern.permute.xlu1 %v2843_v1  ;;  %103 = vperm.xlu0 %2648, %v2963_v5   ;;  %5145 = vst [vmem:[#allocation17_spill] sm:$0xff] %v3008_v30  ;;  %5146 = vst [vmem:[#allocation18_spill] sm:$0xff] %v3010_v31  ;;  %v113_v43 = vrot.slane %v40_v28, %v3006_v27  ;;  %v117_v44 = vrot.slane %v41_v29, %v3004_v26  ;;  %p2811_p2 = scmp.ne.s32.totalorder %s2521_s17, %s2810_s18  ;;  %p2816_p4 = scmp.lt.s32.totalorder %s2810_s18, %s2810_s18 }
  0x32   :  { %49 = vperm.xlu1 %2651, %v2963_v5   ;;  %v121_v45 = vrot.slane %v41_v29, %v3006_v27  ;;  %v169_v46 = vrot.slane %v40_v28, %v3008_v30  ;;  %v173_v47 = vrot.slane %v40_v28, %v3010_v31  ;;  %v177_v48 = vrot.slane %v41_v29, %v3008_v30 }
  0x33   :  { %v181_v49 = vrot.slane %v41_v29, %v3010_v31  ;;  %v77_v50 = vrot.slane %v57_v33, %v2996_v22  ;;  %v81_v51 = vrot.slane %v61_v34, %v2996_v22  ;;  %v85_v52 = vrot.slane %v65_v35, %v2996_v22  ;;  %p2817_p5 = por %p2816_p4, %p2815_p3 }
  0x34   :  { %v3032_v53 = vrot.slane %v69_v36, %v2996_v22  ;;  %v241_v54 = vrot.slane %v221_v38, %v3000_v24  ;;  %v245_v55 = vrot.slane %v225_v39, %v3000_v24  ;;  %v249_v56 = vrot.slane %v229_v40, %v3000_v24 }
  0x35   :  { %2653 = vset.pattern.permute.xlu0 %v2844_v3  ;;  %v253_v57 = vrot.slane %v233_v41, %v3000_v24  ;;  %v129_v60 = vrot.slane %v109_v42, %v3004_v26  ;;  %v133_v61 = vrot.slane %v113_v43, %v3004_v26  ;;  %v137_v62 = vrot.slane %v117_v44, %v3004_v26  ;;  %p2818_p6 = pnand %p2817_p5, %p2811_p2 }
  0x36   :  { %2652 = vset.pattern.permute.xlu1 %v2842_v0  ;;  %215 = vperm.xlu0 %2653, %v2963_v5   ;;  %v141_v63 = vrot.slane %v121_v45, %v3004_v26  ;;  %v189_v0 = vrot.slane %v169_v46, %v3008_v30  ;;  %v193_v1 = vrot.slane %v173_v47, %v3008_v30  ;;  %v5207_v27 = vmov 0.0  }
  0x37   :  { %163 = vperm.xlu1 %2652, %v2963_v5   ;;  %v197_v3 = vrot.slane %v177_v48, %v3008_v30  ;;  %v201_v4 = vrot.slane %v181_v49, %v3008_v30 }
  0x3a   :  { %2656 = vset.pattern.permute.xlu0 %v2846_v6 }
  0x3b   :  { %2654 = vset.pattern.permute.xlu1 %v2847_v7  ;;  %453 = vperm.xlu0 %2656, %v2957_v2  }
  0x3c   :  { %279 = vperm.xlu1 %2654, %v2957_v2  }
  0x3f   :  { %2659 = vset.pattern.permute.xlu0 %v2848_v8 }
  0x40   :  { %283 = vperm.xlu1 %2654, %v2963_v5   ;;  %652 = vperm.xlu0 %2659, %v2957_v2  }
  0x44   :  { %2655 = vset.pattern.permute.xlu1 %v2849_v9  ;;  %2663 = vset.pattern.permute.xlu0 %v2850_v10 }
  0x45   :  { %437 = vperm.xlu1 %2655, %v2957_v2   ;;  %855 = vperm.xlu0 %2663, %v2957_v2  }
  0x49   :  { %2657 = vset.pattern.permute.xlu1 %v2851_v11  ;;  %2665 = vset.pattern.permute.xlu0 %v2851_v11 }
  0x4a   :  { %522 = vperm.xlu1 %2657, %v2957_v2   ;;  %526 = vperm.xlu0 %2665, %v2963_v5  }
  0x4e   :  { %2658 = vset.pattern.permute.xlu1 %v2852_v12  ;;  %2667 = vset.pattern.permute.xlu0 %v2853_v13 }
  0x4f   :  { %587 = vperm.xlu1 %2658, %v2957_v2   ;;  %989 = vperm.xlu0 %2667, %v2957_v2  }
  0x53   :  { %2660 = vset.pattern.permute.xlu1 %v2854_v14  ;;  %2671 = vset.pattern.permute.xlu0 %v2855_v15 }
  0x54   :  { %717 = vperm.xlu1 %2660, %v2957_v2   ;;  %786 = vperm.xlu0 %2671, %v2963_v5  }
  0x58   :  { %2661 = vset.pattern.permute.xlu1 %v2849_v9  ;;  %2676 = vset.pattern.permute.xlu0 %v2856_v16 }
  0x59   :  { %441 = vperm.xlu1 %2661, %v2963_v5   ;;  %1025 = vperm.xlu0 %2676, %v2963_v5  }
  0x5d   :  { %2662 = vset.pattern.permute.xlu1 %v2855_v15  ;;  %2678 = vset.pattern.permute.xlu0 %v5021_v19 }
  0x5e   :  { %782 = vperm.xlu1 %2662, %v2957_v2  }
  0x62   :  { %2664 = vset.pattern.permute.xlu1 %v2846_v6 }
  0x63   :  { %457 = vperm.xlu1 %2664, %v2963_v5  }
  0x67   :  { %2666 = vset.pattern.permute.xlu1 %v2857_v17 }
  0x68   :  { %920 = vperm.xlu1 %2666, %v2957_v2  }
  0x6c   :  { %2668 = vset.pattern.permute.xlu1 %v2852_v12 }
  0x6d   :  { %591 = vperm.xlu1 %2668, %v2963_v5  }
  0x71   :  { %2669 = vset.pattern.permute.xlu1 %v2848_v8 }
  0x72   :  { %656 = vperm.xlu1 %2669, %v2963_v5  }
  0x76   :  { %2670 = vset.pattern.permute.xlu1 %v2854_v14 }
  0x77   :  { %721 = vperm.xlu1 %2670, %v2963_v5  }
  0x7b   :  { %2672 = vset.pattern.permute.xlu1 %v2850_v10 }
  0x7c   :  { %859 = vperm.xlu1 %2672, %v2963_v5  }
  0x80   :  { %2673 = vset.pattern.permute.xlu1 %v2857_v17 }
  0x81   :  { %924 = vperm.xlu1 %2673, %v2963_v5  }
  0x85   :  { %2674 = vset.pattern.permute.xlu1 %v2853_v13 }
  0x86   :  { %993 = vperm.xlu1 %2674, %v2963_v5  }
  0x8a   :  { %2675 = vset.pattern.permute.xlu1 %v2856_v16 }
  0x8b   :  { %1021 = vperm.xlu1 %2675, %v2957_v2  }
  0x8f   :  { %2677 = vset.pattern.permute.xlu1 %v2858_v18 }
  0x90   :  { %1053 = vperm.xlu1 %2677, %v2957_v2  }
  0xa7   :  { %v160_v32 = vpop.permute.xlu1 %159  ;;  %v45_v37 = vpop.permute.xlu0 %44 }
  0xa8   :  { %v90_v6 = vmul.f32 %v77_v50, %v45_v37  ;;  %v91_v7 = vmul.f32 %v81_v51, %v45_v37  ;;  %v92_v8 = vmul.f32 %v85_v52, %v45_v37  ;;  %v93_v9 = vmul.f32 %v3032_v53, %v45_v37 }
  0xa9   :  { %v202_v28 = vmul.f32 %v189_v0, %v160_v32  ;;  %v203_v29 = vmul.f32 %v193_v1, %v160_v32  ;;  %v204_v33 = vmul.f32 %v197_v3, %v160_v32  ;;  %v205_v34 = vmul.f32 %v201_v4, %v160_v32 }
  0xac   :  { %v212_v58 = vpop.permute.xlu1 %211  ;;  %v100_v59 = vpop.permute.xlu0 %99 }
  0xad   :  { %v254_v10 = vmul.f32 %v241_v54, %v212_v58  ;;  %v255_v11 = vmul.f32 %v245_v55, %v212_v58  ;;  %v256_v12 = vmul.f32 %v249_v56, %v212_v58  ;;  %v257_v13 = vmul.f32 %v253_v57, %v212_v58 }
  0xae   :  { %v142_v15 = vmul.f32 %v129_v60, %v100_v59  ;;  %v143_v16 = vmul.f32 %v133_v61, %v100_v59  ;;  %v144_v17 = vmul.f32 %v137_v62, %v100_v59  ;;  %v145_v18 = vmul.f32 %v141_v63, %v100_v59 }
  0xaf   :  { %v262_v35 = vadd.f32 %v254_v10, %v202_v28  ;;  %v263_v36 = vadd.f32 %v255_v11, %v203_v29  ;;  %v264_v38 = vadd.f32 %v256_v12, %v204_v33  ;;  %v265_v39 = vadd.f32 %v257_v13, %v205_v34 }
  0xb0   :  { %v104_v14 = vpop.permute.xlu0 %103  ;;  %v150_v40 = vadd.f32 %v142_v15, %v90_v6  ;;  %v151_v37 = vadd.f32 %v143_v16, %v91_v7  ;;  %v152_v41 = vadd.f32 %v144_v17, %v92_v8  ;;  %v153_v43 = vadd.f32 %v145_v18, %v93_v9 }
  0xb1   :  { %v50_v21 = vpop.permute.xlu1 %49  ;;  %v146_v45 = vmul.f32 %v129_v60, %v104_v14  ;;  %v147_v32 = vmul.f32 %v133_v61, %v104_v14  ;;  %v148_v10 = vmul.f32 %v137_v62, %v104_v14  ;;  %v149_v11 = vmul.f32 %v141_v63, %v104_v14 }
  0xb2   :  { %v94_v44 = vmul.f32 %v77_v50, %v50_v21  ;;  %v95_v19 = vmul.f32 %v81_v51, %v50_v21  ;;  %v96_v12 = vmul.f32 %v85_v52, %v50_v21  ;;  %v270_v15 = vadd.f32 %v262_v35, %v150_v40 }
  0xb3   :  { %v271_v9 = vadd.f32 %v263_v36, %v151_v37  ;;  %v272_v50 = vadd.f32 %v264_v38, %v152_v41  ;;  %v97_v60 = vmul.f32 %v3032_v53, %v50_v21 }
  0xb4   :  { %v156_v52 = vadd.f32 %v148_v10, %v96_v12  ;;  %v2861_v10 = vmov 17   ;;  %v2863_v12 = vmov 19  }
  0xb5   :  { %v216_v42 = vpop.permute.xlu0 %215  ;;  %v157_v17 = vadd.f32 %v149_v11, %v97_v60  ;;  %v2862_v11 = vmov 18  }
  0xb6   :  { %v164_v46 = vpop.permute.xlu1 %163  ;;  %v258_v47 = vmul.f32 %v241_v54, %v216_v42  ;;  %v259_v48 = vmul.f32 %v245_v55, %v216_v42  ;;  %v260_v20 = vmul.f32 %v249_v56, %v216_v42  ;;  %v261_v6 = vmul.f32 %v253_v57, %v216_v42 }
  0xb7   :  { %v206_v49 = vmul.f32 %v189_v0, %v164_v46  ;;  %v207_v58 = vmul.f32 %v193_v1, %v164_v46  ;;  %v208_v59 = vmul.f32 %v197_v3, %v164_v46  ;;  %v209_v13 = vmul.f32 %v201_v4, %v164_v46 }
  0xb8   :  { %v154_v54 = vadd.f32 %v146_v45, %v94_v44  ;;  %v273_v1 = vadd.f32 %v265_v39, %v153_v43  ;;  %v155_v3 = vadd.f32 %v147_v32, %v95_v19  ;;  %v2860_v32 = vmov 16  }
  0xb9   :  { %v266_v7 = vadd.f32 %v258_v47, %v206_v49  ;;  %v267_v8 = vadd.f32 %v259_v48, %v207_v58  ;;  %v268_v55 = vadd.f32 %v260_v20, %v208_v59  ;;  %v269_v63 = vadd.f32 %v261_v6, %v209_v13 }
  0xba   :  { %v5147_v59 = vmov 14   ;;  %v2864_v13 = vmov 20  }
  0xbb   :  { %v280_v0 = vpop.permute.xlu1 %279  ;;  %v274_v57 = vadd.f32 %v266_v7, %v154_v54  ;;  %v275_v4 = vadd.f32 %v267_v8, %v155_v3  ;;  %v276_v18 = vadd.f32 %v268_v55, %v156_v52  ;;  %v277_v35 = vadd.f32 %v269_v63, %v157_v17 }
  0xbc   :  { %v3048_v56 = vadd.f32 %v280_v0, %v270_v15  ;;  %v3050_v51 = vadd.f32 %v280_v0, %v271_v9  ;;  %v3052_v61 = vadd.f32 %v280_v0, %v272_v50  ;;  %v3054_v62 = vadd.f32 %v280_v0, %v273_v1 }
  0xbd   :  { %v2865_v7 = vmov 21   ;;  %v2866_v15 = vmov 22   ;;  %v2867_v50 = vmov 58   ;;  %v2868_v54 = vmov 23  }
  0xbe   :  { %v294_v53 = vadd.f32 %v3050_v51, %v3048_v56  ;;  %v307_v20 = vmul.f32 %v3048_v56, %v3048_v56  ;;  %v308_v19 = vmul.f32 %v3050_v51, %v3050_v51  ;;  %v309_v16 = vmul.f32 %v3052_v61, %v3052_v61 }
  0xbf   :  { %v284_v14 = vpop.permute.xlu1 %283  ;;  %v310_v34 = vmul.f32 %v3054_v62, %v3054_v62 }
  0xc0   :  { %v3064_v21 = vadd.f32 %v284_v14, %v274_v57  ;;  %v3066_v28 = vadd.f32 %v284_v14, %v275_v4  ;;  %v295_v29 = vadd.f32 %v294_v53, %v3052_v61  ;;  %v315_v33 = vadd.f32 %v308_v19, %v307_v20  ;;  %v3125_v57 = vpop.permute.xlu0 %453 }
  0xc1   :  { %v3071_v36 = vadd.f32 %v284_v14, %v276_v18  ;;  %v3080_v43 = vadd.f32 %v284_v14, %v277_v35 }
  0xc2   :  { %v296_v38 = vadd.f32 %v295_v29, %v3054_v62  ;;  %v316_v39 = vadd.f32 %v315_v33, %v309_v16  ;;  %v299_v40 = vadd.f32 %v3066_v28, %v3064_v21  ;;  %v311_v37 = vmul.f32 %v3064_v21, %v3064_v21 }
  0xc3   :  { %v312_v41 = vmul.f32 %v3066_v28, %v3066_v28  ;;  %v313_v45 = vmul.f32 %v3071_v36, %v3071_v36  ;;  %v314_v49 = vmul.f32 %v3080_v43, %v3080_v43 }
  0xc4   :  { %297 = vadd.xlane.f32.xlu0 %v296_v38  ;;  %v317_v42 = vadd.f32 %v316_v39, %v310_v34  ;;  %v300_v44 = vadd.f32 %v299_v40, %v3071_v36  ;;  %v3099_v6 = vpop.permute.xlu1 %437  ;;  %v3129_v4 = vpop.permute.xlu0 %652 }
  0xc5   :  { %v320_v46 = vadd.f32 %v312_v41, %v311_v37 }
  0xc6   :  { %318 = vadd.xlane.f32.xlu1 %v317_v42  ;;  %v301_v47 = vadd.f32 %v300_v44, %v3080_v43 }
  0xc7   :  { %v321_v48 = vadd.f32 %v320_v46, %v313_v45 }
  0xc8   :  { %302 = vadd.xlane.f32.xlu0 %v301_v47  ;;  %v3133_v20 = vpop.permute.xlu0 %855 }
  0xc9   :  { %v322_v58 = vadd.f32 %v321_v48, %v314_v49  ;;  %v3104_v8 = vpop.permute.xlu1 %522 }
  0xcc   :  { %323 = vadd.xlane.f32.xlu0 %v322_v58  ;;  %v3137_v14 = vpop.permute.xlu0 %526 }
  0xcd   :  { %5154 = vst [vmem:[#allocation25_spill] sm:$0xff] %v3137_v14 }
  0xce   :  { %v3109_v9 = vpop.permute.xlu1 %587 }
  0xd0   :  { %v3141_v17 = vpop.permute.xlu0 %989 }
  0xd1   :  { %5156 = vst [vmem:[#allocation27_spill] sm:$0xff] %v3141_v17 }
  0xd3   :  { %v3112_v60 = vpop.permute.xlu1 %717 }
  0xd4   :  { %v3145_v29 = vpop.permute.xlu0 %786 }
  0xd5   :  { %5158 = vst [vmem:[#allocation29_spill] sm:$0xff] %v3145_v29 }
  0xd7   :  { %1057 = vperm.xlu1 %2677, %v2963_v5  }
  0xd8   :  { %v3115_v55 = vpop.permute.xlu1 %441  ;;  %v3149_v34 = vpop.permute.xlu0 %1025 }
  0xd9   :  { %5160 = vst [vmem:[#allocation31_spill] sm:$0xff] %v3149_v34 }
  0xdb   :  { %2679 = vset.pattern.permute.xlu1 %v5147_v59 }
  0xdc   :  { %1337 = vperm.xlu1 %2679, %v2963_v5  }
  0xdd   :  { %v3117_v0 = vpop.permute.xlu1 %782 }
  0xe0   :  { %2680 = vset.pattern.permute.xlu1 %v2860_v32 }
  0xe1   :  { %1365 = vperm.xlu1 %2680, %v2957_v2  }
  0xe2   :  { %1333 = vperm.xlu0 %2678, %v2957_v2   ;;  %v3119_v1 = vpop.permute.xlu1 %457 }
  0xe3   :  { %5148 = vst [vmem:[#allocation19_spill] sm:$0xff] %v3119_v1 }
  0xe5   :  { %2683 = vset.pattern.permute.xlu1 %v2861_v10 }
  0xe6   :  { %1097 = vperm.xlu1 %2683, %v2963_v5   ;;  %2681 = vset.pattern.permute.xlu0 %v2860_v32 }
  0xe7   :  { %1369 = vperm.xlu0 %2681, %v2963_v5   ;;  %v3121_v3 = vpop.permute.xlu1 %920 }
  0xe8   :  { %5149 = vst [vmem:[#allocation20_spill] sm:$0xff] %v3121_v3 }
  0xea   :  { %2684 = vset.pattern.permute.xlu1 %v2862_v11 }
  0xeb   :  { %1405 = vperm.xlu1 %2684, %v2957_v2   ;;  %2682 = vset.pattern.permute.xlu0 %v2861_v10 }
  0xec   :  { %1093 = vperm.xlu0 %2682, %v2957_v2   ;;  %v3123_v52 = vpop.permute.xlu1 %591 }
  0xed   :  { %5150 = vst [vmem:[#allocation21_spill] sm:$0xff] %v3123_v52 }
  0xef   :  { %2687 = vset.pattern.permute.xlu1 %v2863_v12 }
  0xf0   :  { %1137 = vperm.xlu1 %2687, %v2963_v5   ;;  %2685 = vset.pattern.permute.xlu0 %v2862_v11 }
  0xf1   :  { %1409 = vperm.xlu0 %2685, %v2963_v5   ;;  %v3127_v63 = vpop.permute.xlu1 %656 }
  0xf2   :  { %5151 = vst [vmem:[#allocation22_spill] sm:$0xff] %v3127_v63  ;;  %v5053_v63 = vmov 0.0  }
  0xf4   :  { %2688 = vset.pattern.permute.xlu1 %v2864_v13 }
  0xf5   :  { %1445 = vperm.xlu1 %2688, %v2957_v2   ;;  %2686 = vset.pattern.permute.xlu0 %v2863_v12 }
  0xf6   :  { %1133 = vperm.xlu0 %2686, %v2957_v2   ;;  %v3131_v53 = vpop.permute.xlu1 %721 }
  0xf7   :  { %5152 = vst [vmem:[#allocation23_spill] sm:$0xff] %v3131_v53 }
  0xf9   :  { %2690 = vset.pattern.permute.xlu1 %v2865_v7 }
  0xfa   :  { %1173 = vperm.xlu1 %2690, %v2957_v2   ;;  %2689 = vset.pattern.permute.xlu0 %v2864_v13 }
  0xfb   :  { %1449 = vperm.xlu0 %2689, %v2963_v5   ;;  %v3135_v19 = vpop.permute.xlu1 %859 }
  0xfc   :  { %5153 = vst [vmem:[#allocation24_spill] sm:$0xff] %v3135_v19 }
  0xfe   :  { %1177 = vperm.xlu1 %2690, %v2963_v5  }
  0xff   :  { %2691 = vset.pattern.permute.xlu0 %v2866_v15 }
 0x100   :  { %1485 = vperm.xlu0 %2691, %v2957_v2   ;;  %v3139_v16 = vpop.permute.xlu1 %924 }
 0x101   :  { %5155 = vst [vmem:[#allocation26_spill] sm:$0xff] %v3139_v16 }
 0x102   :  { %2692 = vset.pattern.permute.xlu1 %v2866_v15 }
 0x103   :  { %1489 = vperm.xlu1 %2692, %v2963_v5  }
 0x104   :  { %2695 = vset.pattern.permute.xlu0 %v2867_v50 }
 0x105   :  { %v3143_v18 = vpop.permute.xlu1 %993 }
 0x106   :  { %5157 = vst [vmem:[#allocation28_spill] sm:$0xff] %v3143_v18 }
 0x107   :  { %2693 = vset.pattern.permute.xlu1 %v2868_v54 }
 0x108   :  { %1213 = vperm.xlu1 %2693, %v2957_v2  }
 0x10a   :  { %v3147_v33 = vpop.permute.xlu1 %1021 }
 0x10b   :  { %5159 = vst [vmem:[#allocation30_spill] sm:$0xff] %v3147_v33 }
 0x10c   :  { %2694 = vset.pattern.permute.xlu1 %v2867_v50  ;;  %v2870_v50 = vmov 24  }
 0x10f   :  { %v3151_v35 = vpop.permute.xlu1 %1053 }
 0x110   :  { %5161 = vst [vmem:[#allocation32_spill] sm:$0xff] %v3151_v35 }
 0x151   :  { %v298_v38 = vpop.xlane.xlu0 %297 }
 0x152   :  { %v305_v39 = vmul.f32 0.001953125, %v298_v38 }
 0x153   :  { %v319_v40 = vpop.xlane.xlu1 %318 }
 0x154   :  { %v327_v37 = vmul.f32 %v305_v39, %v305_v39  ;;  %v325_v41 = vmul.f32 0.001953125, %v319_v40  ;;  %v2872_v40 = vmov 26  }
 0x155   :  { %v303_v42 = vpop.xlane.xlu0 %302 }
 0x156   :  { %v329_v44 = vsub.f32 %v325_v41, %v327_v37  ;;  %v306_v45 = vmul.f32 0.001953125, %v303_v42  ;;  %v2873_v37 = vmov 59  }
 0x157   :  { %v3163_v41 = vpop.permute.xlu1 %1057 }
 0x158   :  { %v331_v46 = vmax.f32 %v329_v44, 0.0  ;;  %v328_v49 = vmul.f32 %v306_v45, %v306_v45  ;;  %5162 = vst [vmem:[#allocation33_spill] sm:$0xff] %v3163_v41 }
 0x159   :  { %v324_v47 = vpop.xlane.xlu0 %323 }
 0x15a   :  { %v333_v48 = vadd.f32 1e-05, %v331_v46  ;;  %v326_v58 = vmul.f32 0.001953125, %v324_v47 }
 0x15c   :  { %2733 = vrsqrt.f32 %v333_v48  ;;  %v330_v59 = vsub.f32 %v326_v58, %v328_v49 }
 0x15e   :  { %v332_v32 = vmax.f32 %v330_v59, 0.0 }
 0x160   :  { %v334_v10 = vadd.f32 1e-05, %v332_v32 }
 0x161   :  { %v3173_v46 = vpop.permute.xlu0 %1333 }
 0x162   :  { %2735 = vrsqrt.f32 %v334_v10  ;;  %5167 = vst [vmem:[#allocation38_spill] sm:$0xff] %v3173_v46 }
 0x166   :  { %v2734_v11 = vpop.eup %2733  ;;  %v3177_v48 = vpop.permute.xlu0 %1369 }
 0x167   :  { %v337_v12 = vmul.f32 %v2734_v11, %v2957_v2  ;;  %5169 = vst [vmem:[#allocation40_spill] sm:$0xff] %v3177_v48 }
 0x169   :  { %353 = vperm.xlu1 %2694, %v337_v12   ;;  %v339_v13 = vmul.f32 %v337_v12, %v305_v39  ;;  %v2871_v39 = vmov 25  }
 0x16b   :  { %v3181_v58 = vpop.permute.xlu0 %1093 }
 0x16c   :  { %v2736_v7 = vpop.eup %2735  ;;  %5171 = vst [vmem:[#allocation42_spill] sm:$0xff] %v3181_v58 }
 0x16d   :  { %343 = vrot.lane.b32.xlu1 %v339_v13, %s2869_s1  ;;  %v338_v15 = vmul.f32 %v2736_v7, %v2963_v5 }
 0x16e   :  { %2697 = vset.pattern.permute.xlu1 %v2870_v50 }
 0x16f   :  { %358 = vperm.xlu0 %2695, %v338_v15   ;;  %v340_v38 = vmul.f32 %v338_v15, %v306_v45 }
 0x170   :  { %v3185_v32 = vpop.permute.xlu0 %1409 }
 0x171   :  { %1525 = vperm.xlu1 %2697, %v2957_v2   ;;  %5173 = vst [vmem:[#allocation44_spill] sm:$0xff] %v3185_v32 }
 0x173   :  { %345 = vrot.lane.b32.xlu0 %v340_v38, %s2869_s1 }
 0x174   :  { %2696 = vset.pattern.permute.xlu0 %v2868_v54  ;;  %v3165_v54 = vpop.permute.xlu1 %1337 }
 0x175   :  { %1529 = vperm.xlu1 %2697, %v2963_v5   ;;  %5163 = vst [vmem:[#allocation34_spill] sm:$0xff] %v3165_v54  ;;  %v3191_v12 = vpop.permute.xlu0 %1133  ;;  %v5204_v54 = vmov 0 }
 0x176   :  { %5176 = vst [vmem:[#allocation47_spill] sm:$0xff] %v3191_v12  ;;  %v2884_v12 = vmov 61  }
 0x177   :  { %1217 = vperm.xlu0 %2696, %v2963_v5  }
 0x178   :  { %v3167_v42 = vpop.permute.xlu1 %1365 }
 0x179   :  { %2699 = vset.pattern.permute.xlu1 %v2871_v39  ;;  %5164 = vst [vmem:[#allocation35_spill] sm:$0xff] %v3167_v42 }
 0x17a   :  { %1257 = vperm.xlu1 %2699, %v2963_v5   ;;  %v3195_v7 = vpop.permute.xlu0 %1449 }
 0x17b   :  { %2698 = vset.pattern.permute.xlu0 %v2871_v39  ;;  %5178 = vst [vmem:[#allocation49_spill] sm:$0xff] %v3195_v7 }
 0x17c   :  { %1253 = vperm.xlu0 %2698, %v2957_v2   ;;  %v3169_v44 = vpop.permute.xlu1 %1097 }
 0x17d   :  { %5165 = vst [vmem:[#allocation36_spill] sm:$0xff] %v3169_v44 }
 0x17e   :  { %2700 = vset.pattern.permute.xlu1 %v2872_v40 }
 0x17f   :  { %1565 = vperm.xlu1 %2700, %v2957_v2   ;;  %v3197_v50 = vpop.permute.xlu0 %1485 }
 0x180   :  { %2702 = vset.pattern.permute.xlu0 %v2872_v40  ;;  %v3171_v45 = vpop.permute.xlu1 %1405  ;;  %5179 = vst [vmem:[#allocation50_spill] sm:$0xff] %v3197_v50 }
 0x181   :  { %5166 = vst [vmem:[#allocation37_spill] sm:$0xff] %v3171_v45 }
 0x183   :  { %2701 = vset.pattern.permute.xlu1 %v2873_v37 }
 0x184   :  { %v3175_v47 = vpop.permute.xlu1 %1137 }
 0x185   :  { %5168 = vst [vmem:[#allocation39_spill] sm:$0xff] %v3175_v47 }
 0x188   :  { %v3179_v49 = vpop.permute.xlu1 %1445 }
 0x189   :  { %5170 = vst [vmem:[#allocation41_spill] sm:$0xff] %v3179_v49 }
 0x18c   :  { %v3183_v59 = vpop.permute.xlu1 %1173 }
 0x18d   :  { %5172 = vst [vmem:[#allocation43_spill] sm:$0xff] %v3183_v59 }
 0x190   :  { %v3187_v10 = vpop.permute.xlu1 %1177 }
 0x191   :  { %5174 = vst [vmem:[#allocation45_spill] sm:$0xff] %v3187_v10 }
 0x194   :  { %v3189_v11 = vpop.permute.xlu1 %1489 }
 0x195   :  { %5175 = vst [vmem:[#allocation46_spill] sm:$0xff] %v3189_v11 }
 0x198   :  { %v3193_v13 = vpop.permute.xlu1 %1213 }
 0x199   :  { %5177 = vst [vmem:[#allocation48_spill] sm:$0xff] %v3193_v13 }
 0x1e8   :  { %v354_v15 = vpop.permute.xlu1 %353 }
 0x1e9   :  { %v361_v50 = vmul.f32 %v354_v15, %v3048_v56  ;;  %v362_v16 = vmul.f32 %v354_v15, %v3050_v51 }
 0x1ec   :  { %v344_v38 = vpop.permute.xlu1 %343 }
 0x1ed   :  { %v349_v39 = vsub.f32 %v2957_v2, %v344_v38  ;;  %v363_v38 = vmul.f32 %v354_v15, %v3052_v61 }
 0x1ee   :  { %v3200_v40 = vpop.permute.xlu0 %358 }
 0x1ef   :  { %371 = vperm.xlu1 %2701, %v349_v39   ;;  %v364_v39 = vmul.f32 %v354_v15, %v3054_v62 }
 0x1f0   :  { %v3203_v11 = vpop.permute.xlu1 %1525 }
 0x1f1   :  { %5180 = vst [vmem:[#allocation51_spill] sm:$0xff] %v3203_v11 }
 0x1f2   :  { %v346_v37 = vpop.permute.xlu0 %345 }
 0x1f3   :  { %v350_v10 = vsub.f32 %v2963_v5, %v346_v37 }
 0x1f4   :  { %v3205_v59 = vpop.permute.xlu1 %1529 }
 0x1f5   :  { %376 = vperm.xlu1 %2701, %v350_v10   ;;  %5181 = vst [vmem:[#allocation52_spill] sm:$0xff] %v3205_v59 }
 0x1f9   :  { %v3207_v13 = vpop.permute.xlu1 %1257 }
 0x1fa   :  { %5182 = vst [vmem:[#allocation53_spill] sm:$0xff] %v3207_v13  ;;  %v2874_v13 = vmov 27  }
 0x1fb   :  { %2703 = vset.pattern.permute.xlu1 %v2874_v13 }
 0x1fe   :  { %v3209_v18 = vpop.permute.xlu1 %1565 }
 0x1ff   :  { %5183 = vst [vmem:[#allocation54_spill] sm:$0xff] %v3209_v18 }
 0x26e   :  { %v372_v47 = vpop.permute.xlu1 %371 }
 0x26f   :  { %v379_v19 = vadd.f32 %v372_v47, %v361_v50  ;;  %v380_v37 = vadd.f32 %v372_v47, %v362_v16  ;;  %v381_v10 = vadd.f32 %v372_v47, %v363_v38  ;;  %v382_v44 = vadd.f32 %v372_v47, %v364_v39 }
 0x271   :  { %v387_v11 = vadd.f32 3.0, %v379_v19  ;;  %v388_v29 = vadd.f32 3.0, %v380_v37  ;;  %v389_v59 = vadd.f32 3.0, %v381_v10  ;;  %v390_v41 = vadd.f32 3.0, %v382_v44 }
 0x273   :  { %v395_v18 = vmax.f32 %v387_v11, 0.0  ;;  %v396_v34 = vmax.f32 %v388_v29, 0.0  ;;  %v397_v56 = vmax.f32 %v389_v59, 0.0  ;;  %v398_v49 = vmax.f32 %v390_v41, 0.0 }
 0x275   :  { %v403_v51 = vmin.f32 %v395_v18, 6.0  ;;  %v404_v53 = vmin.f32 %v396_v34, 6.0  ;;  %v405_v61 = vmin.f32 %v397_v56, 6.0  ;;  %v406_v45 = vmin.f32 %v398_v49, 6.0 }
 0x276   :  { %v366_v18 = vmul.f32 %v3200_v40, %v3066_v28 }
 0x277   :  { %v3215_v62 = vmul.f32 %v403_v51, %v379_v19  ;;  %v3217_v15 = vmul.f32 %v404_v53, %v380_v37  ;;  %v3223_v16 = vmul.f32 %v405_v61, %v381_v10  ;;  %v3225_v29 = vmul.f32 %v406_v45, %v382_v44  ;;  %v377_v53 = vpop.permute.xlu1 %376 }
 0x278   :  { %v365_v19 = vmul.f32 %v3200_v40, %v3064_v21  ;;  %v384_v41 = vadd.f32 %v377_v53, %v366_v18  ;;  %v368_v44 = vmul.f32 %v3200_v40, %v3080_v43  ;;  %v367_v37 = vmul.f32 %v3200_v40, %v3071_v36 }
 0x279   :  { %468 = vrot.lane.b32.xlu0 %v3215_v62, %s2875_s6  ;;  %472 = vrot.lane.b32.xlu1 %v3217_v15, %s2875_s6  ;;  %v5186_v18 = vlaneseq  ;;  %v445_v26 = vmul.f32 %v3099_v6, %v3217_v15  ;;  %v444_v1 = vmul.f32 %v3099_v6, %v3215_v62 }
 0x27a   :  { %v383_v34 = vadd.f32 %v377_v53, %v365_v19  ;;  %v386_v21 = vadd.f32 %v377_v53, %v368_v44  ;;  %v392_v28 = vadd.f32 3.0, %v384_v41  ;;  %v385_v10 = vadd.f32 %v377_v53, %v367_v37  ;;  %v3343_v53 = vpop.permute.xlu0 %1217 }
 0x27b   :  { %5184 = vst [vmem:[#allocation55_spill] sm:$0xff] %v3343_v53 }
 0x27c   :  { %v391_v45 = vadd.f32 3.0, %v383_v34  ;;  %v394_v47 = vadd.f32 3.0, %v386_v21  ;;  %v400_v59 = vmax.f32 %v392_v28, 0.0  ;;  %v393_v51 = vadd.f32 3.0, %v385_v10 }
 0x27d   :  { %480 = vrot.lane.b32.xlu0 %v3225_v29, %s2875_s6  ;;  %476 = vrot.lane.b32.xlu1 %v3223_v16, %s2875_s6 }
 0x27e   :  { %v399_v49 = vmax.f32 %v391_v45, 0.0  ;;  %v402_v43 = vmax.f32 %v394_v47, 0.0  ;;  %v408_v13 = vmin.f32 %v400_v59, 6.0  ;;  %v401_v36 = vmax.f32 %v393_v51, 0.0  ;;  %v3353_v19 = vpop.permute.xlu0 %1253 }
 0x27f   :  { %5185 = vst [vmem:[#allocation56_spill] sm:$0xff] %v3353_v19 }
 0x280   :  { %v407_v11 = vmin.f32 %v399_v49, 6.0  ;;  %v410_v50 = vmin.f32 %v402_v43, 6.0  ;;  %v3275_v39 = vmul.f32 %v408_v13, %v384_v41  ;;  %v409_v40 = vmin.f32 %v401_v36, 6.0 }
 0x281   :  { %557 = vrot.lane.b32.xlu0 %v3225_v29, %s2876_s7  ;;  %545 = vrot.lane.b32.xlu1 %v3215_v62, %s2876_s7 }
 0x282   :  { %v3273_v38 = vmul.f32 %v407_v11, %v383_v34  ;;  %v3283_v56 = vmul.f32 %v410_v50, %v386_v21  ;;  %v3301_v61 = vmul.f32 %v409_v40, %v385_v10  ;;  %v3356_v34 = vand.u32 127, %v5186_v18 }
 0x284   :  { %5187 = vst [vmem:[#allocation57_spill] sm:$0xff] %v3356_v34  ;;  %v3363_v41 = vadd.s32 256, %v3356_v34  ;;  %v428_v11 = vshra.s32 %v3356_v34, 4  ;;  %v3390_v50 = vadd.s32 128, %v3356_v34  ;;  %v424_v40 = vand.u32 15, %v3356_v34 }
 0x285   :  { %606 = vrot.lane.b32.xlu0 %v3217_v15, %s2877_s8  ;;  %549 = vrot.lane.b32.xlu1 %v3217_v15, %s2876_s7  ;;  %vm484_vm3 = vcmp.lt.s32.totalorder %v3356_v34, 17  ;;  %vm5085_vm7 = vcmp.lt.s32.totalorder %v3356_v34, 1  ;;  %vm5084_vm15 = vcmp.lt.s32.totalorder %v3356_v34, 15 }
 0x286   :  { %5188 = vst [vmem:[#allocation58_spill] sm:$0xff] %v3363_v41  ;;  %v430_v45 = vshra.s32 %v3363_v41, 4  ;;  %v426_v49 = vand.u32 15, %v3363_v41  ;;  %5189 = vst [vmem:[#allocation59_spill] sm:$0xff] %v3390_v50  ;;  %v3403_v10 = vand.u32 15, %v428_v11  ;;  %v429_v18 = vshra.s32 %v3390_v50, 4 }
 0x287   :  { %v425_v11 = vand.u32 15, %v3390_v50  ;;  %vm3426_vm5 = vcmp.gt.s32.totalorder %v424_v40, 0  ;;  %vm3446_vm8 = vcmp.lt.s32.totalorder %v424_v40, 15  ;;  %v2760_v40 = vld [vmem:[#allocation5 + $0x8] sm:$0xff] }
 0x288   :  { %v3382_v59 = vand.u32 15, %v430_v45  ;;  %vm3399_vm1 = vcmp.gt.s32.totalorder %v426_v49, 0  ;;  %v3418_v45 = vld [vmem:[#allocation5] sm:$0xff]  ;;  %vm497_vm4 = vcmp.gt.s32.totalorder %v3403_v10, 0  ;;  %v3434_v46 = vand.u32 15, %v429_v18 }
 0x289   :  { %675 = vrot.lane.b32.xlu0 %v3215_v62, %s2869_s1  ;;  %602 = vrot.lane.b32.xlu1 %v3215_v62, %s2877_s8  ;;  %vm3436_vm6 = vcmp.lt.s32.totalorder %v426_v49, 15  ;;  %vm3454_vm9 = vmand %vm3426_vm5, %vm497_vm4  ;;  %vm3474_vm12 = vcmp.gt.s32.totalorder %v425_v11, 0  ;;  %vm3488_vm14 = vcmp.lt.s32.totalorder %v425_v11, 15 }
 0x28a   :  { %vm5070_vm0 = vcmp.gt.s32.totalorder %v3382_v59, 0  ;;  %vm498_vm11 = vcmp.gt.s32.totalorder %v3434_v46, 0  ;;  %vm631_vm13 = vmand %vm3446_vm8, %vm497_vm4  ;;  %v5205_v54 = vsel %vm3488_vm14, 4294967295, %v5204_v54 }
 0x28b   :  { %vm503_vm2 = vmand %vm3399_vm1, %vm5070_vm0  ;;  %5206 = vst [vmem:[#allocation62_spill] sm:$0xff] %v5205_v54  ;;  %v3525_v22 = vsel %vm631_vm13, 1.0, %v5207_v27  ;;  %vm561_vm13 = vcmp.lt.s32.totalorder %v3356_v34, 16 }
 0x28c   :  { %v3441_v32 = vsel %vm503_vm2, 1.0, %v5053_v63  ;;  %vm633_vm10 = vmand %vm3436_vm6, %vm5070_vm0  ;;  %5212 = vst [vmem:[#allocation65_spill] sm:$0xff] %v3525_v22 }
 0x28d   :  { %687 = vrot.lane.b32.xlu0 %v3225_v29, %s2869_s1  ;;  %614 = vrot.lane.b32.xlu1 %v3225_v29, %s2877_s8  ;;  %5197 = vst [vmem:[#allocation61_spill] sm:$0xff] %v3441_v32  ;;  %v3493_v35 = vsel %vm633_vm10, 1.0, %v5207_v27  ;;  %vm502_vm10 = vmand %vm3474_vm12, %vm498_vm11 }
 0x28e   :  { %5208 = vst [vmem:[#allocation63_spill] sm:$0xff] %v3493_v35  ;;  %v3544_v3 = vsel %vm502_vm10, 1.0, %v5207_v27 }
 0x28f   :  { %5215 = vst [vmem:[#allocation66_spill] sm:$0xff] %v3544_v3 }
 0x291   :  { %610 = vrot.lane.b32.xlu0 %v3223_v16, %s2877_s8  ;;  %679 = vrot.lane.b32.xlu1 %v3217_v15, %s2869_s1 }
 0x294   :  { %v5258_v50 = vld [vmem:[#allocation61_spill] sm:$0xff] }
 0x295   :  { %683 = vrot.lane.b32.xlu0 %v3223_v16, %s2869_s1  ;;  %553 = vrot.lane.b32.xlu1 %v3223_v16, %s2876_s7 }
 0x299   :  { %740 = vrot.lane.b32.xlu0 %v3215_v62, %s2878_s9  ;;  %744 = vrot.lane.b32.xlu1 %v3217_v15, %s2878_s9 }
 0x29d   :  { %748 = vrot.lane.b32.xlu0 %v3223_v16, %s2878_s9  ;;  %805 = vrot.lane.b32.xlu1 %v3215_v62, %s2879_s10 }
 0x2a1   :  { %809 = vrot.lane.b32.xlu0 %v3217_v15, %s2879_s10  ;;  %813 = vrot.lane.b32.xlu1 %v3223_v16, %s2879_s10 }
 0x2a5   :  { %474 = vrot.lane.b32.xlu1 %v3275_v39, %s2875_s6  ;;  %470 = vrot.lane.b32.xlu0 %v3273_v38, %s2875_s6 }
 0x2a9   :  { %752 = vrot.lane.b32.xlu1 %v3225_v29, %s2878_s9  ;;  %482 = vrot.lane.b32.xlu0 %v3283_v56, %s2875_s6 }
 0x2ad   :  { %817 = vrot.lane.b32.xlu1 %v3225_v29, %s2879_s10  ;;  %878 = vrot.lane.b32.xlu0 %v3215_v62, %s2880_s11 }
 0x2b1   :  { %882 = vrot.lane.b32.xlu1 %v3217_v15, %s2880_s11  ;;  %886 = vrot.lane.b32.xlu0 %v3223_v16, %s2880_s11 }
 0x2b5   :  { %943 = vrot.lane.b32.xlu1 %v3215_v62, %s2881_s12  ;;  %947 = vrot.lane.b32.xlu0 %v3217_v15, %s2881_s12 }
 0x2b9   :  { %951 = vrot.lane.b32.xlu1 %v3223_v16, %s2881_s12  ;;  %478 = vrot.lane.b32.xlu0 %v3301_v61, %s2875_s6 }
 0x2bd   :  { %547 = vrot.lane.b32.xlu1 %v3273_v38, %s2876_s7  ;;  %551 = vrot.lane.b32.xlu0 %v3275_v39, %s2876_s7 }
 0x2c1   :  { %559 = vrot.lane.b32.xlu1 %v3283_v56, %s2876_s7  ;;  %604 = vrot.lane.b32.xlu0 %v3273_v38, %s2877_s8 }
 0x2c5   :  { %608 = vrot.lane.b32.xlu1 %v3275_v39, %s2877_s8  ;;  %616 = vrot.lane.b32.xlu0 %v3283_v56, %s2877_s8 }
 0x2c9   :  { %677 = vrot.lane.b32.xlu1 %v3273_v38, %s2869_s1  ;;  %681 = vrot.lane.b32.xlu0 %v3275_v39, %s2869_s1 }
 0x2cd   :  { %689 = vrot.lane.b32.xlu1 %v3283_v56, %s2869_s1  ;;  %890 = vrot.lane.b32.xlu0 %v3225_v29, %s2880_s11 }
 0x2d1   :  { %612 = vrot.lane.b32.xlu1 %v3301_v61, %s2877_s8  ;;  %955 = vrot.lane.b32.xlu0 %v3225_v29, %s2881_s12 }
 0x2d5   :  { %742 = vrot.lane.b32.xlu1 %v3273_v38, %s2878_s9  ;;  %555 = vrot.lane.b32.xlu0 %v3301_v61, %s2876_s7 }
 0x2d9   :  { %750 = vrot.lane.b32.xlu1 %v3301_v61, %s2878_s9  ;;  %685 = vrot.lane.b32.xlu0 %v3301_v61, %s2869_s1 }
 0x2dd   :  { %811 = vrot.lane.b32.xlu1 %v3275_v39, %s2879_s10  ;;  %746 = vrot.lane.b32.xlu0 %v3275_v39, %s2878_s9 }
 0x2e1   :  { %754 = vrot.lane.b32.xlu1 %v3283_v56, %s2878_s9  ;;  %807 = vrot.lane.b32.xlu0 %v3273_v38, %s2879_s10 }
 0x2e5   :  { %819 = vrot.lane.b32.xlu1 %v3283_v56, %s2879_s10  ;;  %815 = vrot.lane.b32.xlu0 %v3301_v61, %s2879_s10 }
 0x2e9   :  { %884 = vrot.lane.b32.xlu1 %v3275_v39, %s2880_s11  ;;  %880 = vrot.lane.b32.xlu0 %v3273_v38, %s2880_s11 }
 0x2eb   :  { %v3365_v44 = vpop.permute.xlu1 %472  ;;  %v3367_v21 = vpop.permute.xlu0 %468 }
 0x2ec   :  { %v489_v15 = vsel %vm484_vm3, %v3367_v21, %v3365_v44 }
 0x2ed   :  { %945 = vrot.lane.b32.xlu1 %v3273_v38, %s2881_s12  ;;  %888 = vrot.lane.b32.xlu0 %v3301_v61, %s2880_s11 }
 0x2ef   :  { %v3374_v28 = vpop.permute.xlu1 %476  ;;  %v3376_v47 = vpop.permute.xlu0 %480 }
 0x2f0   :  { %v487_v7 = vsel %vm484_vm3, %v3365_v44, %v3374_v28 }
 0x2f1   :  { %1293 = vperm.xlu1 %2703, %v2957_v2   ;;  %949 = vrot.lane.b32.xlu0 %v3275_v39, %s2881_s12  ;;  %v3396_v2 = vadd.s32 384, %v3356_v34  ;;  %v515_v58 = vmul.f32 %v3441_v32, %v487_v7  ;;  %v491_v7 = vsel %vm484_vm3, %v3376_v47, %v3367_v21 }
 0x2f3   :  { %v3384_v43 = vpop.permute.xlu1 %545  ;;  %v3387_v13 = vpop.permute.xlu0 %557  ;;  %5190 = vst [vmem:[#allocation60_spill] sm:$0xff] %v3396_v2  ;;  %v431_v41 = vshra.s32 %v3396_v2, 4  ;;  %v427_v25 = vand.u32 15, %v3396_v2  ;;  %v531_v49 = vmul.f32 %v3104_v8, %v515_v58 }
 0x2f5   :  { %953 = vrot.lane.b32.xlu1 %v3301_v61, %s2881_s12  ;;  %1569 = vperm.xlu0 %2702, %v2963_v5   ;;  %v2882_v5 = vmov 28   ;;  %v3461_v31 = vand.u32 15, %v431_v41  ;;  %v446_v41 = vmul.f32 %v3099_v6, %v3223_v16  ;;  %v3498_v16 = vsel %vm3454_vm9, 1.0, %v5207_v27  ;;  %vm3531_vm9 = vmand %vm3488_vm14, %vm498_vm11 }
 0x2f6   :  { %5209 = vst [vmem:[#allocation64_spill] sm:$0xff] %v3498_v16  ;;  %vm3506_vm0 = vcmp.gt.s32.totalorder %v427_v25, 0  ;;  %v513_v17 = vmul.f32 %v3498_v16, %v491_v7  ;;  %v3566_v62 = vsel %vm3531_vm9, 1.0, %v5207_v27  ;;  %vm3582_vm9 = vcmp.lt.s32.totalorder %v427_v25, 15 }
 0x2f7   :  { %v3405_v51 = vpop.permute.xlu1 %549  ;;  %v3407_v36 = vpop.permute.xlu0 %606  ;;  %vm5090_vm2 = vcmp.gt.s32.totalorder %v3461_v31, 0  ;;  %v462_v14 = vadd.f32 %v3125_v57, %v446_v41  ;;  %5216 = vst [vmem:[#allocation67_spill] sm:$0xff] %v3566_v62  ;;  %v3599_v25 = vsel %vm3426_vm5, 1.0, %v5207_v27 }
 0x2f8   :  { %vm504_vm10 = vmand %vm3506_vm0, %vm5090_vm2  ;;  %5221 = vst [vmem:[#allocation70_spill] sm:$0xff] %v3599_v25 }
 0x2f9   :  { %892 = vrot.lane.b32.xlu1 %v3283_v56, %s2880_s11  ;;  %2704 = vset.pattern.permute.xlu0 %v2882_v5  ;;  %v539_v44 = vadd.f32 %v531_v49, %v462_v14  ;;  %v514_v14 = vmul.f32 %v3544_v3, %v489_v15  ;;  %v3642_v3 = vsel %vm3488_vm14, 1.0, %v5207_v27 }
 0x2fa   :  { %1605 = vperm.xlu0 %2704, %v3418_v45   ;;  %5224 = vst [vmem:[#allocation71_spill] sm:$0xff] %v3642_v3 }
 0x2fb   :  { %v603_v53 = vpop.permute.xlu1 %602  ;;  %v3424_v19 = vpop.permute.xlu0 %675 }
 0x2fd   :  { %957 = vrot.lane.b32.xlu1 %v3283_v56, %s2881_s12 }
 0x2fe   :  { %2707 = vset.pattern.permute.xlu0 %v2884_v12 }
 0x2ff   :  { %v3458_v18 = vpop.permute.xlu1 %614  ;;  %v688_v63 = vpop.permute.xlu0 %687  ;;  %1657 = vperm.xlu0 %2707, %v2760_v40  }
 0x300   :  { %v3472_v48 = vsel %vm5085_vm7, %v688_v63, %v3424_v19  ;;  %v625_v33 = vsel %vm5084_vm15, %v3458_v18, %v603_v53 }
 0x301   :  { %1297 = vperm.xlu1 %2703, %v2760_v40   ;;  %v643_v21 = vmul.f32 %v3525_v22, %v625_v33  ;;  %v529_v33 = vmul.f32 %v3104_v8, %v513_v17  ;;  %v708_v16 = vmul.f32 %v3599_v25, %v3472_v48  ;;  %v485_v25 = vsel %vm484_vm3, %v3374_v28, %v3376_v47 }
 0x303   :  { %v3501_v24 = vpop.permute.xlu1 %679  ;;  %v3504_v30 = vpop.permute.xlu0 %610  ;;  %v659_v15 = vmul.f32 %v3129_v4, %v643_v21 }
 0x304   :  { %v621_v23 = vsel %vm5084_vm15, %v3407_v36, %v3504_v30 }
 0x305   :  { %v645_v32 = vmul.f32 %v3493_v35, %v621_v23  ;;  %2705 = vset.pattern.permute.xlu1 %v2882_v5  ;;  %v3551_v23 = vsel %vm497_vm4, 1.0, %v5207_v27  ;;  %v461_v35 = vadd.f32 %v3125_v57, %v445_v26  ;;  %vm5096_vm4 = vcmp.lt.s32.totalorder %v3356_v34, 127 }
 0x306   :  { %1609 = vperm.xlu1 %2705, %v2760_v40   ;;  %v460_v26 = vadd.f32 %v3125_v57, %v444_v1  ;;  %v696_v1 = vsel %vm5085_vm7, %v3424_v19, %v3501_v24 }
 0x307   :  { %v661_v5 = vmul.f32 %v3129_v4, %v645_v32  ;;  %v3554_v41 = vpop.permute.xlu1 %553  ;;  %v3556_v7 = vpop.permute.xlu0 %683  ;;  %v623_v32 = vsel %vm5084_vm15, %v603_v53, %v3407_v36  ;;  %v3593_v53 = vsel %vm504_vm10, 1.0, %v5207_v27  ;;  %vm830_vm15 = vcmp.lt.s32.totalorder %v3403_v10, 15 }
 0x308   :  { %v3574_v40 = vsel %vm5085_vm7, %v3556_v7, %v688_v63  ;;  %v3589_v63 = vsel %vm3446_vm8, 1.0, %v5207_v27  ;;  %v644_v36 = vmul.f32 %v3566_v62, %v623_v32  ;;  %vm831_vm10 = vcmp.lt.s32.totalorder %v3434_v46, 15  ;;  %vm3627_vm7 = vmand %vm3582_vm9, %vm5090_vm2 }
 0x309   :  { %5217 = vst [vmem:[#allocation68_spill] sm:$0xff] %v3574_v40  ;;  %v3580_v49 = vadd.f32 %v661_v5, %v539_v44  ;;  %5220 = vst [vmem:[#allocation69_spill] sm:$0xff] %v3589_v63  ;;  %v568_v44 = vsel %vm561_vm13, %v3387_v13, %v3384_v43  ;;  %v530_v32 = vmul.f32 %v3104_v8, %v514_v14  ;;  %v3682_v28 = vsel %vm3627_vm7, 1.0, %v5207_v27 }
 0x30a   :  { %2706 = vset.pattern.permute.xlu1 %v2884_v12  ;;  %v537_v22 = vadd.f32 %v529_v33, %v460_v26  ;;  %v566_v62 = vsel %vm561_vm13, %v3384_v43, %v3405_v51  ;;  %vm3648_vm2 = vmand %vm3426_vm5, %vm830_vm15  ;;  %v3655_v43 = vsel %vm498_vm11, 1.0, %v5207_v27  ;;  %v660_v48 = vmul.f32 %v3129_v4, %v644_v36 }
 0x30b   :  { %1653 = vperm.xlu1 %2706, %v3418_v45   ;;  %v745_v17 = vpop.permute.xlu1 %744  ;;  %v3602_v12 = vpop.permute.xlu0 %740  ;;  %v3617_v45 = vsel %vm3474_vm12, 1.0, %v5207_v27  ;;  %vm835_vm5 = vmand %vm3474_vm12, %vm831_vm10  ;;  %v578_v36 = vmul.f32 %v3551_v23, %v568_v44  ;;  %vm821_vm11 = vcmp.lt.s32.totalorder %v3356_v34, 113  ;;  %v538_v54 = vadd.f32 %v530_v32, %v461_v35 }
 0x30c   :  { %v761_v5 = vsel %vm5096_vm4, %v3602_v12, %v745_v17  ;;  %v667_v42 = vadd.f32 %v659_v15, %v537_v22  ;;  %v579_v2 = vmul.f32 %v3655_v43, %v566_v62  ;;  %v724_v15 = vmul.f32 %v3112_v60, %v708_v16 }
 0x30d   :  { %v773_v21 = vmul.f32 %v3589_v63, %v761_v5  ;;  %v709_v63 = vmul.f32 %v3617_v45, %v696_v1  ;;  %v3687_v47 = vsel %vm3648_vm2, 1.0, %v5207_v27  ;;  %v668_v44 = vadd.f32 %v660_v48, %v538_v54 }
 0x30e   :  { %5227 = vst [vmem:[#allocation72_spill] sm:$0xff] %v3687_v47  ;;  %v516_v16 = vmul.f32 %v3593_v53, %v485_v25  ;;  %v594_v32 = vmul.f32 %v3109_v9, %v578_v36  ;;  %vm5229_vm7 = vcmp.lt.s32.totalorder %v3356_v34, 15  ;;  %v595_v48 = vmul.f32 %v3109_v9, %v579_v2 }
 0x30f   :  { %v789_v33 = vmul.f32 %v3117_v0, %v773_v21  ;;  %v3659_v26 = vpop.permute.xlu1 %805  ;;  %v749_v5 = vpop.permute.xlu0 %748  ;;  %v725_v19 = vmul.f32 %v3112_v60, %v709_v63  ;;  %v619_v14 = vsel %vm5229_vm7, %v3504_v30, %v3458_v18  ;;  %v447_v30 = vmul.f32 %v3099_v6, %v3225_v29 }
 0x310   :  { %v759_v21 = vsel %vm5096_vm4, %v745_v17, %v749_v5  ;;  %v3690_v17 = vsel %vm835_vm5, 1.0, %v5207_v27  ;;  %v646_v18 = vmul.f32 %v3682_v28, %v619_v14  ;;  %v3728_v6 = vsel %vm3436_vm6, 1.0, %v5207_v27 }
 0x311   :  { %v774_v40 = vmul.f32 %v3642_v3, %v759_v21  ;;  %v3676_v22 = vadd.f32 %v789_v33, %v667_v42  ;;  %5228 = vst [vmem:[#allocation73_spill] sm:$0xff] %v3690_v17  ;;  %v732_v42 = vadd.f32 %v724_v15, %v594_v32  ;;  %5230 = vst [vmem:[#allocation74_spill] sm:$0xff] %v3728_v6  ;;  %v3733_v29 = vsel %vm3582_vm9, 1.0, %v5207_v27 }
 0x312   :  { %5231 = vst [vmem:[#allocation75_spill] sm:$0xff] %v3733_v29  ;;  %v662_v2 = vmul.f32 %v3129_v4, %v646_v18  ;;  %v449_v15 = vmul.f32 %v3115_v55, %v3275_v39  ;;  %v463_v32 = vadd.f32 %v3125_v57, %v447_v30  ;;  %v450_v39 = vmul.f32 %v3115_v55, %v3301_v61  ;;  %v5233_v18 = vld [vmem:[#allocation19_spill] sm:$0xff] }
 0x313   :  { %v790_v35 = vmul.f32 %v3117_v0, %v774_v40  ;;  %v3693_v62 = vpop.permute.xlu1 %813  ;;  %v810_v1 = vpop.permute.xlu0 %809  ;;  %vm5097_vm12 = vcmp.lt.s32.totalorder %v3461_v31, 15  ;;  %vm832_vm2 = vcmp.lt.s32.totalorder %v3382_v59, 15  ;;  %v3766_v30 = vsel %vm3399_vm1, 1.0, %v5207_v27 }
 0x314   :  { %v824_v33 = vsel %vm821_vm11, %v810_v1, %v3693_v62  ;;  %v826_v40 = vsel %vm821_vm11, %v3659_v26, %v810_v1  ;;  %5232 = vst [vmem:[#allocation76_spill] sm:$0xff] %v3766_v30  ;;  %vm3781_vm5 = vmand %vm3506_vm0, %vm5097_vm12  ;;  %vm5237_vm12 = vcmp.lt.s32.totalorder %v3356_v34, 1  ;;  %vm5240_vm7 = vcmp.gt.s32.totalorder %v3461_v31, 0 }
 0x315   :  { %v846_v54 = vmul.f32 %v3687_v47, %v826_v40  ;;  %v847_v25 = vmul.f32 %v3690_v17, %v824_v33  ;;  %v3710_v63 = vadd.f32 %v790_v35, %v668_v44  ;;  %v733_v40 = vadd.f32 %v725_v19, %v595_v48 }
 0x316   :  { %v532_v35 = vmul.f32 %v3104_v8, %v516_v16  ;;  %v448_v8 = vmul.f32 %v3115_v55, %v3273_v38  ;;  %v3817_v37 = vsel %vm830_vm15, 1.0, %v5207_v27 }
 0x317   :  { %v862_v36 = vmul.f32 %v3133_v20, %v846_v54  ;;  %v863_v21 = vmul.f32 %v3133_v20, %v847_v25  ;;  %v3718_v3 = vpop.permute.xlu1 %474  ;;  %v471_v1 = vpop.permute.xlu0 %470  ;;  %5242 = vst [vmem:[#allocation79_spill] sm:$0xff] %v3817_v37 }
 0x318   :  { %v540_v54 = vadd.f32 %v532_v35, %v463_v32 }
 0x319   :  { %v3720_v47 = vadd.f32 %v862_v36, %v732_v42  ;;  %v3723_v44 = vadd.f32 %v863_v21, %v733_v40  ;;  %v3769_v36 = vadd.f32 %v5233_v18, %v449_v15  ;;  %v3772_v21 = vadd.f32 %v5233_v18, %v448_v8 }
 0x31a   :  { %v670_v48 = vadd.f32 %v662_v2, %v540_v54  ;;  %v3775_v40 = vadd.f32 %v5233_v18, %v450_v39  ;;  %v694_v2 = vsel %vm5237_vm12, %v3501_v24, %v3556_v7  ;;  %v562_v24 = vsel %vm561_vm13, %v3554_v41, %v3387_v13 }
 0x31b   :  { %v753_v19 = vpop.permute.xlu1 %752  ;;  %v3740_v16 = vpop.permute.xlu0 %482  ;;  %v564_v7 = vsel %vm561_vm13, %v3405_v51, %v3554_v41  ;;  %v3841_v13 = vsel %vm3781_vm5, 1.0, %v5207_v27  ;;  %v490_v51 = vsel %vm484_vm3, %v471_v1, %v3718_v3  ;;  %vm5245_vm12 = vcmp.lt.s32.totalorder %v3356_v34, 112 }
 0x31c   :  { %v757_v14 = vsel %vm5096_vm4, %v749_v5, %v753_v19  ;;  %v763_v33 = vsel %vm5096_vm4, %v753_v19, %v3602_v12  ;;  %v492_v4 = vsel %vm484_vm3, %v3740_v16, %v471_v1  ;;  %v451_v12 = vmul.f32 %v3115_v55, %v3283_v56  ;;  %vm836_vm4 = vmand %vm3399_vm1, %vm832_vm2  ;;  %5244 = vst [vmem:[#allocation81_spill] sm:$0xff] %v3841_v13 }
 0x31d   :  { %v775_v38 = vmul.f32 %v3728_v6, %v757_v14  ;;  %v776_v57 = vmul.f32 %v3733_v29, %v763_v33  ;;  %v3830_v19 = vsel %vm831_vm10, 1.0, %v5207_v27  ;;  %vm968_vm1 = vmand %vm3446_vm8, %vm830_vm15  ;;  %v3853_v52 = vsel %vm836_vm4, 1.0, %v5207_v27  ;;  %v5248_v33 = vld [vmem:[#allocation68_spill] sm:$0xff] }
 0x31e   :  { %5243 = vst [vmem:[#allocation80_spill] sm:$0xff] %v3830_v19  ;;  %5246 = vst [vmem:[#allocation82_spill] sm:$0xff] %v3853_v52  ;;  %v710_v32 = vmul.f32 %v3766_v30, %v694_v2  ;;  %vm959_vm8 = vcmp.lt.s32.totalorder %v3356_v34, 111  ;;  %v3868_v54 = vsel %vm968_vm1, 1.0, %v5207_v27  ;;  %v5288_v30 = vld [vmem:[#allocation47_spill] sm:$0xff]  ;;  %vm5292_vm5 = vcmp.lt.s32.totalorder %v3356_v34, 1 }
 0x31f   :  { %v818_v5 = vpop.permute.xlu1 %817  ;;  %v3757_v25 = vpop.permute.xlu0 %878  ;;  %v791_v42 = vmul.f32 %v3117_v0, %v775_v38  ;;  %v792_v61 = vmul.f32 %v3117_v0, %v776_v57  ;;  %v3788_v0 = vsel %vm3506_vm0, 1.0, %v5207_v27  ;;  %vm5238_vm0 = vcmp.gt.s32.totalorder %v3382_v59, 0  ;;  %vm969_vm15 = vmand %vm3488_vm14, %vm831_vm10  ;;  %5249 = vst [vmem:[#allocation62_spill] sm:$0xff] %v3868_v54 }
 0x320   :  { %5236 = vst [vmem:[#allocation19_spill] sm:$0xff] %v3788_v0  ;;  %v3807_v11 = vsel %vm5238_vm0, 1.0, %v5207_v27  ;;  %v828_v41 = vsel %vm821_vm11, %v818_v5, %v3659_v26  ;;  %v822_v14 = vsel %vm821_vm11, %v3693_v62, %v818_v5  ;;  %v711_v39 = vmul.f32 %v3788_v0, %v5248_v33  ;;  %v5250_v62 = vld [vmem:[#allocation66_spill] sm:$0xff]  ;;  %vm5252_vm4 = vmmov %vm5245_vm12  ;;  %v5255_v26 = vld [vmem:[#allocation20_spill] sm:$0xff] }
 0x321   :  { %v3792_v56 = vadd.f32 %v791_v42, %v3580_v49  ;;  %v3794_v35 = vadd.f32 %v792_v61, %v670_v48  ;;  %5239 = vst [vmem:[#allocation77_spill] sm:$0xff] %v3807_v11  ;;  %v3812_v49 = vsel %vm5240_vm7, 1.0, %v5207_v27  ;;  %v580_v38 = vmul.f32 %v3807_v11, %v564_v7  ;;  %v5251_v48 = vld [vmem:[#allocation64_spill] sm:$0xff]  ;;  %vm970_vm14 = vmand %vm3436_vm6, %vm832_vm2 }
 0x322   :  { %5241 = vst [vmem:[#allocation78_spill] sm:$0xff] %v3812_v49  ;;  %v581_v57 = vmul.f32 %v3812_v49, %v562_v24  ;;  %v518_v5 = vmul.f32 %v5250_v62, %v490_v51  ;;  %v517_v42 = vmul.f32 %v5251_v48, %v492_v4  ;;  %v849_v2 = vmul.f32 %v3841_v13, %v828_v41  ;;  %v5256_v48 = vld [vmem:[#allocation25_spill] sm:$0xff]  ;;  %v5295_v49 = vld [vmem:[#allocation35_spill] sm:$0xff]  ;;  %vm5296_vm7 = vmmov %vm5292_vm5 }
 0x323   :  { %v883_v15 = vpop.permute.xlu1 %882  ;;  %v3832_v8 = vpop.permute.xlu0 %886  ;;  %v3884_v7 = vadd.f32 %v5233_v18, %v451_v12  ;;  %v848_v24 = vmul.f32 %v3853_v52, %v822_v14  ;;  %v3888_v4 = vsel %vm969_vm15, 1.0, %v5207_v27  ;;  %v726_v51 = vmul.f32 %v3112_v60, %v710_v32  ;;  %vm5297_vm0 = vmmov %vm5252_vm4 }
 0x324   :  { %v899_v10 = vsel %vm5245_vm12, %v3757_v25, %v883_v15  ;;  %v897_v46 = vsel %vm5252_vm4, %v883_v15, %v3832_v8  ;;  %5253 = vst [vmem:[#allocation68_spill] sm:$0xff] %v3888_v4  ;;  %v3895_v41 = vsel %vm832_vm2, 1.0, %v5207_v27  ;;  %v727_v62 = vmul.f32 %v3112_v60, %v711_v39  ;;  %vm5298_vm1 = vmmov %vm5297_vm0 }
 0x325   :  { %v911_v1 = vmul.f32 %v3817_v37, %v899_v10  ;;  %5254 = vst [vmem:[#allocation66_spill] sm:$0xff] %v3895_v41  ;;  %v912_v12 = vmul.f32 %v3830_v19, %v897_v46  ;;  %v596_v18 = vmul.f32 %v3109_v9, %v580_v38  ;;  %v597_v14 = vmul.f32 %v3109_v9, %v581_v57  ;;  %v5280_v19 = vld [vmem:[#allocation18_spill] sm:$0xff]  ;;  %vm5315_vm4 = vmmov %vm5292_vm5 }
 0x326   :  { %v534_v37 = vmul.f32 %v5256_v48, %v518_v5  ;;  %v533_v32 = vmul.f32 %v5256_v48, %v517_v42  ;;  %v865_v60 = vmul.f32 %v3133_v20, %v849_v2  ;;  %v864_v38 = vmul.f32 %v3133_v20, %v848_v24  ;;  %v5273_v5 = vld [vmem:[#allocation13_spill] sm:$0xff] }
 0x327   :  { %v3877_v61 = vpop.permute.xlu1 %943  ;;  %v948_v55 = vpop.permute.xlu0 %947  ;;  %v927_v33 = vmul.f32 %v5255_v26, %v911_v1  ;;  %vm5259_vm6 = vcmp.lt.s32.totalorder %v3461_v31, 15 }
 0x328   :  { %v964_v10 = vsel %vm959_vm8, %v3877_v61, %v948_v55  ;;  %vm3928_vm10 = vmand %vm3582_vm9, %vm5259_vm6  ;;  %v3948_v24 = vadd.f32 %v534_v37, %v3769_v36  ;;  %v3951_v31 = vadd.f32 %v533_v32, %v3772_v21  ;;  %v5266_v36 = vld [vmem:[#allocation11_spill] sm:$0xff]  ;;  %vm5282_vm9 = vcmp.lt.s32.totalorder %v3356_v34, 15 }
 0x329   :  { %v980_v15 = vmul.f32 %v3868_v54, %v964_v10  ;;  %v5257_v10 = vld [vmem:[#allocation27_spill] sm:$0xff]  ;;  %vm5283_vm2 = vmmov %vm5282_vm9 }
 0x32a   :  { %vm5304_vm12 = vmmov %vm5283_vm2 }
 0x32b   :  { %v996_v54 = vmul.f32 %v5257_v10, %v980_v15  ;;  %v3905_v52 = vpop.permute.xlu1 %951  ;;  %v479_v17 = vpop.permute.xlu0 %478  ;;  %vm5305_vm15 = vmmov %vm5283_vm2 }
 0x32c   :  { %v962_v9 = vsel %vm959_vm8, %v948_v55, %v3905_v52  ;;  %v486_v1 = vsel %vm484_vm3, %v479_v17, %v3740_v16  ;;  %v488_v39 = vsel %vm484_vm3, %v3718_v3, %v479_v17  ;;  %v935_v16 = vadd.f32 %v927_v33, %v3676_v22  ;;  %vm5262_vm3 = vmmov %vm5259_vm6 }
 0x32d   :  { %v1004_v59 = vadd.f32 %v996_v54, %v3720_v47  ;;  %v519_v57 = vmul.f32 %v5258_v50, %v488_v39  ;;  %v981_v42 = vmul.f32 %v3888_v4, %v962_v9  ;;  %v928_v3 = vmul.f32 %v5255_v26, %v912_v12  ;;  %v5267_v12 = vld [vmem:[#allocation15_spill] sm:$0xff]  ;;  %v5272_v50 = vld [vmem:[#allocation17_spill] sm:$0xff]  ;;  %v5278_v4 = vld [vmem:[#allocation40_spill] sm:$0xff] }
 0x32e   :  { %v3938_v20 = vsel %vm5262_vm3, 1.0, %v5207_v27  ;;  %v3941_v47 = vsel %vm970_vm14, 1.0, %v5207_v27  ;;  %v734_v17 = vadd.f32 %v726_v51, %v596_v18  ;;  %v520_v58 = vmul.f32 %v3593_v53, %v486_v1 }
 0x32f   :  { %5263 = vst [vmem:[#allocation64_spill] sm:$0xff] %v3938_v20  ;;  %5264 = vst [vmem:[#allocation20_spill] sm:$0xff] %v3941_v47  ;;  %v548_v54 = vpop.permute.xlu1 %547  ;;  %v3944_v46 = vpop.permute.xlu0 %551  ;;  %v735_v55 = vadd.f32 %v727_v62, %v597_v14  ;;  %v1012_v22 = vadd.f32 %v1004_v59, %v935_v16  ;;  %v997_v2 = vmul.f32 %v5257_v10, %v981_v42  ;;  %v3957_v51 = vsel %vm3928_vm10, 1.0, %v5207_v27  ;;  %v5269_v14 = vld [vmem:[#allocation12_spill] sm:$0xff] }
 0x330   :  { %v535_v15 = vmul.f32 %v5256_v48, %v519_v57  ;;  %5265 = vst [vmem:[#allocation25_spill] sm:$0xff] %v3957_v51  ;;  %v567_v53 = vsel %vm561_vm13, %v548_v54, %v3944_v46  ;;  %v3964_v62 = vadd.f32 %v864_v38, %v734_v17  ;;  %v936_v21 = vadd.f32 %v928_v3, %v3710_v63  ;;  %v5271_v38 = vld [vmem:[#allocation30_spill] sm:$0xff]  ;;  %v5275_v17 = vld [vmem:[#allocation16_spill] sm:$0xff] }
 0x331   :  { %v3962_v33 = vadd.f32 %v865_v60, %v735_v55  ;;  %v3967_v37 = vrot.slane %v1012_v22, %v5266_v36  ;;  %v3971_v18 = vrot.slane %v1012_v22, %v5267_v12  ;;  %v3974_v32 = vrot.slane %v1012_v22, %v5269_v14  ;;  %v5285_v14 = vld [vmem:[#allocation65_spill] sm:$0xff] }
 0x332   :  { %v1005_v9 = vadd.f32 %v997_v2, %v3723_v44  ;;  %v536_v1 = vmul.f32 %v5256_v48, %v520_v58  ;;  %v1343_v57 = vrot.slane %v1012_v22, %v5272_v50  ;;  %v1375_v63 = vrot.slane %v1012_v22, %v5273_v5  ;;  %v5274_v48 = vld [vmem:[#allocation32_spill] sm:$0xff]  ;;  %v5277_v2 = vld [vmem:[#allocation34_spill] sm:$0xff] }
 0x333   :  { %5268 = vst [vmem:[#allocation27_spill] sm:$0xff] %v3971_v18  ;;  %5270 = vst [vmem:[#allocation61_spill] sm:$0xff] %v3974_v32  ;;  %v3978_v39 = vpop.permute.xlu1 %559  ;;  %v605_v60 = vpop.permute.xlu0 %604  ;;  %v1044_v59 = vmul.f32 %v3967_v37, %v5271_v38  ;;  %v3985_v16 = vadd.f32 %v535_v15, %v3775_v40  ;;  %v583_v42 = vmul.f32 %v3655_v43, %v567_v53  ;;  %v5279_v43 = vld [vmem:[#allocation42_spill] sm:$0xff]  ;;  %vm5320_vm14 = vcmp.lt.s32.totalorder %v3356_v34, 127 }
 0x334   :  { %v569_v44 = vsel %vm561_vm13, %v3978_v39, %v548_v54  ;;  %v1076_v3 = vmul.f32 %v3971_v18, %v5274_v48  ;;  %v3994_v58 = vrot.slane %v1012_v22, %v5275_v17  ;;  %v3996_v55 = vadd.f32 %v1005_v9, %v936_v21  ;;  %v5281_v17 = vld [vmem:[#allocation14_spill] sm:$0xff]  ;;  %vm5321_vm6 = vmmov %vm5320_vm14 }
 0x335   :  { %v1360_v27 = vmul.f32 %v1343_v57, %v5277_v2  ;;  %v1392_v38 = vmul.f32 %v1375_v63, %v5278_v4  ;;  %v582_v40 = vmul.f32 %v3551_v23, %v569_v44  ;;  %v1116_v53 = vmul.f32 %v3974_v32, %v5279_v43  ;;  %v5284_v43 = vld [vmem:[#allocation67_spill] sm:$0xff]  ;;  %v5290_v18 = vld [vmem:[#allocation22_spill] sm:$0xff]  ;;  %vm5325_vm10 = vmmov %vm5321_vm6 }
 0x336   :  { %5276 = vst [vmem:[#allocation11_spill] sm:$0xff] %v3994_v58  ;;  %v1084_v15 = vadd.f32 %v1076_v3, %v1044_v59  ;;  %v1415_v54 = vrot.slane %v1012_v22, %v5280_v19  ;;  %v1347_v48 = vrot.slane %v3996_v55, %v5272_v50  ;;  %v1379_v21 = vrot.slane %v3996_v55, %v5273_v5  ;;  %vm5326_vm3 = vmmov %vm5321_vm6 }
 0x337   :  { %v609_v13 = vpop.permute.xlu1 %608  ;;  %v617_v29 = vpop.permute.xlu0 %616  ;;  %v1400_v9 = vadd.f32 %v1392_v38, %v1360_v27  ;;  %v1455_v6 = vrot.slane %v1012_v22, %v5281_v17  ;;  %v1419_v3 = vrot.slane %v3996_v55, %v5280_v19  ;;  %v4020_v22 = vadd.f32 %v536_v1, %v3884_v7  ;;  %v5287_v38 = vld [vmem:[#allocation21_spill] sm:$0xff] }
 0x338   :  { %v624_v23 = vsel %vm5282_vm9, %v605_v60, %v609_v13  ;;  %v626_v59 = vsel %vm5283_vm2, %v617_v29, %v605_v60  ;;  %v1124_v44 = vadd.f32 %v1116_v53, %v1084_v15  ;;  %v1361_v0 = vmul.f32 %v1347_v48, %v5277_v2  ;;  %v5289_v15 = vld [vmem:[#allocation44_spill] sm:$0xff]  ;;  %vm5350_vm9 = vmmov %vm5297_vm0 }
 0x339   :  { %v648_v32 = vmul.f32 %v5284_v43, %v624_v23  ;;  %v647_v50 = vmul.f32 %v5285_v14, %v626_v59  ;;  %v1393_v27 = vmul.f32 %v1379_v21, %v5278_v4  ;;  %5286 = vst [vmem:[#allocation67_spill] sm:$0xff] %v4020_v22  ;;  %v599_v5 = vmul.f32 %v5287_v38, %v583_v42  ;;  %vm5384_vm2 = vmmov %vm5297_vm0 }
 0x33a   :  { %v1156_v60 = vmul.f32 %v3994_v58, %v5288_v30  ;;  %v1432_v53 = vmul.f32 %v1415_v54, %v5289_v15  ;;  %v1459_v4 = vrot.slane %v3996_v55, %v5281_v17  ;;  %v1433_v1 = vmul.f32 %v1419_v3, %v5289_v15  ;;  %v5293_v30 = vld [vmem:[#allocation38_spill] sm:$0xff] }
 0x33b   :  { %v664_v19 = vmul.f32 %v5290_v18, %v648_v32  ;;  %v663_v43 = vmul.f32 %v5290_v18, %v647_v50  ;;  %v678_v23 = vpop.permute.xlu1 %677  ;;  %v4028_v14 = vpop.permute.xlu0 %681  ;;  %v1401_v59 = vadd.f32 %v1393_v27, %v1361_v0  ;;  %v1356_v2 = vmul.f32 %v1343_v57, %v5293_v30  ;;  %v5294_v50 = vld [vmem:[#allocation49_spill] sm:$0xff] }
 0x33c   :  { %5291 = vst [vmem:[#allocation65_spill] sm:$0xff] %v4028_v14  ;;  %v697_v7 = vsel %vm5292_vm5, %v678_v23, %v4028_v14  ;;  %v1440_v42 = vadd.f32 %v1432_v53, %v1400_v9  ;;  %v598_v32 = vmul.f32 %v5287_v38, %v582_v40  ;;  %v4038_v58 = vadd.f32 %v1156_v60, %v1124_v44 }
 0x33d   :  { %v1472_v22 = vmul.f32 %v1455_v6, %v5294_v50  ;;  %v1357_v0 = vmul.f32 %v1347_v48, %v5293_v30  ;;  %v713_v27 = vmul.f32 %v3617_v45, %v697_v7  ;;  %v1441_v17 = vadd.f32 %v1433_v1, %v1401_v59  ;;  %v5301_v59 = vld [vmem:[#allocation23_spill] sm:$0xff] }
 0x33e   :  { %v1388_v11 = vmul.f32 %v1375_v63, %v5295_v49  ;;  %v1389_v14 = vmul.f32 %v1379_v21, %v5295_v49  ;;  %v4046_v15 = vadd.f32 %v664_v19, %v3948_v24  ;;  %v4049_v57 = vadd.f32 %v663_v43, %v3951_v31  ;;  %v5299_v31 = vld [vmem:[#allocation70_spill] sm:$0xff] }
 0x33f   :  { %v690_v40 = vpop.permute.xlu1 %689  ;;  %v891_v9 = vpop.permute.xlu0 %890  ;;  %v1473_v44 = vmul.f32 %v1459_v4, %v5294_v50  ;;  %v4052_v60 = vadd.f32 %v1472_v22, %v1440_v42  ;;  %v5300_v22 = vld [vmem:[#allocation37_spill] sm:$0xff]  ;;  %v729_v7 = vmul.f32 %v5301_v59, %v713_v27 }
 0x340   :  { %v699_v45 = vsel %vm5296_vm7, %v690_v40, %v678_v23  ;;  %v895_v63 = vsel %vm5297_vm0, %v3832_v8, %v891_v9  ;;  %v901_v19 = vsel %vm5298_vm1, %v891_v9, %v3757_v25  ;;  %v1396_v24 = vadd.f32 %v1388_v11, %v1356_v2 }
 0x341   :  { %v712_v48 = vmul.f32 %v5299_v31, %v699_v45  ;;  %v913_v21 = vmul.f32 %v3895_v41, %v895_v63  ;;  %v914_v53 = vmul.f32 %v3938_v20, %v901_v19  ;;  %v1428_v43 = vmul.f32 %v1415_v54, %v5300_v22  ;;  %v5303_v45 = vld [vmem:[#allocation41_spill] sm:$0xff] }
 0x342   :  { %v4067_v23 = vadd.f32 %v1473_v44, %v1441_v17  ;;  %v1397_v1 = vadd.f32 %v1389_v14, %v1357_v0  ;;  %v1429_v8 = vmul.f32 %v1419_v3, %v5300_v22  ;;  %v1468_v63 = vmul.f32 %v1455_v6, %v5303_v45  ;;  %v5306_v0 = vld [vmem:[#allocation63_spill] sm:$0xff] }
 0x343   :  { %v728_v42 = vmul.f32 %v5301_v59, %v712_v48  ;;  %v930_v25 = vmul.f32 %v5255_v26, %v914_v53  ;;  %v613_v11 = vpop.permute.xlu1 %612  ;;  %v956_v2 = vpop.permute.xlu0 %955  ;;  %v1436_v9 = vadd.f32 %v1428_v43, %v1396_v24  ;;  %v929_v14 = vmul.f32 %v5255_v26, %v913_v21  ;;  %v5307_v43 = vld [vmem:[#allocation31_spill] sm:$0xff] }
 0x344   :  { %5302 = vst [vmem:[#allocation21_spill] sm:$0xff] %v4067_v23  ;;  %v620_v19 = vsel %vm5304_vm12, %v613_v11, %v617_v29  ;;  %v622_v54 = vsel %vm5305_vm15, %v609_v13, %v613_v11  ;;  %v960_v17 = vsel %vm959_vm8, %v3905_v52, %v956_v2  ;;  %v966_v3 = vsel %vm959_vm8, %v956_v2, %v3877_v61 }
 0x345   :  { %v649_v27 = vmul.f32 %v5306_v0, %v622_v54  ;;  %v650_v6 = vmul.f32 %v3682_v28, %v620_v19  ;;  %v982_v44 = vmul.f32 %v3941_v47, %v960_v17  ;;  %v4087_v29 = vadd.f32 %v729_v7, %v599_v5  ;;  %v5312_v19 = vld [vmem:[#allocation27_spill] sm:$0xff]  ;;  %v5314_v54 = vld [vmem:[#allocation65_spill] sm:$0xff] }
 0x346   :  { %v983_v13 = vmul.f32 %v3957_v51, %v966_v3  ;;  %v938_v24 = vadd.f32 %v930_v25, %v3794_v35  ;;  %v1437_v31 = vadd.f32 %v1429_v8, %v1397_v1  ;;  %v1469_v26 = vmul.f32 %v1459_v4, %v5303_v45  ;;  %v5331_v51 = vld [vmem:[#allocation72_spill] sm:$0xff] }
 0x347   :  { %v665_v52 = vmul.f32 %v5290_v18, %v649_v27  ;;  %v998_v48 = vmul.f32 %v5257_v10, %v982_v44  ;;  %v743_v61 = vpop.permute.xlu1 %742  ;;  %v556_v53 = vpop.permute.xlu0 %555  ;;  %v4096_v28 = vrot.slane %v3996_v55, %v5266_v36  ;;  %v1048_v7 = vmul.f32 %v3967_v37, %v5307_v43  ;;  %v5317_v27 = vld [vmem:[#allocation19_spill] sm:$0xff]  ;;  %v5336_v45 = vld [vmem:[#allocation16_spill] sm:$0xff] }
 0x348   :  { %v999_v5 = vmul.f32 %v5257_v10, %v983_v13  ;;  %v563_v21 = vsel %vm561_vm13, %v556_v53, %v3978_v39  ;;  %v565_v35 = vsel %vm561_vm13, %v3944_v46, %v556_v53  ;;  %v4107_v1 = vadd.f32 %v728_v42, %v598_v32  ;;  %v5309_v32 = vld [vmem:[#allocation77_spill] sm:$0xff]  ;;  %vm5313_vm13 = vmmov %vm5292_vm5 }
 0x349   :  { %v666_v4 = vmul.f32 %v5290_v18, %v650_v6  ;;  %v937_v8 = vadd.f32 %v929_v14, %v3792_v56  ;;  %v4111_v25 = vadd.f32 %v1468_v63, %v1436_v9  ;;  %v1006_v11 = vadd.f32 %v998_v48, %v3964_v62  ;;  %v5310_v18 = vld [vmem:[#allocation78_spill] sm:$0xff]  ;;  %v5311_v63 = vld [vmem:[#allocation33_spill] sm:$0xff]  ;;  %v5316_v14 = vld [vmem:[#allocation76_spill] sm:$0xff] }
 0x34a   :  { %v1007_v10 = vadd.f32 %v999_v5, %v3962_v33  ;;  %v4115_v39 = vadd.f32 %v1469_v26, %v1437_v31  ;;  %v4119_v46 = vrot.slane %v3996_v55, %v5267_v12  ;;  %v4122_v37 = vadd.f32 %v665_v52, %v3985_v16  ;;  %v5318_v31 = vld [vmem:[#allocation67_spill] sm:$0xff]  ;;  %vm5386_vm5 = vmmov %vm5297_vm0 }
 0x34b   :  { %v584_v42 = vmul.f32 %v5309_v32, %v565_v35  ;;  %v585_v2 = vmul.f32 %v5310_v18, %v563_v21  ;;  %v751_v56 = vpop.permute.xlu1 %750  ;;  %v686_v9 = vpop.permute.xlu0 %685  ;;  %v1080_v33 = vmul.f32 %v5312_v19, %v5311_v63  ;;  %v4135_v16 = vadd.f32 %v1006_v11, %v937_v8  ;;  %v5322_v18 = vld [vmem:[#allocation69_spill] sm:$0xff] }
 0x34c   :  { %5308 = vst [vmem:[#allocation22_spill] sm:$0xff] %v4115_v39  ;;  %v693_v62 = vsel %vm5313_vm13, %v686_v9, %v690_v40  ;;  %v695_v17 = vsel %vm5315_vm4, %v5314_v54, %v686_v9  ;;  %v4133_v3 = vadd.f32 %v1007_v10, %v938_v24  ;;  %v1049_v44 = vmul.f32 %v4096_v28, %v5307_v43  ;;  %v5323_v9 = vld [vmem:[#allocation71_spill] sm:$0xff]  ;;  %v5330_v39 = vld [vmem:[#allocation61_spill] sm:$0xff] }
 0x34d   :  { %v714_v0 = vmul.f32 %v5316_v14, %v695_v17  ;;  %v715_v6 = vmul.f32 %v5317_v27, %v693_v62  ;;  %v1081_v13 = vmul.f32 %v4119_v46, %v5311_v63  ;;  %v4144_v40 = vadd.f32 %v666_v4, %v5318_v31  ;;  %v5319_v4 = vld [vmem:[#allocation12_spill] sm:$0xff] }
 0x34e   :  { %v4148_v52 = vrot.slane %v4135_v16, %v5266_v36  ;;  %v4152_v24 = vrot.slane %v4133_v3, %v5266_v36  ;;  %v4156_v48 = vrot.slane %v4135_v16, %v5267_v12  ;;  %v600_v53 = vmul.f32 %v5287_v38, %v584_v42 }
 0x34f   :  { %v601_v26 = vmul.f32 %v5287_v38, %v585_v2  ;;  %v812_v5 = vpop.permute.xlu1 %811  ;;  %v747_v21 = vpop.permute.xlu0 %746  ;;  %v4162_v35 = vrot.slane %v4133_v3, %v5267_v12  ;;  %v4166_v8 = vrot.slane %v3996_v55, %v5319_v4  ;;  %v730_v10 = vmul.f32 %v5301_v59, %v714_v0 }
 0x350   :  { %v760_v11 = vsel %vm5320_vm14, %v747_v21, %v751_v56  ;;  %v762_v32 = vsel %vm5321_vm6, %v743_v61, %v747_v21  ;;  %v1088_v42 = vadd.f32 %v1080_v33, %v1048_v7  ;;  %v731_v38 = vmul.f32 %v5301_v59, %v715_v6  ;;  %v5324_v7 = vld [vmem:[#allocation29_spill] sm:$0xff] }
 0x351   :  { %v777_v2 = vmul.f32 %v5322_v18, %v762_v32  ;;  %v778_v19 = vmul.f32 %v5323_v9, %v760_v11  ;;  %v1089_v62 = vadd.f32 %v1081_v13, %v1049_v44  ;;  %v1050_v54 = vmul.f32 %v4148_v52, %v5307_v43  ;;  %v5327_v18 = vld [vmem:[#allocation74_spill] sm:$0xff]  ;;  %v5328_v9 = vld [vmem:[#allocation75_spill] sm:$0xff] }
 0x352   :  { %v1051_v17 = vmul.f32 %v4152_v24, %v5307_v43  ;;  %v1082_v14 = vmul.f32 %v4156_v48, %v5311_v63  ;;  %v4184_v0 = vrot.slane %v4135_v16, %v5319_v4  ;;  %v1083_v44 = vmul.f32 %v4162_v35, %v5311_v63  ;;  %v5329_v63 = vld [vmem:[#allocation36_spill] sm:$0xff] }
 0x353   :  { %v793_v59 = vmul.f32 %v5324_v7, %v777_v2  ;;  %v794_v33 = vmul.f32 %v5324_v7, %v778_v19  ;;  %v755_v27 = vpop.permute.xlu1 %754  ;;  %v808_v6 = vpop.permute.xlu0 %807  ;;  %v4192_v13 = vrot.slane %v4133_v3, %v5319_v4  ;;  %v738_v43 = vadd.f32 %v730_v10, %v600_v53 }
 0x354   :  { %v758_v31 = vsel %vm5325_vm10, %v751_v56, %v755_v27  ;;  %v764_v21 = vsel %vm5326_vm3, %v755_v27, %v743_v61  ;;  %v827_v11 = vsel %vm821_vm11, %v808_v6, %v812_v5  ;;  %v739_v32 = vadd.f32 %v731_v38, %v601_v26 }
 0x355   :  { %v779_v2 = vmul.f32 %v5327_v18, %v758_v31  ;;  %v780_v19 = vmul.f32 %v5328_v9, %v764_v21  ;;  %v1120_v23 = vmul.f32 %v5330_v39, %v5329_v63  ;;  %v850_v47 = vmul.f32 %v5331_v51, %v827_v11  ;;  %v5333_v21 = vld [vmem:[#allocation81_spill] sm:$0xff]  ;;  %v5335_v18 = vld [vmem:[#allocation82_spill] sm:$0xff] }
 0x356   :  { %v1090_v53 = vadd.f32 %v1082_v14, %v1050_v54  ;;  %v1121_v56 = vmul.f32 %v4166_v8, %v5329_v63  ;;  %v1122_v61 = vmul.f32 %v4184_v0, %v5329_v63  ;;  %v4210_v10 = vadd.f32 %v793_v59, %v4049_v57  ;;  %v5332_v59 = vld [vmem:[#allocation24_spill] sm:$0xff] }
 0x357   :  { %v4213_v26 = vadd.f32 %v794_v33, %v4046_v15  ;;  %v820_v38 = vpop.permute.xlu1 %819  ;;  %v816_v27 = vpop.permute.xlu0 %815  ;;  %v1091_v31 = vadd.f32 %v1083_v44, %v1051_v17  ;;  %v1123_v39 = vmul.f32 %v4192_v13, %v5329_v63  ;;  %v795_v51 = vmul.f32 %v5324_v7, %v779_v2  ;;  %v5334_v44 = vld [vmem:[#allocation73_spill] sm:$0xff] }
 0x358   :  { %v829_v54 = vsel %vm821_vm11, %v820_v38, %v808_v6  ;;  %v823_v14 = vsel %vm821_vm11, %v816_v27, %v820_v38  ;;  %v825_v57 = vsel %vm821_vm11, %v812_v5, %v816_v27  ;;  %v796_v15 = vmul.f32 %v5324_v7, %v780_v19  ;;  %vm5339_vm11 = vmmov %vm5297_vm0 }
 0x359   :  { %v866_v33 = vmul.f32 %v5332_v59, %v850_v47  ;;  %v853_v17 = vmul.f32 %v5333_v21, %v829_v54  ;;  %v851_v11 = vmul.f32 %v5334_v44, %v825_v57  ;;  %v852_v9 = vmul.f32 %v5335_v18, %v823_v14  ;;  %v5343_v14 = vld [vmem:[#allocation11_spill] sm:$0xff]  ;;  %v5352_v18 = vld [vmem:[#allocation80_spill] sm:$0xff] }
 0x35a   :  { %v1128_v2 = vadd.f32 %v1120_v23, %v1088_v42  ;;  %v1129_v63 = vadd.f32 %v1121_v56, %v1089_v62  ;;  %v4231_v6 = vrot.slane %v3996_v55, %v5336_v45  ;;  %v1130_v47 = vadd.f32 %v1122_v61, %v1090_v53  ;;  %v5342_v61 = vld [vmem:[#allocation39_spill] sm:$0xff] }
 0x35b   :  { %v869_v38 = vmul.f32 %v5332_v59, %v853_v17  ;;  %v867_v5 = vmul.f32 %v5332_v59, %v851_v11  ;;  %v885_v27 = vpop.permute.xlu1 %884  ;;  %v4235_v7 = vpop.permute.xlu0 %880  ;;  %v4239_v19 = vrot.slane %v4135_v16, %v5336_v45  ;;  %v4242_v54 = vadd.f32 %v795_v51, %v4122_v37 }
 0x35c   :  { %5337 = vst [vmem:[#allocation38_spill] sm:$0xff] %v4235_v7  ;;  %v868_v23 = vmul.f32 %v5332_v59, %v852_v9  ;;  %v900_v55 = vsel %vm5339_vm11, %v4235_v7, %v885_v27  ;;  %v4250_v42 = vrot.slane %v4133_v3, %v5336_v45  ;;  %v4253_v62 = vadd.f32 %v796_v15, %v4144_v40  ;;  %v5346_v59 = vld [vmem:[#allocation79_spill] sm:$0xff] }
 0x35d   :  { %5338 = vst [vmem:[#allocation49_spill] sm:$0xff] %v4242_v54  ;;  %v874_v53 = vadd.f32 %v866_v33, %v4107_v1  ;;  %v1131_v56 = vadd.f32 %v1123_v39, %v1091_v31  ;;  %v1160_v37 = vmul.f32 %v5343_v14, %v5342_v61  ;;  %v4258_v51 = vadd.f32 %v869_v38, %v739_v32  ;;  %v5349_v31 = vld [vmem:[#allocation17_spill] sm:$0xff]  ;;  %v5359_v54 = vld [vmem:[#allocation14_spill] sm:$0xff] }
 0x35e   :  { %5340 = vst [vmem:[#allocation35_spill] sm:$0xff] %v4250_v42  ;;  %5341 = vst [vmem:[#allocation70_spill] sm:$0xff] %v4253_v62  ;;  %v4261_v57 = vadd.f32 %v867_v5, %v4087_v29  ;;  %v915_v21 = vmul.f32 %v5346_v59, %v900_v55  ;;  %v1161_v17 = vmul.f32 %v4231_v6, %v5342_v61  ;;  %v5353_v5 = vld [vmem:[#allocation34_spill] sm:$0xff]  ;;  %vm1839_vm7 = vcmask 31744  }
 0x35f   :  { %5344 = vst [vmem:[#allocation37_spill] sm:$0xff] %v4258_v51  ;;  %v4266_v44 = vadd.f32 %v868_v23, %v738_v43  ;;  %v4268_v40 = vpop.permute.xlu0 %888  ;;  %v1162_v1 = vmul.f32 %v4239_v19, %v5342_v61  ;;  %v1351_v39 = vrot.slane %v4135_v16, %v5349_v31  ;;  %v1355_v32 = vrot.slane %v4133_v3, %v5349_v31  ;;  %v5351_v43 = vld [vmem:[#allocation13_spill] sm:$0xff]  ;;  %v5355_v59 = vld [vmem:[#allocation18_spill] sm:$0xff] }
 0x360   :  { %5345 = vst [vmem:[#allocation23_spill] sm:$0xff] %v4261_v57  ;;  %5348 = vst [vmem:[#allocation31_spill] sm:$0xff] %v4268_v40  ;;  %v898_v29 = vsel %vm5350_vm9, %v885_v27, %v4268_v40  ;;  %v1163_v15 = vmul.f32 %v4250_v42, %v5342_v61  ;;  %v4283_v33 = vrot.slane %v4135_v16, %v5351_v43  ;;  %v5354_v27 = vld [vmem:[#allocation40_spill] sm:$0xff]  ;;  %v5361_v40 = vld [vmem:[#allocation62_spill] sm:$0xff]  ;;  %vm2447_vm10 = vcmask 1043456  }
 0x361   :  { %5347 = vst [vmem:[#allocation63_spill] sm:$0xff] %v4266_v44  ;;  %v4287_v11 = vrot.slane %v4133_v3, %v5351_v43  ;;  %v916_v9 = vmul.f32 %v5352_v18, %v898_v29  ;;  %v4290_v38 = vadd.f32 %v1160_v37, %v1128_v2  ;;  %v1362_v23 = vmul.f32 %v1351_v39, %v5353_v5  ;;  %v5356_v2 = vld [vmem:[#allocation26_spill] sm:$0xff]  ;;  %v4307_v29 = vpop.permute.xlu1 %945 }
 0x362   :  { %v1363_v55 = vmul.f32 %v1355_v32, %v5353_v5  ;;  %v1394_v14 = vmul.f32 %v4283_v33, %v5354_v27  ;;  %v4300_v51 = vrot.slane %v4135_v16, %v5355_v59  ;;  %v4304_v44 = vrot.slane %v4133_v3, %v5355_v59 }
 0x363   :  { %v1395_v61 = vmul.f32 %v4287_v11, %v5354_v27  ;;  %v931_v37 = vmul.f32 %v5356_v2, %v915_v21  ;;  %v4309_v18 = vpop.permute.xlu0 %949  ;;  %v4311_v5 = vadd.f32 %v1161_v17, %v1129_v63  ;;  %v4313_v62 = vadd.f32 %v1162_v1, %v1130_v47  ;;  %v5360_v21 = vld [vmem:[#allocation44_spill] sm:$0xff] }
 0x364   :  { %v4317_v27 = vrot.slane %v4135_v16, %v5359_v54  ;;  %v965_v20 = vsel %vm959_vm8, %v4307_v29, %v4309_v18  ;;  %v1402_v41 = vadd.f32 %v1394_v14, %v1362_v23  ;;  %v1434_v7 = vmul.f32 %v4300_v51, %v5360_v21  ;;  %v5362_v16 = vld [vmem:[#allocation30_spill] sm:$0xff] }
 0x365   :  { %5357 = vst [vmem:[#allocation77_spill] sm:$0xff] %v4311_v5  ;;  %5358 = vst [vmem:[#allocation78_spill] sm:$0xff] %v4313_v62  ;;  %v1403_v57 = vadd.f32 %v1395_v61, %v1363_v55  ;;  %v984_v42 = vmul.f32 %v5361_v40, %v965_v20  ;;  %v1435_v63 = vmul.f32 %v4304_v44, %v5360_v21  ;;  %v5363_v20 = vld [vmem:[#allocation28_spill] sm:$0xff] }
 0x366   :  { %v4330_v47 = vrot.slane %v4133_v3, %v5359_v54  ;;  %v1045_v17 = vmul.f32 %v4096_v28, %v5362_v16  ;;  %v932_v1 = vmul.f32 %v5356_v2, %v916_v9  ;;  %v1442_v62 = vadd.f32 %v1434_v7, %v1402_v41  ;;  %v5364_v61 = vld [vmem:[#allocation32_spill] sm:$0xff]  ;;  %v5366_v9 = vld [vmem:[#allocation42_spill] sm:$0xff] }
 0x367   :  { %v1046_v23 = vmul.f32 %v4148_v52, %v5362_v16  ;;  %v1047_v55 = vmul.f32 %v4152_v24, %v5362_v16  ;;  %v1000_v40 = vmul.f32 %v5363_v20, %v984_v42  ;;  %v1443_v14 = vadd.f32 %v1435_v63, %v1403_v57 }
 0x368   :  { %v1077_v21 = vmul.f32 %v4119_v46, %v5364_v61  ;;  %v1078_v3 = vmul.f32 %v4156_v48, %v5364_v61  ;;  %v939_v28 = vadd.f32 %v931_v37, %v4210_v10  ;;  %v4345_v5 = vadd.f32 %v1163_v15, %v1131_v56 }
 0x369   :  { %v1474_v41 = vmul.f32 %v4317_v27, %v5294_v50  ;;  %v1079_v52 = vmul.f32 %v4162_v35, %v5364_v61  ;;  %v1008_v24 = vadd.f32 %v1000_v40, %v874_v53  ;;  %v1475_v7 = vmul.f32 %v4330_v47, %v5294_v50 }
 0x36a   :  { %5365 = vst [vmem:[#allocation33_spill] sm:$0xff] %v4345_v5  ;;  %v1085_v42 = vadd.f32 %v1077_v21, %v1045_v17  ;;  %v1086_v57 = vadd.f32 %v1078_v3, %v1046_v23  ;;  %v4354_v46 = vadd.f32 %v932_v1, %v4213_v26  ;;  %v1117_v10 = vmul.f32 %v4166_v8, %v5366_v9  ;;  %v5369_v26 = vld [vmem:[#allocation47_spill] sm:$0xff]  ;;  %v5379_v5 = vld [vmem:[#allocation54_spill] sm:$0xff] }
 0x36b   :  { %v1087_v48 = vadd.f32 %v1079_v52, %v1047_v55  ;;  %v1118_v56 = vmul.f32 %v4184_v0, %v5366_v9  ;;  %v1016_v15 = vadd.f32 %v1008_v24, %v939_v28  ;;  %v4360_v37 = vadd.f32 %v1474_v41, %v1442_v62  ;;  %v5372_v41 = vld [vmem:[#allocation48_spill] sm:$0xff] }
 0x36c   :  { %v4362_v35 = vadd.f32 %v1475_v7, %v1443_v14  ;;  %v1119_v50 = vmul.f32 %v4192_v13, %v5366_v9  ;;  %v1125_v53 = vadd.f32 %v1117_v10, %v1085_v42  ;;  %v1157_v16 = vmul.f32 %v4231_v6, %v5369_v26  ;;  %v5370_v14 = vld [vmem:[#allocation43_spill] sm:$0xff]  ;;  %v5373_v7 = vld [vmem:[#allocation46_spill] sm:$0xff]  ;;  %v5376_v9 = vld [vmem:[#allocation52_spill] sm:$0xff] }
 0x36d   :  { %5367 = vst [vmem:[#allocation27_spill] sm:$0xff] %v4360_v37  ;;  %v4366_v63 = vadd.f32 %v1118_v56, %v1086_v57  ;;  %v1158_v8 = vmul.f32 %v4239_v19, %v5369_v26  ;;  %v1183_v17 = vrot.slane %v1016_v15, %v5266_v36  ;;  %v1223_v0 = vrot.slane %v1016_v15, %v5267_v12  ;;  %v5371_v19 = vld [vmem:[#allocation45_spill] sm:$0xff]  ;;  %v5374_v42 = vld [vmem:[#allocation50_spill] sm:$0xff]  ;;  %v5375_v57 = vld [vmem:[#allocation56_spill] sm:$0xff] }
 0x36e   :  { %5368 = vst [vmem:[#allocation65_spill] sm:$0xff] %v4362_v35  ;;  %v1263_v62 = vrot.slane %v1016_v15, %v5319_v4  ;;  %v1127_v1 = vadd.f32 %v1119_v50, %v1087_v48  ;;  %v1495_v23 = vrot.slane %v1016_v15, %v5349_v31  ;;  %v1535_v13 = vrot.slane %v1016_v15, %v5351_v43 }
 0x36f   :  { %v1358_v55 = vmul.f32 %v1351_v39, %v5293_v30  ;;  %v1359_v40 = vmul.f32 %v1355_v32, %v5293_v30  ;;  %v1196_v6 = vmul.f32 %v1183_v17, %v5370_v14  ;;  %v1575_v61 = vrot.slane %v1016_v15, %v5355_v59  ;;  %v5378_v14 = vld [vmem:[#allocation55_spill] sm:$0xff] }
 0x370   :  { %v1200_v21 = vmul.f32 %v1183_v17, %v5371_v19  ;;  %v1390_v3 = vmul.f32 %v4283_v33, %v5295_v49  ;;  %v4384_v28 = vpop.permute.xlu1 %1293  ;;  %v1236_v52 = vmul.f32 %v1223_v0, %v5372_v41  ;;  %v4388_v24 = vrot.slane %v1016_v15, %v5336_v45  ;;  %v5377_v17 = vld [vmem:[#allocation51_spill] sm:$0xff] }
 0x371   :  { %v1512_v39 = vmul.f32 %v1495_v23, %v5373_v7  ;;  %v1508_v30 = vmul.f32 %v1495_v23, %v5374_v42  ;;  %v1204_v32 = vadd.f32 %v1196_v6, %v4038_v58  ;;  %v1276_v48 = vmul.f32 %v1263_v62, %v5375_v57  ;;  %v5380_v6 = vld [vmem:[#allocation53_spill] sm:$0xff] }
 0x372   :  { %v1552_v10 = vmul.f32 %v1535_v13, %v5376_v9  ;;  %v1208_v56 = vadd.f32 %v1200_v21, %v4290_v38  ;;  %v1548_v41 = vmul.f32 %v1535_v13, %v5377_v17  ;;  %v1240_v35 = vmul.f32 %v1223_v0, %v5378_v14 }
 0x373   :  { %v1520_v33 = vadd.f32 %v1512_v39, %v4052_v60  ;;  %v1516_v50 = vadd.f32 %v1508_v30, %v4111_v25  ;;  %v1244_v37 = vadd.f32 %v1236_v52, %v1204_v32  ;;  %v1316_v23 = vmul.f32 %v4388_v24, %v4384_v28  ;;  %v5381_v39 = vld [vmem:[#allocation68_spill] sm:$0xff] }
 0x374   :  { %v1588_v58 = vmul.f32 %v1575_v61, %v5379_v5  ;;  %v1280_v57 = vmul.f32 %v1263_v62, %v5380_v6  ;;  %v954_v19 = vpop.permute.xlu1 %953  ;;  %v4404_v4 = vpop.permute.xlu0 %1569  ;;  %v1248_v60 = vadd.f32 %v1240_v35, %v1208_v56  ;;  %v1391_v25 = vmul.f32 %v4287_v11, %v5295_v49  ;;  %v5387_v56 = vld [vmem:[#allocation23_spill] sm:$0xff] }
 0x375   :  { %v1560_v45 = vadd.f32 %v1552_v10, %v1520_v33  ;;  %v1556_v38 = vadd.f32 %v1548_v41, %v1516_v50  ;;  %v1284_v13 = vadd.f32 %v1276_v48, %v1244_v37  ;;  %v963_v0 = vsel %vm959_vm8, %v4309_v18, %v954_v19  ;;  %v5383_v41 = vld [vmem:[#allocation31_spill] sm:$0xff]  ;;  %v5388_v50 = vld [vmem:[#allocation66_spill] sm:$0xff] }
 0x376   :  { %v1592_v21 = vmul.f32 %v1575_v61, %v4404_v4  ;;  %v1398_v52 = vadd.f32 %v1390_v3, %v1358_v55  ;;  %v985_v30 = vmul.f32 %v5381_v39, %v963_v0  ;;  %v4413_v32 = vadd.f32 %v1280_v57, %v1248_v60  ;;  %v5382_v61 = vld [vmem:[#allocation35_spill] sm:$0xff]  ;;  %v5385_v57 = vld [vmem:[#allocation38_spill] sm:$0xff]  ;;  %v5390_v60 = vld [vmem:[#allocation41_spill] sm:$0xff] }
 0x377   :  { %v1596_v62 = vadd.f32 %v1588_v58, %v1556_v38  ;;  %v1399_v10 = vadd.f32 %v1391_v25, %v1359_v40  ;;  %v4415_v33 = vadd.f32 %v1316_v23, %v1284_v13  ;;  %v1430_v49 = vmul.f32 %v4300_v51, %v5300_v22  ;;  %v5389_v58 = vld [vmem:[#allocation64_spill] sm:$0xff] }
 0x378   :  { %v4417_v35 = vadd.f32 %v1592_v21, %v1560_v45  ;;  %v1431_v11 = vmul.f32 %v4304_v44, %v5300_v22  ;;  %v1001_v18 = vmul.f32 %v5363_v20, %v985_v30  ;;  %v893_v37 = vpop.permute.xlu1 %892  ;;  %v4425_v55 = vrot.slane %v1016_v15, %v5359_v54 }
 0x379   :  { %v1159_v3 = vmul.f32 %v5382_v61, %v5369_v26  ;;  %v4429_v40 = vadd.f32 %v1157_v16, %v1125_v53  ;;  %v896_v45 = vsel %vm5384_vm2, %v5383_v41, %v893_v37  ;;  %v902_v51 = vsel %vm5386_vm5, %v893_v37, %v5385_v57  ;;  %v4437_v22 = vpop.permute.xlu0 %1605 }
 0x37a   :  { %v1438_v44 = vadd.f32 %v1430_v49, %v1398_v52  ;;  %v1439_v48 = vadd.f32 %v1431_v11, %v1399_v10  ;;  %v1009_v15 = vadd.f32 %v1001_v18, %v5387_v56  ;;  %v917_v23 = vmul.f32 %v5388_v50, %v896_v45  ;;  %v5392_v49 = vld [vmem:[#allocation70_spill] sm:$0xff]  ;;  %v5393_v18 = vld [vmem:[#allocation20_spill] sm:$0xff] }
 0x37b   :  { %v918_v26 = vmul.f32 %v5389_v58, %v902_v51  ;;  %v1628_v53 = vmul.f32 %v4425_v55, %v4437_v22  ;;  %v4445_v16 = vadd.f32 %v1158_v8, %v4366_v63  ;;  %v4447_v38 = vadd.f32 %v1159_v3, %v1127_v1 }
 0x37c   :  { %v1470_v25 = vmul.f32 %v4317_v27, %v5390_v60  ;;  %v1471_v13 = vmul.f32 %v4330_v47, %v5390_v60  ;;  %v1017_v0 = vadd.f32 %v1009_v15, %v4354_v46  ;;  %v933_v21 = vmul.f32 %v5356_v2, %v917_v23  ;;  %v958_v30 = vpop.permute.xlu1 %957  ;;  %v5395_v15 = vld [vmem:[#allocation21_spill] sm:$0xff] }
 0x37d   :  { %v934_v52 = vmul.f32 %v5356_v2, %v918_v26  ;;  %v4456_v39 = vadd.f32 %v1628_v53, %v1596_v62  ;;  %v961_v63 = vsel %vm959_vm8, %v954_v19, %v958_v30  ;;  %v967_v8 = vsel %vm959_vm8, %v958_v30, %v4307_v29  ;;  %v5391_v62 = vld [vmem:[#allocation49_spill] sm:$0xff]  ;;  %v5396_v53 = vld [vmem:[#allocation22_spill] sm:$0xff] }
 0x37e   :  { %v4463_v27 = vadd.f32 %v1470_v25, %v1438_v44  ;;  %v4465_v1 = vadd.f32 %v1471_v13, %v1439_v48  ;;  %v1499_v47 = vrot.slane %v1017_v0, %v5349_v31  ;;  %v1539_v46 = vrot.slane %v1017_v0, %v5351_v43  ;;  %v5394_v29 = vld [vmem:[#allocation25_spill] sm:$0xff]  ;;  %v5397_v25 = vld [vmem:[#allocation63_spill] sm:$0xff] }
 0x37f   :  { %v1579_v2 = vrot.slane %v1017_v0, %v5355_v59  ;;  %v941_v10 = vadd.f32 %v933_v21, %v5391_v62  ;;  %v942_v11 = vadd.f32 %v934_v52, %v5392_v49  ;;  %v4473_v19 = vrot.slane %v1017_v0, %v5359_v54  ;;  %v5398_v52 = vld [vmem:[#allocation12_spill] sm:$0xff] }
 0x380   :  { %v986_v37 = vmul.f32 %v5393_v18, %v961_v63  ;;  %v987_v61 = vmul.f32 %v5394_v29, %v967_v8  ;;  %v1513_v3 = vmul.f32 %v1499_v47, %v5373_v7  ;;  %v1553_v41 = vmul.f32 %v1539_v46, %v5376_v9  ;;  %v1298_v21 = vpop.permute.xlu1 %1297  ;;  %v5399_v63 = vld [vmem:[#allocation16_spill] sm:$0xff] }
 0x381   :  { %v1589_v45 = vmul.f32 %v1579_v2, %v5379_v5  ;;  %v1593_v57 = vmul.f32 %v1579_v2, %v4404_v4  ;;  %v1509_v51 = vmul.f32 %v1499_v47, %v5374_v42  ;;  %v1549_v44 = vmul.f32 %v1539_v46, %v5377_v17  ;;  %v5400_v46 = vld [vmem:[#allocation37_spill] sm:$0xff] }
 0x382   :  { %v1629_v48 = vmul.f32 %v4473_v19, %v4437_v22  ;;  %v1002_v56 = vmul.f32 %v5363_v20, %v986_v37  ;;  %v1521_v50 = vadd.f32 %v1513_v3, %v5395_v15  ;;  %v1003_v23 = vmul.f32 %v5363_v20, %v987_v61  ;;  %v5401_v20 = vld [vmem:[#allocation45_spill] sm:$0xff] }
 0x383   :  { %v4489_v58 = vrot.slane %v1017_v0, %v5266_v36  ;;  %v4492_v26 = vrot.slane %v1017_v0, %v5267_v12  ;;  %v1517_v60 = vadd.f32 %v1509_v51, %v5396_v53  ;;  %v4497_v30 = vrot.slane %v1017_v0, %v5398_v52 }
 0x384   :  { %v1010_v13 = vadd.f32 %v1002_v56, %v5397_v25  ;;  %v1307_v8 = vrot.slane %v1017_v0, %v5399_v63  ;;  %v1561_v47 = vadd.f32 %v1553_v41, %v1521_v50  ;;  %v1011_v2 = vadd.f32 %v1003_v23, %v5400_v46  ;;  %v5402_v41 = vld [vmem:[#allocation77_spill] sm:$0xff] }
 0x385   :  { %v1201_v62 = vmul.f32 %v4489_v58, %v5401_v20  ;;  %v1241_v49 = vmul.f32 %v4492_v26, %v5378_v14  ;;  %v1557_v18 = vadd.f32 %v1549_v44, %v1517_v60  ;;  %v1281_v29 = vmul.f32 %v4497_v30, %v5380_v6 }
 0x386   :  { %v1018_v37 = vadd.f32 %v1010_v13, %v941_v10  ;;  %v4508_v61 = vmul.f32 %v1307_v8, %v4384_v28  ;;  %v4510_v3 = vadd.f32 %v1593_v57, %v1561_v47  ;;  %v1019_v0 = vadd.f32 %v1011_v2, %v942_v11 }
 0x387   :  { %v1209_v51 = vadd.f32 %v1201_v62, %v5402_v41  ;;  %v1320_v56 = vmul.f32 %v4388_v24, %v1298_v21  ;;  %v1597_v15 = vadd.f32 %v1589_v45, %v1557_v18  ;;  %v5403_v62 = vld [vmem:[#allocation78_spill] sm:$0xff]  ;;  %v1321_v41 = vmul.f32 %v1307_v8, %v1298_v21 }
 0x388   :  { %v1191_v50 = vrot.slane %v1018_v37, %v5266_v36  ;;  %v4516_v23 = vrot.slane %v1018_v37, %v5267_v12  ;;  %v4519_v10 = vrot.slane %v1018_v37, %v5398_v52  ;;  %v1195_v44 = vrot.slane %v1019_v0, %v5266_v36 }
 0x389   :  { %v4523_v53 = vrot.slane %v1019_v0, %v5267_v12  ;;  %v1249_v57 = vadd.f32 %v1241_v49, %v1209_v51  ;;  %v4526_v11 = vrot.slane %v1019_v0, %v5398_v52  ;;  %v4528_v60 = vadd.f32 %v1629_v48, %v1597_v15  ;;  %v5404_v51 = vld [vmem:[#allocation33_spill] sm:$0xff] }
 0x38a   :  { %v1202_v24 = vmul.f32 %v1191_v50, %v5401_v20  ;;  %v1242_v45 = vmul.f32 %v4516_v23, %v5378_v14  ;;  %v1282_v25 = vmul.f32 %v4519_v10, %v5380_v6  ;;  %v1203_v13 = vmul.f32 %v1195_v44, %v5401_v20 }
 0x38b   :  { %v1243_v47 = vmul.f32 %v4523_v53, %v5378_v14  ;;  %v1283_v46 = vmul.f32 %v4526_v11, %v5380_v6  ;;  %v1289_v2 = vadd.f32 %v1281_v29, %v1249_v57  ;;  %v1311_v49 = vrot.slane %v1018_v37, %v5399_v63 }
 0x38c   :  { %v1210_v48 = vadd.f32 %v1202_v24, %v5403_v62  ;;  %v1315_v18 = vrot.slane %v1019_v0, %v5399_v63  ;;  %v1211_v15 = vadd.f32 %v1203_v13, %v5404_v51  ;;  %v4545_v12 = vadd.f32 %v1320_v56, %v4413_v32  ;;  %v1610_v63 = vpop.permute.xlu1 %1609 }
 0x38d   :  { %v1503_v20 = vrot.slane %v1018_v37, %v5349_v31  ;;  %v1507_v14 = vrot.slane %v1019_v0, %v5349_v31  ;;  %v4550_v6 = vmul.f32 %v1311_v49, %v4384_v28  ;;  %v1322_v57 = vmul.f32 %v1311_v49, %v1298_v21  ;;  %v5405_v31 = vld [vmem:[#allocation27_spill] sm:$0xff] }
 0x38e   :  { %v1250_v52 = vadd.f32 %v1242_v45, %v1210_v48  ;;  %v4553_v29 = vmul.f32 %v1315_v18, %v4384_v28  ;;  %v1251_v24 = vadd.f32 %v1243_v47, %v1211_v15  ;;  %v1323_v62 = vmul.f32 %v1315_v18, %v1298_v21 }
 0x38f   :  { %v4555_v8 = vadd.f32 %v1321_v41, %v1289_v2  ;;  %v1514_v13 = vmul.f32 %v1503_v20, %v5373_v7  ;;  %v1515_v56 = vmul.f32 %v1507_v14, %v5373_v7  ;;  %v1543_v51 = vrot.slane %v1018_v37, %v5351_v43  ;;  %v5406_v2 = vld [vmem:[#allocation65_spill] sm:$0xff] }
 0x390   :  { %v1290_v32 = vadd.f32 %v1282_v25, %v1250_v52  ;;  %v1547_v45 = vrot.slane %v1019_v0, %v5351_v43  ;;  %v1291_v48 = vadd.f32 %v1283_v46, %v1251_v24  ;;  %v1583_v28 = vrot.slane %v1018_v37, %v5355_v59 }
 0x391   :  { %v1522_v34 = vadd.f32 %v1514_v13, %v5405_v31  ;;  %v1587_v47 = vrot.slane %v1019_v0, %v5355_v59  ;;  %v1523_v49 = vadd.f32 %v1515_v56, %v5406_v2  ;;  %v1554_v18 = vmul.f32 %v1543_v51, %v5376_v9  ;;  %v5407_v2 = vld [vmem:[#allocation43_spill] sm:$0xff] }
 0x392   :  { %v1330_v21 = vadd.f32 %v1322_v57, %v1290_v32  ;;  %v1555_v52 = vmul.f32 %v1547_v45, %v5376_v9  ;;  %v1331_v7 = vadd.f32 %v1323_v62, %v1291_v48  ;;  %v1594_v25 = vmul.f32 %v1583_v28, %v4404_v4 }
 0x393   :  { %v1595_v41 = vmul.f32 %v1587_v47, %v4404_v4  ;;  %v1623_v46 = vrot.slane %v1018_v37, %v5359_v54  ;;  %v1562_v15 = vadd.f32 %v1554_v18, %v1522_v34  ;;  %v1627_v24 = vrot.slane %v1019_v0, %v5359_v54 }
 0x394   :  { %v1563_v31 = vadd.f32 %v1555_v52, %v1523_v49  ;;  %v1632_v13 = vmul.f32 %v4425_v55, %v1610_v63  ;;  %v1633_v32 = vmul.f32 %v4473_v19, %v1610_v63  ;;  %v1197_v9 = vmul.f32 %v4489_v58, %v5407_v2  ;;  %v5408_v52 = vld [vmem:[#allocation48_spill] sm:$0xff] }
 0x395   :  { %v1630_v57 = vmul.f32 %v1623_v46, %v4437_v22  ;;  %v1634_v56 = vmul.f32 %v1623_v46, %v1610_v63  ;;  %v1602_v62 = vadd.f32 %v1594_v25, %v1562_v15  ;;  %v1631_v4 = vmul.f32 %v1627_v24, %v4437_v22 }
 0x396   :  { %v1603_v48 = vadd.f32 %v1595_v41, %v1563_v31  ;;  %v1635_v59 = vmul.f32 %v1627_v24, %v1610_v63  ;;  %v1640_v34 = vadd.f32 %v1632_v13, %v4417_v35  ;;  %v1641_v37 = vadd.f32 %v1633_v32, %v4510_v3 }
 0x397   :  { %v1198_v0 = vmul.f32 %v1191_v50, %v5407_v2  ;;  %v1199_v55 = vmul.f32 %v1195_v44, %v5407_v2  ;;  %v1642_v49 = vadd.f32 %v1634_v56, %v1602_v62  ;;  %v1205_v19 = vadd.f32 %v1197_v9, %v4429_v40  ;;  %v5409_v50 = vld [vmem:[#allocation56_spill] sm:$0xff] }
 0x398   :  { %v1643_v18 = vadd.f32 %v1635_v59, %v1603_v48  ;;  %v1237_v58 = vmul.f32 %v4492_v26, %v5408_v52  ;;  %v1238_v35 = vmul.f32 %v4516_v23, %v5408_v52  ;;  %v1239_v63 = vmul.f32 %v4523_v53, %v5408_v52 }
 0x399   :  { %v1206_v25 = vadd.f32 %v1198_v0, %v4445_v16  ;;  %v1207_v22 = vadd.f32 %v1199_v55, %v4447_v38  ;;  %v1277_v44 = vmul.f32 %v4497_v30, %v5409_v50  ;;  %v1278_v59 = vmul.f32 %v4519_v10, %v5409_v50  ;;  %v1654_v30 = vpop.permute.xlu1 %1653 }
 0x39a   :  { %v1245_v3 = vadd.f32 %v1237_v58, %v1205_v19  ;;  %v1279_v40 = vmul.f32 %v4526_v11, %v5409_v50  ;;  %v1510_v38 = vmul.f32 %v1503_v20, %v5374_v42  ;;  %v1511_v41 = vmul.f32 %v1507_v14, %v5374_v42 }
 0x39b   :  { %v1246_v26 = vadd.f32 %v1238_v35, %v1206_v25  ;;  %v1247_v16 = vadd.f32 %v1239_v63, %v1207_v22  ;;  %v1550_v46 = vmul.f32 %v1543_v51, %v5377_v17  ;;  %v1551_v53 = vmul.f32 %v1547_v45, %v5377_v17  ;;  %v1658_v51 = vpop.permute.xlu0 %1657 }
 0x39c   :  { %v1285_v23 = vadd.f32 %v1277_v44, %v1245_v3  ;;  %v1590_v15 = vmul.f32 %v1583_v28, %v5379_v5  ;;  %v1518_v10 = vadd.f32 %v1510_v38, %v4463_v27  ;;  %v1519_v11 = vadd.f32 %v1511_v41, %v4465_v1 }
 0x39d   :  { %v1286_v31 = vadd.f32 %v1278_v59, %v1246_v26  ;;  %v1287_v24 = vadd.f32 %v1279_v40, %v1247_v16  ;;  %v1591_v20 = vmul.f32 %v1587_v47, %v5379_v5  ;;  %v1644_v42 = vadd.f32 %v4456_v39, %v4415_v33 }
 0x39e   :  { %v1325_v13 = vadd.f32 %v4508_v61, %v1285_v23  ;;  %v1648_v14 = vadd.f32 %v1640_v34, %v4545_v12  ;;  %v1558_v28 = vadd.f32 %v1550_v46, %v1518_v10  ;;  %v1559_v32 = vadd.f32 %v1551_v53, %v1519_v11 }
 0x39f   :  { %v1326_v17 = vadd.f32 %v4550_v6, %v1286_v31  ;;  %v1327_v45 = vadd.f32 %v4553_v29, %v1287_v24  ;;  %v4611_v56 = vadd.f32 %v1654_v30, %v1644_v42  ;;  %v1649_v1 = vadd.f32 %v1641_v37, %v4555_v8 }
 0x3a0   :  { %v1645_v27 = vadd.f32 %v4528_v60, %v1325_v13  ;;  %v1650_v61 = vadd.f32 %v1642_v49, %v1330_v21  ;;  %v1598_v5 = vadd.f32 %v1590_v15, %v1558_v28  ;;  %v1599_v47 = vadd.f32 %v1591_v20, %v1559_v32 }
 0x3a1   :  { %v1651_v2 = vadd.f32 %v1643_v18, %v1331_v7  ;;  %v4614_v33 = vadd.f32 %v1658_v51, %v1648_v14  ;;  %v4618_v39 = vadd.f32 %v1658_v51, %v1649_v1  ;;  %v1680_v21 = vmul.f32 %v4611_v56, %v4611_v56 }
 0x3a2   :  { %v4616_v12 = vadd.f32 %v1654_v30, %v1645_v27  ;;  %v4620_v6 = vadd.f32 %v1658_v51, %v1650_v61  ;;  %v1638_v29 = vadd.f32 %v1630_v57, %v1598_v5  ;;  %v1639_v9 = vadd.f32 %v1631_v4, %v1599_v47  ;;  %v4655_v27 = vld [vmem:[#allocation5] sm:$0xff] }
 0x3a3   :  { %v1684_v60 = vmul.f32 %v4614_v33, %v4614_v33  ;;  %v1673_v8 = vadd.f32 %v4618_v39, %v4614_v33  ;;  %v1685_v7 = vmul.f32 %v4618_v39, %v4618_v39  ;;  %v4634_v4 = vadd.f32 %v1658_v51, %v1651_v2 }
 0x3a4   :  { %v1646_v62 = vadd.f32 %v1638_v29, %v1326_v17  ;;  %v1647_v48 = vadd.f32 %v1639_v9, %v1327_v45  ;;  %v1681_v34 = vmul.f32 %v4616_v12, %v4616_v12  ;;  %v1686_v57 = vmul.f32 %v4620_v6, %v4620_v6  ;;  %v4652_v17 = vld [vmem:[#allocation5 + $0x8] sm:$0xff] }
 0x3a5   :  { %v1674_v37 = vadd.f32 %v1673_v8, %v4620_v6  ;;  %v1693_v0 = vadd.f32 %v1685_v7, %v1684_v60  ;;  %v1668_v49 = vadd.f32 %v4616_v12, %v4611_v56  ;;  %v1687_v35 = vmul.f32 %v4634_v4, %v4634_v4 }
 0x3a6   :  { %v4637_v55 = vadd.f32 %v1654_v30, %v1646_v62  ;;  %v4642_v52 = vadd.f32 %v1654_v30, %v1647_v48  ;;  %v1688_v22 = vadd.f32 %v1681_v34, %v1680_v21  ;;  %v2885_v40 = vmov 62  }
 0x3a7   :  { %v1675_v18 = vadd.f32 %v1674_v37, %v4634_v4  ;;  %v1694_v19 = vadd.f32 %v1693_v0, %v1686_v57  ;;  %2708 = vset.pattern.permute.xlu1 %v2885_v40  ;;  %v2886_v14 = vmov 63   ;;  %vm1806_vm8 = vcmask 400744  }
 0x3a8   :  { %v1669_v58 = vadd.f32 %v1668_v49, %v4637_v55  ;;  %v1682_v25 = vmul.f32 %v4637_v55, %v4637_v55  ;;  %v1683_v44 = vmul.f32 %v4642_v52, %v4642_v52  ;;  %2709 = vset.pattern.permute.xlu0 %v2886_v14 }
 0x3a9   :  { %1676 = vadd.xlane.f32.xlu0 %v1675_v18  ;;  %v1695_v50 = vadd.f32 %v1694_v19, %v1687_v35 }
 0x3aa   :  { %v1670_v63 = vadd.f32 %v1669_v58, %v4642_v52  ;;  %v1689_v3 = vadd.f32 %v1688_v22, %v1682_v25 }
 0x3ac   :  { %1671 = vadd.xlane.f32.xlu1 %v1670_v63  ;;  %v1690_v59 = vadd.f32 %v1689_v3, %v1683_v44 }
 0x3ad   :  { %1696 = vadd.xlane.f32.xlu0 %v1695_v50 }
 0x3b0   :  { %1691 = vadd.xlane.f32.xlu1 %v1690_v59 }
 0x436   :  { %v1677_v26 = vpop.xlane.xlu0 %1676 }
 0x437   :  { %v1679_v16 = vmul.f32 0.001953125, %v1677_v26 }
 0x439   :  { %v1672_v38 = vpop.xlane.xlu1 %1671  ;;  %v1701_v46 = vmul.f32 %v1679_v16, %v1679_v16 }
 0x43a   :  { %v1678_v41 = vmul.f32 0.001953125, %v1672_v38  ;;  %v1697_v23 = vpop.xlane.xlu0 %1696 }
 0x43b   :  { %v1699_v53 = vmul.f32 0.001953125, %v1697_v23 }
 0x43c   :  { %v1700_v31 = vmul.f32 %v1678_v41, %v1678_v41 }
 0x43d   :  { %v1692_v15 = vpop.xlane.xlu1 %1691  ;;  %v1703_v30 = vsub.f32 %v1699_v53, %v1701_v46 }
 0x43e   :  { %v1698_v24 = vmul.f32 0.001953125, %v1692_v15 }
 0x43f   :  { %v1705_v10 = vmax.f32 %v1703_v30, 0.0 }
 0x440   :  { %v1702_v11 = vsub.f32 %v1698_v24, %v1700_v31 }
 0x441   :  { %v1707_v13 = vadd.f32 1e-05, %v1705_v10 }
 0x442   :  { %v1704_v20 = vmax.f32 %v1702_v11, 0.0 }
 0x443   :  { %2737 = vrsqrt.f32 %v1707_v13 }
 0x444   :  { %v1706_v42 = vadd.f32 1e-05, %v1704_v20 }
 0x446   :  { %2739 = vrsqrt.f32 %v1706_v42 }
 0x44d   :  { %v2738_v51 = vpop.eup %2737 }
 0x44e   :  { %v1711_v45 = vmul.f32 %v4652_v17, %v2738_v51 }
 0x450   :  { %v2740_v28 = vpop.eup %2739  ;;  %v1713_v32 = vmul.f32 %v1711_v45, %v1679_v16 }
 0x451   :  { %v1710_v1 = vmul.f32 %v4655_v27, %v2740_v28 }
 0x452   :  { %1718 = vrot.lane.b32.xlu0 %v1713_v32, %s2869_s1 }
 0x453   :  { %v1712_v61 = vmul.f32 %v1710_v1, %v1678_v41 }
 0x455   :  { %1716 = vrot.lane.b32.xlu1 %v1712_v61, %s2869_s1 }
 0x459   :  { %1726 = vperm.xlu1 %2708, %v1710_v1  }
 0x45d   :  { %1731 = vperm.xlu1 %2708, %v1711_v45  }
 0x461   :  { %2710 = vset.pattern.permute.xlu1 %v2886_v14 }
 0x4c4   :  { %v1719_v5 = vpop.permute.xlu0 %1718 }
 0x4c5   :  { %v1723_v47 = vsub.f32 %v4652_v17, %v1719_v5 }
 0x4c7   :  { %v1717_v2 = vpop.permute.xlu1 %1716  ;;  %1749 = vperm.xlu1 %2710, %v1723_v47  }
 0x4c8   :  { %v1722_v29 = vsub.f32 %v4655_v27, %v1717_v2 }
 0x4ca   :  { %1744 = vperm.xlu0 %2709, %v1722_v29  }
 0x4d8   :  { %v1727_v9 = vpop.permute.xlu1 %1726 }
 0x4d9   :  { %v1734_v49 = vmul.f32 %v1727_v9, %v4611_v56  ;;  %v1735_v18 = vmul.f32 %v1727_v9, %v4616_v12  ;;  %v1736_v19 = vmul.f32 %v1727_v9, %v4637_v55  ;;  %v1737_v58 = vmul.f32 %v1727_v9, %v4642_v52 }
 0x4dc   :  { %v1732_v60 = vpop.permute.xlu1 %1731 }
 0x4dd   :  { %v1738_v8 = vmul.f32 %v1732_v60, %v4614_v33  ;;  %v1739_v21 = vmul.f32 %v1732_v60, %v4618_v39  ;;  %v1740_v7 = vmul.f32 %v1732_v60, %v4620_v6  ;;  %v1741_v62 = vmul.f32 %v1732_v60, %v4634_v4 }
 0x546   :  { %v1750_v48 = vpop.permute.xlu1 %1749 }
 0x547   :  { %v1756_v34 = vadd.f32 %v1750_v48, %v1738_v8  ;;  %v1757_v57 = vadd.f32 %v1750_v48, %v1739_v21  ;;  %v1758_v37 = vadd.f32 %v1750_v48, %v1740_v7  ;;  %v1759_v0 = vadd.f32 %v1750_v48, %v1741_v62 }
 0x549   :  { %v1764_v33 = vadd.f32 3.0, %v1756_v34  ;;  %v1765_v25 = vadd.f32 3.0, %v1757_v57  ;;  %v1766_v39 = vadd.f32 3.0, %v1758_v37  ;;  %v1767_v22 = vadd.f32 3.0, %v1759_v0  ;;  %v1745_v6 = vpop.permute.xlu0 %1744 }
 0x54a   :  { %v1752_v35 = vadd.f32 %v1745_v6, %v1734_v49  ;;  %v1753_v4 = vadd.f32 %v1745_v6, %v1735_v18  ;;  %v1754_v63 = vadd.f32 %v1745_v6, %v1736_v19  ;;  %v1755_v3 = vadd.f32 %v1745_v6, %v1737_v58 }
 0x54b   :  { %v1772_v50 = vmax.f32 %v1764_v33, 0.0  ;;  %v1773_v44 = vmax.f32 %v1765_v25, 0.0  ;;  %v1774_v59 = vmax.f32 %v1766_v39, 0.0  ;;  %v1775_v40 = vmax.f32 %v1767_v22, 0.0 }
 0x54c   :  { %v1760_v56 = vadd.f32 3.0, %v1752_v35  ;;  %v1761_v26 = vadd.f32 3.0, %v1753_v4  ;;  %v1762_v12 = vadd.f32 3.0, %v1754_v63  ;;  %v1763_v16 = vadd.f32 3.0, %v1755_v3 }
 0x54d   :  { %v1780_v55 = vmin.f32 %v1772_v50, 6.0  ;;  %v1781_v38 = vmin.f32 %v1773_v44, 6.0  ;;  %v1782_v30 = vmin.f32 %v1774_v59, 6.0  ;;  %v1783_v31 = vmin.f32 %v1775_v40, 6.0 }
 0x54e   :  { %v1768_v52 = vmax.f32 %v1760_v56, 0.0  ;;  %v1769_v41 = vmax.f32 %v1761_v26, 0.0  ;;  %v1770_v23 = vmax.f32 %v1762_v12, 0.0  ;;  %v1771_v46 = vmax.f32 %v1763_v16, 0.0 }
 0x54f   :  { %v4670_v53 = vmul.f32 %v1780_v55, %v1756_v34  ;;  %v4672_v15 = vmul.f32 %v1781_v38, %v1757_v57  ;;  %v4686_v32 = vmul.f32 %v1782_v30, %v1758_v37  ;;  %v4688_v1 = vmul.f32 %v1783_v31, %v1759_v0 }
 0x550   :  { %v1776_v24 = vmin.f32 %v1768_v52, 6.0  ;;  %v1777_v10 = vmin.f32 %v1769_v41, 6.0  ;;  %v1778_v11 = vmin.f32 %v1770_v23, 6.0  ;;  %v1779_v13 = vmin.f32 %v1771_v46, 6.0 }
 0x551   :  { %v1799_v20 = vadd.f32 %v4672_v15, %v4670_v53  ;;  %v1893_v5 = vadd.f32 %v4688_v1, %v4686_v32  ;;  %v2889_v41 = vmov 29  }
 0x552   :  { %v4676_v42 = vmul.f32 %v1776_v24, %v1752_v35  ;;  %v4678_v14 = vmul.f32 %v1777_v10, %v1753_v4  ;;  %v4680_v51 = vmul.f32 %v1778_v11, %v1754_v63  ;;  %v4682_v45 = vmul.f32 %v1779_v13, %v1755_v3  ;;  %2711 = vset.pattern.permute.xlu1 %v2889_v41 }
 0x553   :  { %1800 = vadd.xlane.f32.xlu0 %v1799_v20  ;;  %v2905_v41 = vmov 42  }
 0x554   :  { %v1796_v28 = vadd.f32 %v4678_v14, %v4676_v42  ;;  %v1890_v61 = vadd.f32 %v4682_v45, %v4680_v51 }
 0x556   :  { %1797 = vadd.xlane.f32.xlu1 %v1796_v28 }
 0x557   :  { %1891 = vadd.xlane.f32.xlu0 %v1890_v61 }
 0x55a   :  { %1894 = vadd.xlane.f32.xlu1 %v1893_v5 }
 0x56d   :  { %1816 = vrot.lane.b32.xlu0 %v4655_v27, %s2887_s13 }
 0x5e0   :  { %v1801_v47 = vpop.xlane.xlu0 %1800 }
 0x5e1   :  { %v1803_v2 = vmul.f32 0.00390625, %v1801_v47 }
 0x5e3   :  { %v1798_v29 = vpop.xlane.xlu1 %1797  ;;  %v1805_v9 = vmul.f32 %v4652_v17, %v1803_v2  ;;  %v2891_v2 = vmov 33  }
 0x5e4   :  { %v1802_v60 = vmul.f32 0.00390625, %v1798_v29  ;;  %v1892_v8 = vpop.xlane.xlu0 %1891  ;;  %v2892_v29 = vmov 30  }
 0x5e5   :  { %v1896_v21 = vmul.f32 0.00390625, %v1892_v8  ;;  %v1808_v62 = vsel %vm1806_vm8, %v1805_v9, 0.0  ;;  %v2893_v9 = vmov 34   ;;  %v2895_v8 = vmov 32  }
 0x5e6   :  { %v1804_v7 = vmul.f32 %v4655_v27, %v1802_v60  ;;  %v2894_v60 = vmov 31   ;;  %2717 = vset.pattern.permute.xlu0 %v2895_v8  ;;  %v5413_v8 = vld [vmem:[#allocation60_spill] sm:$0xff] }
 0x5e7   :  { %v1895_v48 = vpop.xlane.xlu1 %1894  ;;  %v1898_v34 = vmul.f32 %v4655_v27, %v1896_v21  ;;  %v2896_v21 = vmov 35  }
 0x5e8   :  { %v1807_v57 = vsel %vm1806_vm8, %v1804_v7, 0.0  ;;  %v1897_v37 = vmul.f32 0.00390625, %v1895_v48  ;;  %v1817_v3 = vpop.permute.xlu0 %1816  ;;  %v2897_v7 = vmov 38   ;;  %v2899_v48 = vmov 64  }
 0x5e9   :  { %v1809_v0 = vadd.f32 %v1808_v62, %v1807_v57  ;;  %v1900_v18 = vsel %vm1806_vm8, %v1898_v34, 0.0  ;;  %v2898_v62 = vmov 36   ;;  %v2900_v34 = vmov 37  }
 0x5ea   :  { %v1899_v49 = vmul.f32 %v4652_v17, %v1897_v37  ;;  %v2901_v57 = vmov 39  }
 0x5eb   :  { %v1810_v19 = vrot.slane %v1809_v0, 4 }
 0x5ec   :  { %v1901_v58 = vsel %vm1806_vm8, %v1899_v49, 0.0 }
 0x5ed   :  { %v1811_v33 = vadd.f32 %v1810_v19, %v1809_v0  ;;  %v1902_v25 = vadd.f32 %v1901_v58, %v1900_v18 }
 0x5ef   :  { %v1903_v39 = vrot.slane %v1902_v25, 4  ;;  %v1812_v22 = vrot.slane %v1811_v33, 2 }
 0x5f1   :  { %v1904_v6 = vadd.f32 %v1903_v39, %v1902_v25  ;;  %v1813_v35 = vadd.f32 %v1812_v22, %v1811_v33 }
 0x5f3   :  { %v1814_v4 = vrot.slane %v1813_v35, 1  ;;  %v1905_v63 = vrot.slane %v1904_v6, 2 }
 0x5f5   :  { %v1815_v50 = vadd.f32 %v1814_v4, %v1813_v35  ;;  %v1906_v44 = vadd.f32 %v1905_v63, %v1904_v6 }
 0x5f7   :  { %v1907_v59 = vrot.slane %v1906_v44, 1  ;;  %v1819_v40 = vadd.f32 %v1817_v3, %v1815_v50 }
 0x5f9   :  { %v1908_v56 = vadd.f32 %v1907_v59, %v1906_v44  ;;  %v1820_v26 = vmax.f32 %v1819_v40, 0.0 }
 0x5fb   :  { %v1824_v12 = vrot.slane %v1820_v26, %v5266_v36  ;;  %v1909_v16 = vadd.f32 %v1908_v56, %v1817_v3 }
 0x5fd   :  { %v1910_v55 = vmax.f32 %v1909_v16, 0.0  ;;  %1826 = vrot.lane.b32.xlu1 %v1824_v12, %s2888_s14 }
 0x5ff   :  { %v1914_v38 = vrot.slane %v1910_v55, %v5266_v36  ;;  %v2902_v55 = vmov 41  }
 0x601   :  { %1916 = vrot.lane.b32.xlu1 %v1914_v38, %s2888_s14  ;;  %v2903_v38 = vmov 40  }
 0x66f   :  { %v1827_v52 = vpop.permute.xlu1 %1826 }
 0x670   :  { %v1829_v23 = vmul.f32 %v4655_v27, %v1827_v52  ;;  %v1830_v30 = vmul.f32 %v4652_v17, %v1827_v52  ;;  %v2904_v52 = vmov 44  }
 0x672   :  { %1833 = vrot.lane.b32.xlu0 %v1829_v23, %s2890_s15  ;;  %v2906_v23 = vmov 43  }
 0x673   :  { %v1917_v46 = vpop.permute.xlu1 %1916 }
 0x674   :  { %v1919_v31 = vmul.f32 %v4655_v27, %v1917_v46  ;;  %v1920_v24 = vmul.f32 %v4652_v17, %v1917_v46  ;;  %v2907_v46 = vmov 65  }
 0x676   :  { %1835 = vrot.lane.b32.xlu0 %v1830_v30, %s2890_s15  ;;  %1923 = vrot.lane.b32.xlu1 %v1919_v31, %s2890_s15 }
 0x67a   :  { %1925 = vrot.lane.b32.xlu1 %v1920_v24, %s2890_s15 }
 0x6e4   :  { %v1834_v10 = vpop.permute.xlu0 %1833 }
 0x6e5   :  { %v1840_v11 = vsel %vm1839_vm7, %v1834_v10, 0.0 }
 0x6e6   :  { %1841 = vadd.xlane.f32.xlu0 %v1840_v11 }
 0x6e8   :  { %v1836_v13 = vpop.permute.xlu0 %1835  ;;  %v1924_v20 = vpop.permute.xlu1 %1923 }
 0x6e9   :  { %v1843_v28 = vsel %vm1839_vm7, %v1836_v13, 0.0  ;;  %v1929_v61 = vsel %vm1839_vm7, %v1924_v20, 0.0 }
 0x6ea   :  { %1844 = vadd.xlane.f32.xlu0 %v1843_v28  ;;  %1930 = vadd.xlane.f32.xlu1 %v1929_v61 }
 0x6ec   :  { %v1926_v5 = vpop.permute.xlu1 %1925 }
 0x6ed   :  { %v1932_v47 = vsel %vm1839_vm7, %v1926_v5, 0.0 }
 0x6ee   :  { %1933 = vadd.xlane.f32.xlu0 %v1932_v47 }
 0x6fb   :  { %1996 = vperm.xlu1 %2711, %v4655_v27  }
 0x6ff   :  { %2712 = vset.pattern.permute.xlu1 %v2891_v2  ;;  %v5411_v2 = vld [vmem:[#allocation59_spill] sm:$0xff] }
 0x700   :  { %2020 = vperm.xlu1 %2712, %v4655_v27  }
 0x704   :  { %2713 = vset.pattern.permute.xlu1 %v2892_v29  ;;  %2320 = vperm.xlu0 %2717, %v4655_v27   ;;  %v1793_v29 = vshra.s32 %v5411_v2, 8 }
 0x705   :  { %2104 = vperm.xlu1 %2713, %v4655_v27  }
 0x706   :  { %vm1861_vm1 = vcmp.eq.s32.totalorder %v1793_v29, 0  ;;  %vm1950_vm4 = vcmp.eq.s32.totalorder %v1793_v29, 1 }
 0x708   :  { %2720 = vset.pattern.permute.xlu0 %v2897_v7 }
 0x709   :  { %2714 = vset.pattern.permute.xlu1 %v2893_v9  ;;  %2156 = vperm.xlu0 %2720, %v4655_v27   ;;  %v5412_v9 = vld [vmem:[#allocation58_spill] sm:$0xff] }
 0x70a   :  { %2128 = vperm.xlu1 %2714, %v4655_v27  }
 0x70d   :  { %2723 = vset.pattern.permute.xlu0 %v2899_v48 }
 0x70e   :  { %2715 = vset.pattern.permute.xlu1 %v2894_v60  ;;  %v1794_v60 = vshra.s32 %v5412_v9, 8 }
 0x70f   :  { %2212 = vperm.xlu1 %2715, %v4655_v27  }
 0x710   :  { %vm1862_vm12 = vcmp.eq.s32.totalorder %v1794_v60, 0  ;;  %vm1951_vm14 = vcmp.eq.s32.totalorder %v1794_v60, 1 }
 0x713   :  { %2716 = vset.pattern.permute.xlu1 %v2896_v21  ;;  %v1795_v21 = vshra.s32 %v5413_v8, 8 }
 0x714   :  { %2236 = vperm.xlu1 %2716, %v4655_v27  }
 0x715   :  { %vm1863_vm15 = vcmp.eq.s32.totalorder %v1795_v21, 0  ;;  %vm1952_vm6 = vcmp.eq.s32.totalorder %v1795_v21, 1 }
 0x718   :  { %2718 = vset.pattern.permute.xlu1 %v2898_v62 }
 0x719   :  { %2344 = vperm.xlu1 %2718, %v4655_v27  }
 0x71d   :  { %2719 = vset.pattern.permute.xlu1 %v2900_v34 }
 0x71e   :  { %2048 = vperm.xlu1 %2719, %v4655_v27  }
 0x722   :  { %2721 = vset.pattern.permute.xlu1 %v2901_v57 }
 0x723   :  { %2264 = vperm.xlu1 %2721, %v4655_v27  }
 0x727   :  { %2722 = vset.pattern.permute.xlu1 %v2899_v48  ;;  %v5414_v48 = vmov 0.0  }
 0x728   :  { %v2565_v57 = vsel %vm1861_vm1, 1.0, %v5414_v48 }
 0x773   :  { %v1842_v37 = vpop.xlane.xlu0 %1841 }
 0x774   :  { %v1846_v0 = vadd.f32 %v4655_v27, %v1842_v37  ;;  %v2566_v37 = vsel %vm1862_vm12, 1.0, %v5414_v48 }
 0x776   :  { %v2562_v49 = vmul.f32 -1.442695, %v1846_v0  ;;  %v2567_v0 = vsel %vm1863_vm15, 1.0, %v5414_v48 }
 0x777   :  { %v1845_v18 = vpop.xlane.xlu0 %1844  ;;  %v1931_v19 = vpop.xlane.xlu1 %1930 }
 0x778   :  { %2741 = vpow2.f32 %v2562_v49  ;;  %v1847_v58 = vadd.f32 %v4652_v17, %v1845_v18  ;;  %v1935_v33 = vadd.f32 %v4655_v27, %v1931_v19  ;;  %v2571_v18 = vsel %vm1950_vm4, 1.0, %v5414_v48 }
 0x779   :  { %v2572_v19 = vsel %vm1951_vm14, 1.0, %v5414_v48 }
 0x77a   :  { %v2563_v25 = vmul.f32 -1.442695, %v1847_v58  ;;  %v2568_v39 = vmul.f32 -1.442695, %v1935_v33  ;;  %v2573_v58 = vsel %vm1952_vm6, 1.0, %v5414_v48 }
 0x77b   :  { %v1934_v22 = vpop.xlane.xlu0 %1933  ;;  %v4730_v30 = vpop.permute.xlu1 %1996 }
 0x77c   :  { %2743 = vpow2.f32 %v2563_v25  ;;  %v1936_v6 = vadd.f32 %v4652_v17, %v1934_v22 }
 0x77d   :  { %2745 = vpow2.f32 %v2568_v39 }
 0x77e   :  { %v2569_v35 = vmul.f32 -1.442695, %v1936_v6 }
 0x77f   :  { %v4732_v31 = vpop.permute.xlu1 %2020 }
 0x780   :  { %2747 = vpow2.f32 %v2569_v35 }
 0x782   :  { %v2742_v4 = vpop.eup %2741 }
 0x783   :  { %v1854_v63 = vadd.f32 1.0, %v2742_v4  ;;  %v4746_v61 = vpop.permute.xlu0 %2320 }
 0x784   :  { %v4734_v24 = vpop.permute.xlu1 %2104 }
 0x785   :  { %2749 = vrcp.f32 %v1854_v63 }
 0x786   :  { %v2744_v3 = vpop.eup %2743 }
 0x787   :  { %v2746_v50 = vpop.eup %2745  ;;  %v1855_v44 = vadd.f32 1.0, %v2744_v3 }
 0x788   :  { %v1943_v59 = vadd.f32 1.0, %v2746_v50  ;;  %v4754_v7 = vpop.permute.xlu0 %2156 }
 0x789   :  { %2751 = vrcp.f32 %v1855_v44  ;;  %v4736_v10 = vpop.permute.xlu1 %2128 }
 0x78a   :  { %v2748_v40 = vpop.eup %2747  ;;  %2753 = vrcp.f32 %v1943_v59 }
 0x78b   :  { %v1944_v56 = vadd.f32 1.0, %v2748_v40 }
 0x78d   :  { %2755 = vrcp.f32 %v1944_v56 }
 0x78e   :  { %v4738_v11 = vpop.permute.xlu1 %2212 }
 0x78f   :  { %v2750_v26 = vpop.eup %2749 }
 0x790   :  { %1874 = vperm.xlu1 %2722, %v2750_v26  }
 0x793   :  { %v2752_v12 = vpop.eup %2751  ;;  %v4740_v13 = vpop.permute.xlu1 %2236 }
 0x794   :  { %v2754_v16 = vpop.eup %2753  ;;  %1879 = vperm.xlu1 %2722, %v2752_v12  }
 0x795   :  { %1963 = vperm.xlu0 %2723, %v2754_v16  }
 0x797   :  { %v2756_v17 = vpop.eup %2755 }
 0x798   :  { %1968 = vperm.xlu1 %2722, %v2756_v17   ;;  %v4742_v20 = vpop.permute.xlu1 %2344 }
 0x799   :  { %2725 = vset.pattern.permute.xlu0 %v2902_v55 }
 0x79a   :  { %2076 = vperm.xlu0 %2725, %v4655_v27  }
 0x79c   :  { %2724 = vset.pattern.permute.xlu1 %v2903_v38 }
 0x79d   :  { %2372 = vperm.xlu1 %2724, %v4655_v27   ;;  %v4744_v28 = vpop.permute.xlu1 %2048 }
 0x79e   :  { %2728 = vset.pattern.permute.xlu0 %v2904_v52 }
 0x79f   :  { %2400 = vperm.xlu0 %2728, %v4655_v27  }
 0x7a1   :  { %2726 = vset.pattern.permute.xlu1 %v2905_v41 }
 0x7a2   :  { %2184 = vperm.xlu1 %2726, %v4655_v27   ;;  %v4748_v5 = vpop.permute.xlu1 %2264 }
 0x7a6   :  { %2727 = vset.pattern.permute.xlu1 %v2906_v23 }
 0x7a7   :  { %2292 = vperm.xlu1 %2727, %v4655_v27  }
 0x7ab   :  { %2729 = vset.pattern.permute.xlu1 %v2907_v46 }
 0x7ac   :  { %2440 = vperm.xlu1 %2729, %v4655_v27   ;;  %v5410_v27 = vld [vmem:[#allocation57_spill] sm:$0xff] }
 0x7ad   :  { %v1792_v47 = vshra.s32 %v5410_v27, 8 }
 0x7af   :  { %vm1860_vm0 = vcmp.eq.s32.totalorder %v1792_v47, 0  ;;  %vm1949_vm13 = vcmp.eq.s32.totalorder %v1792_v47, 1 }
 0x7b0   :  { %v2564_v34 = vsel %vm1860_vm0, 1.0, %v5414_v48  ;;  %v2570_v49 = vsel %vm1949_vm13, 1.0, %v5414_v48 }
 0x80f   :  { %v1875_v62 = vpop.permute.xlu1 %1874 }
 0x810   :  { %v1882_v25 = vmul.f32 %v2564_v34, %v1875_v62  ;;  %v1883_v39 = vmul.f32 %v2565_v57, %v1875_v62  ;;  %v1884_v22 = vmul.f32 %v2566_v37, %v1875_v62  ;;  %v1885_v6 = vmul.f32 %v2567_v0, %v1875_v62 }
 0x813   :  { %v1880_v33 = vpop.permute.xlu1 %1879 }
 0x814   :  { %v1964_v35 = vpop.permute.xlu0 %1963  ;;  %v1886_v44 = vmul.f32 %v2564_v34, %v1880_v33  ;;  %v1887_v59 = vmul.f32 %v2565_v57, %v1880_v33  ;;  %v1888_v40 = vmul.f32 %v2566_v37, %v1880_v33  ;;  %v1889_v56 = vmul.f32 %v2567_v0, %v1880_v33 }
 0x815   :  { %v1971_v4 = vmul.f32 %v2570_v49, %v1964_v35  ;;  %v1972_v63 = vmul.f32 %v2571_v18, %v1964_v35  ;;  %v1973_v3 = vmul.f32 %v2572_v19, %v1964_v35  ;;  %v1974_v50 = vmul.f32 %v2573_v58, %v1964_v35 }
 0x817   :  { %v1979_v26 = vadd.f32 %v1971_v4, %v1882_v25  ;;  %v1980_v12 = vadd.f32 %v1972_v63, %v1883_v39  ;;  %v1981_v16 = vadd.f32 %v1973_v3, %v1884_v22  ;;  %v1982_v17 = vadd.f32 %v1974_v50, %v1885_v6  ;;  %v1969_v55 = vpop.permute.xlu1 %1968 }
 0x818   :  { %v1975_v38 = vmul.f32 %v2570_v49, %v1969_v55  ;;  %v1976_v52 = vmul.f32 %v2571_v18, %v1969_v55  ;;  %v1977_v41 = vmul.f32 %v2572_v19, %v1969_v55  ;;  %v1978_v23 = vmul.f32 %v2573_v58, %v1969_v55  ;;  %v5415_v18 = vld [vmem:[#allocation12_spill] sm:$0xff] }
 0x819   :  { %v4765_v46 = vmul.f32 %v1979_v26, %v4676_v42  ;;  %v4768_v27 = vmul.f32 %v1980_v12, %v4678_v14  ;;  %v4771_v47 = vmul.f32 %v1981_v16, %v4680_v51  ;;  %v4774_v2 = vmul.f32 %v1982_v17, %v4682_v45  ;;  %v2077_v55 = vpop.permute.xlu0 %2076 }
 0x81a   :  { %v1983_v29 = vadd.f32 %v1975_v38, %v1886_v44  ;;  %v1984_v9 = vadd.f32 %v1976_v52, %v1887_v59  ;;  %v1985_v60 = vadd.f32 %v1977_v41, %v1888_v40  ;;  %v1986_v8 = vadd.f32 %v1978_v23, %v1889_v56 }
 0x81b   :  { %v2002_v21 = vrot.slane %v4765_v46, %v5266_v36  ;;  %v2006_v42 = vrot.slane %v4768_v27, %v5266_v36  ;;  %v2010_v14 = vrot.slane %v4771_v47, %v5266_v36  ;;  %v2014_v51 = vrot.slane %v4774_v2, %v5266_v36 }
 0x81c   :  { %v4785_v62 = vmul.f32 %v1983_v29, %v4670_v53  ;;  %v4788_v45 = vmul.f32 %v1984_v9, %v4672_v15  ;;  %v4791_v48 = vmul.f32 %v1985_v60, %v4686_v32  ;;  %v4794_v34 = vmul.f32 %v1986_v8, %v4688_v1 }
 0x81d   :  { %v2015_v57 = vmul.f32 %v2002_v21, %v4730_v30  ;;  %v2016_v37 = vmul.f32 %v2006_v42, %v4730_v30  ;;  %v2017_v0 = vmul.f32 %v2010_v14, %v4730_v30  ;;  %v2018_v49 = vmul.f32 %v2014_v51, %v4730_v30 }
 0x81e   :  { %v2026_v53 = vrot.slane %v4765_v46, %v5415_v18  ;;  %v2030_v15 = vrot.slane %v4768_v27, %v5415_v18  ;;  %v2034_v32 = vrot.slane %v4771_v47, %v5415_v18  ;;  %v2038_v1 = vrot.slane %v4774_v2, %v5415_v18 }
 0x81f   :  { %v2054_v19 = vrot.slane %v4785_v62, %v5266_v36  ;;  %v2058_v58 = vrot.slane %v4788_v45, %v5266_v36  ;;  %v2062_v30 = vrot.slane %v4791_v48, %v5266_v36  ;;  %v2066_v33 = vrot.slane %v4794_v34, %v5266_v36 }
 0x820   :  { %v2039_v25 = vmul.f32 %v2026_v53, %v4732_v31  ;;  %v2040_v39 = vmul.f32 %v2030_v15, %v4732_v31  ;;  %v2041_v22 = vmul.f32 %v2034_v32, %v4732_v31  ;;  %v2042_v6 = vmul.f32 %v2038_v1, %v4732_v31 }
 0x821   :  { %v2067_v35 = vmul.f32 %v2054_v19, %v4744_v28  ;;  %v2068_v4 = vmul.f32 %v2058_v58, %v4744_v28  ;;  %v2069_v63 = vmul.f32 %v2062_v30, %v4744_v28  ;;  %v2070_v3 = vmul.f32 %v2066_v33, %v4744_v28  ;;  %v2373_v30 = vpop.permute.xlu1 %2372 }
 0x822   :  { %v2043_v50 = vadd.f32 %v2039_v25, %v2015_v57  ;;  %v2044_v44 = vadd.f32 %v2040_v39, %v2016_v37  ;;  %v2045_v59 = vadd.f32 %v2041_v22, %v2017_v0  ;;  %v2046_v36 = vadd.f32 %v2042_v6, %v2018_v49 }
 0x823   :  { %v2082_v40 = vrot.slane %v4785_v62, %v5415_v18  ;;  %v2086_v56 = vrot.slane %v4788_v45, %v5415_v18  ;;  %v2090_v31 = vrot.slane %v4791_v48, %v5415_v18  ;;  %v2094_v26 = vrot.slane %v4794_v34, %v5415_v18 }
 0x824   :  { %v2071_v12 = vadd.f32 %v2067_v35, %v2043_v50  ;;  %v2072_v16 = vadd.f32 %v2068_v4, %v2044_v44  ;;  %v2073_v17 = vadd.f32 %v2069_v63, %v2045_v59  ;;  %v2074_v28 = vadd.f32 %v2070_v3, %v2046_v36 }
 0x825   :  { %v2326_v38 = vrot.slane %v4765_v46, %v5351_v43  ;;  %v2330_v52 = vrot.slane %v4768_v27, %v5351_v43  ;;  %v2334_v41 = vrot.slane %v4771_v47, %v5351_v43  ;;  %v2338_v23 = vrot.slane %v4774_v2, %v5351_v43 }
 0x826   :  { %v2095_v29 = vmul.f32 %v2082_v40, %v2077_v55  ;;  %v2096_v9 = vmul.f32 %v2086_v56, %v2077_v55  ;;  %v2097_v60 = vmul.f32 %v2090_v31, %v2077_v55  ;;  %v2098_v8 = vmul.f32 %v2094_v26, %v2077_v55  ;;  %v2401_v56 = vpop.permute.xlu0 %2400 }
 0x827   :  { %v2339_v21 = vmul.f32 %v2326_v38, %v4746_v61  ;;  %v2340_v42 = vmul.f32 %v2330_v52, %v4746_v61  ;;  %v2341_v14 = vmul.f32 %v2334_v41, %v4746_v61  ;;  %v2342_v51 = vmul.f32 %v2338_v23, %v4746_v61  ;;  %v5416_v52 = vld [vmem:[#allocation17_spill] sm:$0xff] }
 0x828   :  { %v2350_v57 = vrot.slane %v4765_v46, %v5359_v54  ;;  %v2354_v37 = vrot.slane %v4768_v27, %v5359_v54  ;;  %v2358_v0 = vrot.slane %v4771_v47, %v5359_v54  ;;  %v2362_v49 = vrot.slane %v4774_v2, %v5359_v54 }
 0x829   :  { %v2378_v18 = vrot.slane %v4785_v62, %v5351_v43  ;;  %v2382_v53 = vrot.slane %v4788_v45, %v5351_v43  ;;  %v2386_v61 = vrot.slane %v4791_v48, %v5351_v43  ;;  %v2390_v15 = vrot.slane %v4794_v34, %v5351_v43 }
 0x82a   :  { %v2363_v32 = vmul.f32 %v2350_v57, %v4742_v20  ;;  %v2364_v1 = vmul.f32 %v2354_v37, %v4742_v20  ;;  %v2365_v19 = vmul.f32 %v2358_v0, %v4742_v20  ;;  %v2366_v58 = vmul.f32 %v2362_v49, %v4742_v20 }
 0x82b   :  { %v2391_v33 = vmul.f32 %v2378_v18, %v2373_v30  ;;  %v2392_v25 = vmul.f32 %v2382_v53, %v2373_v30  ;;  %v2393_v39 = vmul.f32 %v2386_v61, %v2373_v30  ;;  %v2394_v22 = vmul.f32 %v2390_v15, %v2373_v30 }
 0x82c   :  { %v2367_v6 = vadd.f32 %v2363_v32, %v2339_v21  ;;  %v2368_v35 = vadd.f32 %v2364_v1, %v2340_v42  ;;  %v2369_v4 = vadd.f32 %v2365_v19, %v2341_v14  ;;  %v2370_v63 = vadd.f32 %v2366_v58, %v2342_v51  ;;  %v5417_v42 = vld [vmem:[#allocation18_spill] sm:$0xff] }
 0x82d   :  { %v2406_v43 = vrot.slane %v4785_v62, %v5359_v54  ;;  %v2410_v3 = vrot.slane %v4788_v45, %v5359_v54  ;;  %v2414_v50 = vrot.slane %v4791_v48, %v5359_v54  ;;  %v2418_v20 = vrot.slane %v4794_v34, %v5359_v54 }
 0x82e   :  { %v4872_v44 = vadd.f32 %v2095_v29, %v2071_v12  ;;  %v4874_v59 = vadd.f32 %v2096_v9, %v2072_v16  ;;  %v4876_v36 = vadd.f32 %v2097_v60, %v2073_v17  ;;  %v4878_v40 = vadd.f32 %v2098_v8, %v2074_v28 }
 0x82f   :  { %v4880_v31 = vadd.f32 %v2391_v33, %v2367_v6  ;;  %v4882_v26 = vadd.f32 %v2392_v25, %v2368_v35  ;;  %v4884_v55 = vadd.f32 %v2393_v39, %v2369_v4  ;;  %v4886_v38 = vadd.f32 %v2394_v22, %v2370_v63  ;;  %v2185_v6 = vpop.permute.xlu1 %2184 }
 0x830   :  { %v2110_v54 = vrot.slane %v4765_v46, %v5416_v52  ;;  %v2114_v12 = vrot.slane %v4768_v27, %v5416_v52  ;;  %v2118_v16 = vrot.slane %v4771_v47, %v5416_v52  ;;  %v2122_v17 = vrot.slane %v4774_v2, %v5416_v52 }
 0x831   :  { %v4896_v28 = vmul.f32 %v2406_v43, %v2401_v56  ;;  %v4898_v41 = vmul.f32 %v2410_v3, %v2401_v56  ;;  %v4900_v23 = vmul.f32 %v2414_v50, %v2401_v56  ;;  %v4902_v29 = vmul.f32 %v2418_v20, %v2401_v56 }
 0x832   :  { %v2123_v9 = vmul.f32 %v2110_v54, %v4734_v24  ;;  %v2124_v60 = vmul.f32 %v2114_v12, %v4734_v24  ;;  %v2125_v8 = vmul.f32 %v2118_v16, %v4734_v24  ;;  %v2126_v21 = vmul.f32 %v2122_v17, %v4734_v24  ;;  %v5418_v12 = vld [vmem:[#allocation15_spill] sm:$0xff] }
 0x833   :  { %v2134_v14 = vrot.slane %v4765_v46, %v5417_v42  ;;  %v2138_v51 = vrot.slane %v4768_v27, %v5417_v42  ;;  %v2142_v57 = vrot.slane %v4771_v47, %v5417_v42  ;;  %v2146_v37 = vrot.slane %v4774_v2, %v5417_v42 }
 0x834   :  { %v2162_v0 = vrot.slane %v4785_v62, %v5416_v52  ;;  %v2166_v49 = vrot.slane %v4788_v45, %v5416_v52  ;;  %v2170_v24 = vrot.slane %v4791_v48, %v5416_v52  ;;  %v2174_v18 = vrot.slane %v4794_v34, %v5416_v52 }
 0x835   :  { %v2147_v53 = vmul.f32 %v2134_v14, %v4736_v10  ;;  %v2148_v61 = vmul.f32 %v2138_v51, %v4736_v10  ;;  %v2149_v15 = vmul.f32 %v2142_v57, %v4736_v10  ;;  %v2150_v32 = vmul.f32 %v2146_v37, %v4736_v10 }
 0x836   :  { %v2175_v1 = vmul.f32 %v2162_v0, %v4754_v7  ;;  %v2176_v19 = vmul.f32 %v2166_v49, %v4754_v7  ;;  %v2177_v58 = vmul.f32 %v2170_v24, %v4754_v7  ;;  %v2178_v30 = vmul.f32 %v2174_v18, %v4754_v7  ;;  %v5419_v49 = vld [vmem:[#allocation16_spill] sm:$0xff] }
 0x837   :  { %v2151_v33 = vadd.f32 %v2147_v53, %v2123_v9  ;;  %v2152_v25 = vadd.f32 %v2148_v61, %v2124_v60  ;;  %v2153_v39 = vadd.f32 %v2149_v15, %v2125_v8  ;;  %v2154_v22 = vadd.f32 %v2150_v32, %v2126_v21 }
 0x838   :  { %v2190_v35 = vrot.slane %v4785_v62, %v5417_v42  ;;  %v2194_v4 = vrot.slane %v4788_v45, %v5417_v42  ;;  %v2198_v10 = vrot.slane %v4791_v48, %v5417_v42  ;;  %v2202_v63 = vrot.slane %v4794_v34, %v5417_v42 }
 0x839   :  { %v2179_v43 = vadd.f32 %v2175_v1, %v2151_v33  ;;  %v2180_v3 = vadd.f32 %v2176_v19, %v2152_v25  ;;  %v2181_v7 = vadd.f32 %v2177_v58, %v2153_v39  ;;  %v2182_v50 = vadd.f32 %v2178_v30, %v2154_v22 }
 0x83a   :  { %v2203_v20 = vmul.f32 %v2190_v35, %v2185_v6  ;;  %v2204_v56 = vmul.f32 %v2194_v4, %v2185_v6  ;;  %v2205_v52 = vmul.f32 %v2198_v10, %v2185_v6  ;;  %v2206_v54 = vmul.f32 %v2202_v63, %v2185_v6  ;;  %v2293_v35 = vpop.permute.xlu1 %2292 }
 0x83b   :  { %v2218_v16 = vrot.slane %v4765_v46, %v5418_v12  ;;  %v2222_v17 = vrot.slane %v4768_v27, %v5418_v12  ;;  %v2226_v9 = vrot.slane %v4771_v47, %v5418_v12  ;;  %v2230_v60 = vrot.slane %v4774_v2, %v5418_v12 }
 0x83c   :  { %v2207_v8 = vadd.f32 %v2203_v20, %v2179_v43  ;;  %v2208_v21 = vadd.f32 %v2204_v56, %v2180_v3  ;;  %v2209_v42 = vadd.f32 %v2205_v52, %v2181_v7  ;;  %v2210_v14 = vadd.f32 %v2206_v54, %v2182_v50 }
 0x83d   :  { %v2231_v51 = vmul.f32 %v2218_v16, %v4738_v11  ;;  %v2232_v57 = vmul.f32 %v2222_v17, %v4738_v11  ;;  %v2233_v37 = vmul.f32 %v2226_v9, %v4738_v11  ;;  %v2234_v0 = vmul.f32 %v2230_v60, %v4738_v11 }
 0x83e   :  { %v2242_v24 = vrot.slane %v4765_v46, %v5419_v49  ;;  %v2246_v18 = vrot.slane %v4768_v27, %v5419_v49  ;;  %v2250_v53 = vrot.slane %v4771_v47, %v5419_v49  ;;  %v2254_v61 = vrot.slane %v4774_v2, %v5419_v49 }
 0x83f   :  { %v2270_v15 = vrot.slane %v4785_v62, %v5418_v12  ;;  %v2274_v32 = vrot.slane %v4788_v45, %v5418_v12  ;;  %v2278_v11 = vrot.slane %v4791_v48, %v5418_v12  ;;  %v2282_v46 = vrot.slane %v4794_v34, %v5418_v12 }
 0x840   :  { %v2255_v27 = vmul.f32 %v2242_v24, %v4740_v13  ;;  %v2256_v1 = vmul.f32 %v2246_v18, %v4740_v13  ;;  %v2257_v47 = vmul.f32 %v2250_v53, %v4740_v13  ;;  %v2258_v2 = vmul.f32 %v2254_v61, %v4740_v13 }
 0x841   :  { %v2283_v19 = vmul.f32 %v2270_v15, %v4748_v5  ;;  %v2284_v58 = vmul.f32 %v2274_v32, %v4748_v5  ;;  %v2285_v30 = vmul.f32 %v2278_v11, %v4748_v5  ;;  %v2286_v33 = vmul.f32 %v2282_v46, %v4748_v5 }
 0x842   :  { %v2259_v25 = vadd.f32 %v2255_v27, %v2231_v51  ;;  %v2260_v39 = vadd.f32 %v2256_v1, %v2232_v57  ;;  %v2261_v22 = vadd.f32 %v2257_v47, %v2233_v37  ;;  %v2262_v6 = vadd.f32 %v2258_v2, %v2234_v0 }
 0x843   :  { %v2298_v4 = vrot.slane %v4785_v62, %v5419_v49  ;;  %v2302_v10 = vrot.slane %v4788_v45, %v5419_v49  ;;  %v2306_v13 = vrot.slane %v4791_v48, %v5419_v49  ;;  %v2310_v63 = vrot.slane %v4794_v34, %v5419_v49 }
 0x844   :  { %v2287_v43 = vadd.f32 %v2283_v19, %v2259_v25  ;;  %v2288_v3 = vadd.f32 %v2284_v58, %v2260_v39  ;;  %v2289_v5 = vadd.f32 %v2285_v30, %v2261_v22  ;;  %v2290_v7 = vadd.f32 %v2286_v33, %v2262_v6 }
 0x845   :  { %v2311_v50 = vmul.f32 %v2298_v4, %v2293_v35  ;;  %v2312_v20 = vmul.f32 %v2302_v10, %v2293_v35  ;;  %v2313_v56 = vmul.f32 %v2306_v13, %v2293_v35  ;;  %v2314_v52 = vmul.f32 %v2310_v63, %v2293_v35  ;;  %v2763_v13 = vld [vmem:[#allocation5] sm:$0xff] }
 0x846   :  { %v2423_v62 = vadd.f32 %v4896_v28, %v4880_v31  ;;  %v2424_v45 = vadd.f32 %v4898_v41, %v4882_v26  ;;  %v2425_v48 = vadd.f32 %v4900_v23, %v4884_v55  ;;  %v2426_v34 = vadd.f32 %v4902_v29, %v4886_v38  ;;  %v2441_v55 = vpop.permute.xlu1 %2440 }
 0x847   :  { %v2315_v54 = vadd.f32 %v2311_v50, %v2287_v43  ;;  %v2316_v12 = vadd.f32 %v2312_v20, %v2288_v3  ;;  %v2317_v16 = vadd.f32 %v2313_v56, %v2289_v5  ;;  %v2318_v17 = vadd.f32 %v2314_v52, %v2290_v7 }
 0x848   :  { %v2427_v9 = vadd.f32 %v2207_v8, %v4872_v44  ;;  %v2428_v60 = vadd.f32 %v2208_v21, %v4874_v59  ;;  %v2429_v51 = vadd.f32 %v2209_v42, %v4876_v36  ;;  %v2430_v31 = vadd.f32 %v2210_v14, %v4878_v40 }
 0x849   :  { %v2431_v28 = vadd.f32 %v2423_v62, %v2315_v54  ;;  %v2432_v26 = vadd.f32 %v2424_v45, %v2316_v12  ;;  %v2433_v41 = vadd.f32 %v2425_v48, %v2317_v16  ;;  %v2434_v57 = vadd.f32 %v2426_v34, %v2318_v17  ;;  %v2764_v17 = vld [vmem:[#allocation2] sm:$0xff] }
 0x84a   :  { %v2908_v19 = vmov 66   ;;  %v2909_v4 = vmov 67  }
 0x84b   :  { %v2435_v23 = vadd.f32 %v2431_v28, %v2427_v9  ;;  %v2436_v37 = vadd.f32 %v2432_v26, %v2428_v60  ;;  %v2437_v38 = vadd.f32 %v2433_v41, %v2429_v51  ;;  %v2438_v29 = vadd.f32 %v2434_v57, %v2430_v31  ;;  %2730 = vset.pattern.permute.xlu1 %v2908_v19  ;;  %v2765_v60 = vld [vmem:[#allocation2 + $0x8] sm:$0xff] }
 0x84c   :  { %2732 = vset.pattern.permute.xlu0 %v2909_v4 }
 0x84d   :  { %v2443_v0 = vadd.f32 %v2441_v55, %v2435_v23  ;;  %v2444_v49 = vadd.f32 %v2441_v55, %v2436_v37  ;;  %v2445_v24 = vadd.f32 %v2441_v55, %v2437_v38  ;;  %v2446_v44 = vadd.f32 %v2441_v55, %v2438_v29 }
 0x84f   :  { %v2458_v8 = vmul.f32 %v2443_v0, %v2443_v0  ;;  %v2459_v59 = vmul.f32 %v2444_v49, %v2444_v49  ;;  %v2448_v36 = vsel %vm2447_vm10, %v2443_v0, 0.0  ;;  %v2449_v40 = vsel %vm2447_vm10, %v2444_v49, 0.0 }
 0x850   :  { %v2450_v21 = vadd.f32 %v2449_v40, %v2448_v36  ;;  %v2460_v42 = vmul.f32 %v2445_v24, %v2445_v24  ;;  %v2451_v14 = vsel %vm2447_vm10, %v2445_v24, 0.0  ;;  %v2461_v18 = vmul.f32 %v2446_v44, %v2446_v44 }
 0x851   :  { %v2462_v53 = vsel %vm2447_vm10, %v2458_v8, 0.0  ;;  %v2463_v61 = vsel %vm2447_vm10, %v2459_v59, 0.0  ;;  %v2453_v11 = vsel %vm2447_vm10, %v2446_v44, 0.0 }
 0x852   :  { %v2452_v15 = vadd.f32 %v2451_v14, %v2450_v21  ;;  %v2464_v32 = vadd.f32 %v2463_v61, %v2462_v53  ;;  %v2465_v46 = vsel %vm2447_vm10, %v2460_v42, 0.0  ;;  %v2467_v47 = vsel %vm2447_vm10, %v2461_v18, 0.0 }
 0x854   :  { %v2454_v27 = vadd.f32 %v2453_v11, %v2452_v15  ;;  %v2466_v1 = vadd.f32 %v2465_v46, %v2464_v32 }
 0x856   :  { %2455 = vadd.xlane.f32.xlu1 %v2454_v27  ;;  %v2468_v2 = vadd.f32 %v2467_v47, %v2466_v1 }
 0x858   :  { %2469 = vadd.xlane.f32.xlu0 %v2468_v2 }
 0x8e3   :  { %v2456_v58 = vpop.xlane.xlu1 %2455 }
 0x8e4   :  { %v2457_v30 = vmul.f32 0.001953125, %v2456_v58 }
 0x8e5   :  { %v2470_v33 = vpop.xlane.xlu0 %2469 }
 0x8e6   :  { %v2472_v25 = vmul.f32 %v2457_v30, %v2457_v30  ;;  %v2471_v39 = vmul.f32 0.001953125, %v2470_v33 }
 0x8e8   :  { %v2473_v22 = vsub.f32 %v2471_v39, %v2472_v25 }
 0x8ea   :  { %v2474_v6 = vmax.f32 %v2473_v22, 0.0 }
 0x8ec   :  { %v2475_v35 = vadd.f32 1e-05, %v2474_v6 }
 0x8ee   :  { %2757 = vrsqrt.f32 %v2475_v35 }
 0x8f8   :  { %v2758_v10 = vpop.eup %2757 }
 0x8f9   :  { %v2477_v63 = vmul.f32 %v2763_v13, %v2758_v10 }
 0x8fb   :  { %2486 = vperm.xlu1 %2730, %v2477_v63   ;;  %v2478_v43 = vmul.f32 %v2477_v63, %v2457_v30 }
 0x8fd   :  { %2480 = vrot.lane.b32.xlu0 %v2478_v43, %s2869_s1 }
 0x8ff   :  { %2731 = vset.pattern.permute.xlu1 %v2909_v4 }
 0x96f   :  { %v2481_v3 = vpop.permute.xlu0 %2480 }
 0x970   :  { %v2483_v5 = vsub.f32 %v2763_v13, %v2481_v3 }
 0x972   :  { %2495 = vperm.xlu1 %2731, %v2483_v5  }
 0x97a   :  { %v2487_v7 = vpop.permute.xlu1 %2486 }
 0x97b   :  { %v2489_v50 = vmul.f32 %v2487_v7, %v2443_v0  ;;  %v2490_v20 = vmul.f32 %v2487_v7, %v2444_v49  ;;  %v2491_v56 = vmul.f32 %v2487_v7, %v2445_v24  ;;  %v2492_v52 = vmul.f32 %v2487_v7, %v2446_v44 }
 0x9f1   :  { %v2496_v62 = vpop.permute.xlu1 %2495 }
 0x9f2   :  { %v2498_v45 = vadd.f32 %v2496_v62, %v2489_v50  ;;  %v2499_v48 = vadd.f32 %v2496_v62, %v2490_v20  ;;  %v2500_v34 = vadd.f32 %v2496_v62, %v2491_v56  ;;  %v2501_v54 = vadd.f32 %v2496_v62, %v2492_v52 }
 0x9f4   :  { %v2506_v12 = vcombine.low %v2498_v45, %v2499_v48  ;;  %v2507_v16 = vcombine.low %v2500_v34, %v2501_v54 }
 0x9f6   :  { %v2510_v9 = vadd.f32 %v2764_v17, %v2506_v12  ;;  %v2511_v51 = vadd.f32 %v2765_v60, %v2507_v16 }
 0x9f8   :  { %2512 = vst [vmem:[#allocation7] sm:$0xff] %v2510_v9  ;;  %2513 = vst [vmem:[#allocation7 + $0x8] sm:$0xff] %v2511_v51 }
 0x9f9   :  { %2821 = shalt.err (!%p2818_p6)
}
 0x9fa   :  { %s2822_s21 = scalar_lea.hbm %s5019_s2, 256 }
 0x9fb   :  { %p2823_p7 = scmp.ne.s32.totalorder %s5019_s2, %s2822_s21  ;;  %p2826_p8 = scmp.lt.u32.totalorder %s2822_s21, %s5019_s2 }
 0x9fd   :  { %p2828_p9 = pnand %p2826_p8, %p2823_p7 }
 0x9ff   :  { %2831 = shalt.err (!%p2828_p9)
}
 0xa00   :  { %2523 = dma.vmem_to_hbm [thread:$0]  %s2521_s17, 256, %s5019_s2, [#allocation4]  }
 0xa01   :  { %2836 = dma.done.wait [#allocation4], 256  }
 0xa02   :  { %2837 = vsyncadd [#allocation4], 4294967040 }
 0xa03   :  { %2527 = vsyncpa [#allocation3], 1 }
 0xa04   :  { %2528 = vsyncpa [#allocation6], 1 }
 0xa05   :  { %2529 = vsyncpa [#allocation4], 1 }

</bundles_post_ra>
